<compile_context>
chip_gen: v7x
topology: tpu7x:2x2x1
jax: 0.10.0
libtpu: 0.0.40
codegen_flags: <defaults>
</compile_context>

<pallas_src>
import numpy as np
import jax
import jax.numpy as jnp
from jax import lax
from jax.experimental import pallas as pl
from jax.experimental.pallas import tpu as pltpu

VOCAB = 32        # voc.num_words
HIDDEN = 32       # hidden_size (== embedding dim), n_layers = 1
SEQ_LEN = 8       # padded input sequence length (batch = 1)
MAX_LENGTH = 8    # greedy decode steps
SOS_TOKEN = 1
NEG_INF = -1e30


def _greedy_kernel(tokens_ref, length_ref, emb_ref,
                   encx_ref, ench_ref, decx_ref, dech_ref, cat_ref, outw_ref,
                   tok_out_ref, score_out_ref):
    V, H = emb_ref.shape
    S = tokens_ref.shape[0]
    ML = tok_out_ref.shape[1]
    L = length_ref[0]

    # ------------- one-time precompute (off the recurrent chain) -----------
    # Gather all encoder embeddings once; pair rows [x_i | x_{S-1-i}] so fwd
    # and bwd x-side gate pre-activations come out of a single matmul.
    x_rows = [emb_ref[pl.ds(tokens_ref[t], 1), :] for t in range(S)]
    x_pair = jnp.concatenate(
        [jnp.concatenate([x_rows[i], x_rows[S - 1 - i]], axis=1)
         for i in range(S)], axis=0)                               # (S, 2H)

    # Fused encoder gate lane layout: [r_f | r_b | z_f | z_b | n_f | n_b | pad]
    enc_wx = encx_ref[0:2 * H, :]                                  # (2H, 256)
    enc_bx = encx_ref[2 * H:2 * H + 1, :]                          # (1, 256)
    gx_all = jnp.dot(x_pair, enc_wx,
                     preferred_element_type=jnp.float32) + enc_bx  # (S, 256)

    enc_wh = ench_ref[0:2 * H, :]                                  # (2H, 256)
    enc_bh = ench_ref[2 * H:2 * H + 1, :]                          # (1, 256)

    sub_iota = lax.broadcasted_iota(jnp.int32, (S, 1), 0)          # row ids
    valid_rows = sub_iota < L                                      # (S, 1)
    lane2h = lax.broadcasted_iota(jnp.int32, (1, 2 * H), 1)        # (1, 2H)

    # -------- fused fwd+bwd encoder GRU (one MXU launch per step) ----------
    h_both = jnp.zeros((1, 2 * H), jnp.float32)      # [h_fwd | h_bwd]
    enc = jnp.zeros((S, H), jnp.float32)             # summed bidirectional out
    for i in range(S):
        tb = S - 1 - i
        gx = gx_all[i:i + 1, :]                                    # (1, 256)
        gh = jnp.dot(h_both, enc_wh,
                     preferred_element_type=jnp.float32) + enc_bh  # (1, 256)
        s = jax.nn.sigmoid(gx[:, 0:4 * H] + gh[:, 0:4 * H])  # [r_f|r_b|z_f|z_b]
        r = s[:, 0:2 * H]
        z = s[:, 2 * H:4 * H]
        n = jnp.tanh(gx[:, 4 * H:6 * H] + r * gh[:, 4 * H:6 * H])
        h_new = (1.0 - z) * n + z * h_both
        # packed-sequence masking: fwd lanes frozen for i >= L, bwd for tb >= L
        upd_pos = jnp.where(lane2h < H, i, tb)                     # (1, 2H)
        h_both = jnp.where(upd_pos < L, h_new, h_both)
        # scatter valid outputs into the summed encoder output (side branch,
        # off the recurrent critical path; zero at padded positions)
        enc = (enc
               + jnp.where((sub_iota == i) & valid_rows, h_both[:, 0:H], 0.0)
               + jnp.where((sub_iota == tb) & valid_rows,
                           h_both[:, H:2 * H], 0.0))

    # ----------------- decoder-phase one-time setup ------------------------
    # Transpose encoder outputs once (native single-vreg (8,128) transpose of
    # the zero-padded slab) so per-step attention is two plain MXU dots.
    enc_pad = jnp.concatenate(
        [enc, jnp.zeros((S, 128 - H), jnp.float32)], axis=1)       # (S, 128)
    enc_t = enc_pad.T[0:H, :]                                      # (H, S)

    lane_s = lax.broadcasted_iota(jnp.int32, (1, S), 1)
    mask_row = jnp.where(lane_s < L, 0.0, NEG_INF)                 # (1, S)

    # Decoder-phase weight slabs hoisted once (small working set, no spill).
    dec_wh = dech_ref[0:H, :]                                      # (H, 128)
    dec_bh = dech_ref[H:H + 1, :]                                  # (1, 128)
    wc = cat_ref[0:2 * H, :]                                       # (2H, H)
    bc = cat_ref[2 * H:2 * H + 1, :]                               # (1, H)
    wo = outw_ref[0:H, :]                                          # (H, V)
    bo = outw_ref[H:H + 1, :]                                      # (1, V)

    # Decoder x-side gate table: one row per vocab id, layout [r | z | n | pad]
    gxv = jnp.dot(emb_ref[...], decx_ref[0:H, :],
                  preferred_element_type=jnp.float32) + decx_ref[H:H + 1, :]

    vidx = lax.broadcasted_iota(jnp.int32, (1, V), 1)
    step_iota = lax.broadcasted_iota(jnp.int32, (1, ML), 1)

    h = h_both[:, 0:H]                    # decoder_hidden = fwd final hidden
    gx_cur = gxv[SOS_TOKEN:SOS_TOKEN + 1, :]        # SOS start token (static)
    tok_acc = jnp.zeros((1, ML), jnp.int32)
    score_acc = jnp.zeros((1, ML), jnp.float32)

    # ------------------ greedy decoding, fully unrolled --------------------
    for step in range(ML):
        # TODO(synk): embedding_dropout is identity at inference -> skipped.
        # GRU cell (x-side gates precomputed in gx_cur).
        gh = jnp.dot(h, dec_wh, preferred_element_type=jnp.float32) + dec_bh
        s = jax.nn.sigmoid(gx_cur[:, 0:2 * H] + gh[:, 0:2 * H])
        r = s[:, 0:H]
        z = s[:, H:2 * H]
        n = jnp.tanh(gx_cur[:, 2 * H:3 * H] + r * gh[:, 2 * H:3 * H])
        h = (1.0 - z) * n + z * h

        # Luong "dot" attention on the MXU; exact divide (feeds the argmax).
        scores = jnp.dot(h, enc_t,
                         preferred_element_type=jnp.float32) + mask_row  # (1,S)
        m = jnp.max(scores, axis=1, keepdims=True)
        e = jnp.exp(scores - m)
        attn = e / jnp.sum(e, axis=1, keepdims=True)
        context = jnp.dot(attn, enc, preferred_element_type=jnp.float32)  # (1,H)

        # concat = tanh(Linear(2H, H) on cat([rnn_output, context]))
        hcat = jnp.concatenate([h, context], axis=1)               # (1, 2H)
        concat_out = jnp.tanh(
            jnp.dot(hcat, wc, preferred_element_type=jnp.float32) + bc)
        logits = jnp.dot(concat_out, wo,
                         preferred_element_type=jnp.float32) + bo  # (1, V)

        # softmax max-prob == 1 / sum(exp(logits - max)); EUP approx recip.
        lmax = jnp.max(logits, axis=1, keepdims=True)
        sum_exp = jnp.sum(jnp.exp(logits - lmax), axis=1, keepdims=True)
        score = pl.reciprocal(sum_exp, approx=True)                # (1, 1)
        # torch.max(softmax(logits), dim=1): first index of the maximum,
        # kept in vector form (no vreg->sreg roundtrip on the chain).
        idx = jnp.min(jnp.where(logits == lmax, vidx, V),
                      axis=1, keepdims=True)                       # (1, 1)

        tok_acc = jnp.where(step_iota == step, idx, tok_acc)
        score_acc = jnp.where(step_iota == step, score, score_acc)

        if step + 1 < ML:
            # Next token's x-side gates via one-hot gather on the MXU.
            onehot = (vidx == idx).astype(jnp.float32)             # (1, V)
            gx_cur = jnp.dot(onehot, gxv, preferred_element_type=jnp.float32)

    # Single store of each output vector at the end.
    tok_out_ref[...] = tok_acc
    score_out_ref[...] = score_acc


def pack_params(params):
    """Host-side packing: fuse GRU gate weights into lane-dense slabs."""
    H = params['emb'].shape[1]
    PW = ((3 * H + 127) // 128) * 128    # decoder fused-gate width (=128)
    BW = ((6 * H + 127) // 128) * 128    # fused fwd+bwd gate width   (=256)

    def pack_bidir(gf, gb, key):
        # Rows 0:H <- fwd weights, rows H:2H <- bwd weights (block diagonal);
        # columns [r_f | r_b | z_f | z_b | n_f | n_b | pad].
        w = jnp.zeros((2 * H, BW), jnp.float32)
        b = jnp.zeros((1, BW), jnp.float32)
        for g in range(3):
            w = w.at[0:H, (2 * g) * H:(2 * g + 1) * H].set(gf['w' + key][g])
            w = w.at[H:2 * H,
                     (2 * g + 1) * H:(2 * g + 2) * H].set(gb['w' + key][g])
            b = b.at[:, (2 * g) * H:(2 * g + 1) * H].set(gf['b' + key][g])
            b = b.at[:, (2 * g + 1) * H:(2 * g + 2) * H].set(gb['b' + key][g])
        return jnp.concatenate([w, b], axis=0)                     # (2H+1, BW)

    def pack_unidir(gd, key):
        # Columns [r | z | n | pad].
        w = jnp.zeros((H, PW), jnp.float32)
        b = jnp.zeros((1, PW), jnp.float32)
        for g in range(3):
            w = w.at[:, g * H:(g + 1) * H].set(gd['w' + key][g])
            b = b.at[:, g * H:(g + 1) * H].set(gd['b' + key][g])
        return jnp.concatenate([w, b], axis=0)                     # (H+1, PW)

    return dict(
        enc_x=pack_bidir(params['enc_f'], params['enc_b'], 'x'),
        enc_h=pack_bidir(params['enc_f'], params['enc_b'], 'h'),
        dec_x=pack_unidir(params['dec'], 'x'),
        dec_h=pack_unidir(params['dec'], 'h'),
        cat=jnp.concatenate([params['wc'], params['bc']], axis=0),  # (2H+1, H)
        out=jnp.concatenate([params['wo'], params['bo']], axis=0),  # (H+1, V)
    )


def greedy_search_decode(tokens, input_length, params, max_length):
    packs = pack_params(params)
    smem = pl.BlockSpec(memory_space=pltpu.MemorySpace.SMEM)
    vmem = pl.BlockSpec(memory_space=pltpu.MemorySpace.VMEM)
    inputs = (tokens.astype(jnp.int32),
              jnp.asarray([input_length], jnp.int32),
              params['emb'],
              packs['enc_x'], packs['enc_h'],
              packs['dec_x'], packs['dec_h'],
              packs['cat'], packs['out'])
    tok2d, score2d = pl.pallas_call(
        _greedy_kernel,
        out_shape=(jax.ShapeDtypeStruct((1, max_length), jnp.int32),
                   jax.ShapeDtypeStruct((1, max_length), jnp.float32)),
        in_specs=[smem, smem] + [vmem] * 7,
        out_specs=(vmem, vmem),
    )(*inputs)
    return tok2d.reshape(max_length), score2d.reshape(max_length)


def _gru_param(key, in_dim, hidden, scale=0.1):
    k1, k2, k3, k4 = jax.random.split(key, 4)
    return dict(
        wx=scale * jax.random.normal(k1, (3, in_dim, hidden), jnp.float32),
        wh=scale * jax.random.normal(k2, (3, hidden, hidden), jnp.float32),
        bx=scale * jax.random.normal(k3, (3, 1, hidden), jnp.float32),
        bh=scale * jax.random.normal(k4, (3, 1, hidden), jnp.float32),
    )


def init_params(key, vocab, hidden):
    ks = jax.random.split(key, 8)
    return dict(
        emb=0.1 * jax.random.normal(ks[0], (vocab, hidden), jnp.float32),
        enc_f=_gru_param(ks[1], hidden, hidden),
        enc_b=_gru_param(ks[2], hidden, hidden),
        dec=_gru_param(ks[3], hidden, hidden),
        wc=0.1 * jax.random.normal(ks[4], (2 * hidden, hidden), jnp.float32),
        bc=0.1 * jax.random.normal(ks[5], (1, hidden), jnp.float32),
        wo=0.1 * jax.random.normal(ks[6], (hidden, vocab), jnp.float32),
        bo=0.1 * jax.random.normal(ks[7], (1, vocab), jnp.float32),
    )


def _np_reference(tokens, L, params, max_length):
    p = jax.tree_util.tree_map(np.asarray, params)
    emb = p['emb']; H = emb.shape[1]

    def sigmoid(x):
        return 1.0 / (1.0 + np.exp(-x))

    def gru(x, h, g):
        r = sigmoid(x @ g['wx'][0] + g['bx'][0] + h @ g['wh'][0] + g['bh'][0])
        z = sigmoid(x @ g['wx'][1] + g['bx'][1] + h @ g['wh'][1] + g['bh'][1])
        n = np.tanh(x @ g['wx'][2] + g['bx'][2]
                    + r * (h @ g['wh'][2] + g['bh'][2]))
        return (1.0 - z) * n + z * h

    h = np.zeros((1, H), np.float32)
    enc = np.zeros((L, H), np.float32)
    for t in range(L):
        h = gru(emb[tokens[t]:tokens[t] + 1], h, p['enc_f'])
        enc[t] = h
    h_fwd = h
    hb = np.zeros((1, H), np.float32)
    for t in range(L - 1, -1, -1):
        hb = gru(emb[tokens[t]:tokens[t] + 1], hb, p['enc_b'])
        enc[t] += hb[0]

    tok, h = SOS_TOKEN, h_fwd
    all_tokens, all_scores = [], []
    for _ in range(max_length):
        h = gru(emb[tok:tok + 1], h, p['dec'])
        sc = h @ enc.T
        w = np.exp(sc - sc.max()); w /= w.sum()
        ctx = w @ enc
        co = np.tanh(h @ p['wc'][:H] + ctx @ p['wc'][H:] + p['bc'])
        logits = co @ p['wo'] + p['bo']
        pr = np.exp(logits - logits.max()); pr /= pr.sum()
        tok = int(pr.argmax())
        all_tokens.append(tok)
        all_scores.append(float(pr.max()))
    return np.array(all_tokens), np.array(all_scores, np.float32)


if __name__ == "__main__":
    key = jax.random.PRNGKey(0)
    pkey, tkey = jax.random.split(key)
    params = init_params(pkey, VOCAB, HIDDEN)
    input_length = 6                                   # <= SEQ_LEN (padded)
    tokens = jax.random.randint(tkey, (SEQ_LEN,), 2, VOCAB, dtype=jnp.int32)

    all_tokens, all_scores = greedy_search_decode(
        tokens, input_length, params, MAX_LENGTH)
    all_tokens, all_scores = jax.block_until_ready((all_tokens, all_scores))

    ref_tok, ref_score = _np_reference(np.asarray(tokens), input_length,
                                       params, MAX_LENGTH)
    assert all_tokens.shape == (MAX_LENGTH,)
    assert all_scores.shape == (MAX_LENGTH,)
    assert np.array_equal(np.asarray(all_tokens), ref_tok), (all_tokens, ref_tok)
    assert np.allclose(np.asarray(all_scores), ref_score,
                       rtol=5e-2, atol=5e-3), (all_scores, ref_score)
    print("KERNEL_OK")
</pallas_src>

<mosaic_0001>
module attributes {stable_mosaic.version = 11 : i64} {
  func.func @_greedy_kernel(%arg0: memref<8xi32, #tpu.memory_space<smem>>, %arg1: memref<1xi32, #tpu.memory_space<smem>>, %arg2: memref<32x32xf32, #tpu.memory_space<vmem>>, %arg3: memref<65x256xf32, #tpu.memory_space<vmem>>, %arg4: memref<65x256xf32, #tpu.memory_space<vmem>>, %arg5: memref<33x128xf32, #tpu.memory_space<vmem>>, %arg6: memref<33x128xf32, #tpu.memory_space<vmem>>, %arg7: memref<65x32xf32, #tpu.memory_space<vmem>>, %arg8: memref<33x32xf32, #tpu.memory_space<vmem>>, %arg9: memref<1x8xi32, #tpu.memory_space<vmem>>, %arg10: memref<1x8xf32, #tpu.memory_space<vmem>>) attributes {dimension_semantics = [], scalar_prefetch = 0 : i64, scratch_operands = 0 : i64, tpu.core_type = #tpu.core_type<tc>} {
    %c0 = arith.constant 0 : index
    %0 = memref.load %arg1[%c0] : memref<1xi32, #tpu.memory_space<smem>>
    %c0_0 = arith.constant 0 : index
    %1 = memref.load %arg0[%c0_0] : memref<8xi32, #tpu.memory_space<smem>>
    %2 = arith.index_cast %1 : i32 to index
    %c0_1 = arith.constant 0 : index
    %3 = vector.load %arg2[%2, %c0_1] : memref<32x32xf32, #tpu.memory_space<vmem>>, vector<1x32xf32>
    %c1 = arith.constant 1 : index
    %4 = memref.load %arg0[%c1] : memref<8xi32, #tpu.memory_space<smem>>
    %5 = arith.index_cast %4 : i32 to index
    %c0_2 = arith.constant 0 : index
    %6 = vector.load %arg2[%5, %c0_2] : memref<32x32xf32, #tpu.memory_space<vmem>>, vector<1x32xf32>
    %c2 = arith.constant 2 : index
    %7 = memref.load %arg0[%c2] : memref<8xi32, #tpu.memory_space<smem>>
    %8 = arith.index_cast %7 : i32 to index
    %c0_3 = arith.constant 0 : index
    %9 = vector.load %arg2[%8, %c0_3] : memref<32x32xf32, #tpu.memory_space<vmem>>, vector<1x32xf32>
    %c3 = arith.constant 3 : index
    %10 = memref.load %arg0[%c3] : memref<8xi32, #tpu.memory_space<smem>>
    %11 = arith.index_cast %10 : i32 to index
    %c0_4 = arith.constant 0 : index
    %12 = vector.load %arg2[%11, %c0_4] : memref<32x32xf32, #tpu.memory_space<vmem>>, vector<1x32xf32>
    %c4 = arith.constant 4 : index
    %13 = memref.load %arg0[%c4] : memref<8xi32, #tpu.memory_space<smem>>
    %14 = arith.index_cast %13 : i32 to index
    %c0_5 = arith.constant 0 : index
    %15 = vector.load %arg2[%14, %c0_5] : memref<32x32xf32, #tpu.memory_space<vmem>>, vector<1x32xf32>
    %c5 = arith.constant 5 : index
    %16 = memref.load %arg0[%c5] : memref<8xi32, #tpu.memory_space<smem>>
    %17 = arith.index_cast %16 : i32 to index
    %c0_6 = arith.constant 0 : index
    %18 = vector.load %arg2[%17, %c0_6] : memref<32x32xf32, #tpu.memory_space<vmem>>, vector<1x32xf32>
    %c6 = arith.constant 6 : index
    %19 = memref.load %arg0[%c6] : memref<8xi32, #tpu.memory_space<smem>>
    %20 = arith.index_cast %19 : i32 to index
    %c0_7 = arith.constant 0 : index
    %21 = vector.load %arg2[%20, %c0_7] : memref<32x32xf32, #tpu.memory_space<vmem>>, vector<1x32xf32>
    %c7 = arith.constant 7 : index
    %22 = memref.load %arg0[%c7] : memref<8xi32, #tpu.memory_space<smem>>
    %23 = arith.index_cast %22 : i32 to index
    %c0_8 = arith.constant 0 : index
    %24 = vector.load %arg2[%23, %c0_8] : memref<32x32xf32, #tpu.memory_space<vmem>>, vector<1x32xf32>
    %25 = tpu.concatenate %3, %24 in 1 : vector<1x32xf32>, vector<1x32xf32> -> vector<1x64xf32>
    %26 = tpu.concatenate %6, %21 in 1 : vector<1x32xf32>, vector<1x32xf32> -> vector<1x64xf32>
    %27 = tpu.concatenate %9, %18 in 1 : vector<1x32xf32>, vector<1x32xf32> -> vector<1x64xf32>
    %28 = tpu.concatenate %12, %15 in 1 : vector<1x32xf32>, vector<1x32xf32> -> vector<1x64xf32>
    %29 = tpu.concatenate %15, %12 in 1 : vector<1x32xf32>, vector<1x32xf32> -> vector<1x64xf32>
    %30 = tpu.concatenate %18, %9 in 1 : vector<1x32xf32>, vector<1x32xf32> -> vector<1x64xf32>
    %31 = tpu.concatenate %21, %6 in 1 : vector<1x32xf32>, vector<1x32xf32> -> vector<1x64xf32>
    %32 = tpu.concatenate %24, %3 in 1 : vector<1x32xf32>, vector<1x32xf32> -> vector<1x64xf32>
    %33 = tpu.concatenate %25, %26, %27, %28, %29, %30, %31, %32 in 0 : vector<1x64xf32>, vector<1x64xf32>, vector<1x64xf32>, vector<1x64xf32>, vector<1x64xf32>, vector<1x64xf32>, vector<1x64xf32>, vector<1x64xf32> -> vector<8x64xf32>
    %c0_9 = arith.constant 0 : index
    %c0_10 = arith.constant 0 : index
    %34 = vector.load %arg3[%c0_9, %c0_10] : memref<65x256xf32, #tpu.memory_space<vmem>>, vector<64x256xf32>
    %c64 = arith.constant 64 : index
    %c0_11 = arith.constant 0 : index
    %35 = vector.load %arg3[%c64, %c0_11] : memref<65x256xf32, #tpu.memory_space<vmem>>, vector<1x256xf32>
    %cst = arith.constant dense<0.000000e+00> : vector<8x256xf32>
    %36 = tpu.matmul %33, %34, %cst {dimension_numbers = #tpu.dot_dimension_numbers<[1], [0], [0], [1], [0, 0, 1, 1], [], []>} : vector<8x64xf32>, vector<64x256xf32>, vector<8x256xf32> -> vector<8x256xf32>
    %37 = vector.broadcast %35 : vector<1x256xf32> to vector<8x256xf32>
    %38 = arith.addf %36, %37 : vector<8x256xf32>
    %c0_12 = arith.constant 0 : index
    %c0_13 = arith.constant 0 : index
    %39 = vector.load %arg4[%c0_12, %c0_13] : memref<65x256xf32, #tpu.memory_space<vmem>>, vector<64x256xf32>
    %c64_14 = arith.constant 64 : index
    %c0_15 = arith.constant 0 : index
    %40 = vector.load %arg4[%c64_14, %c0_15] : memref<65x256xf32, #tpu.memory_space<vmem>>, vector<1x256xf32>
    %41 = tpu.iota {dimensions = array<i32: 0>} : vector<8x1xi32>
    %42 = vector.broadcast %0 : i32 to vector<8x1xi32>
    %43 = arith.cmpi slt, %41, %42 : vector<8x1xi32>
    %44 = tpu.iota {dimensions = array<i32: 1>} : vector<1x64xi32>
    %cst_16 = arith.constant 0.000000e+00 : f32
    %45 = vector.broadcast %cst_16 : f32 to vector<1x64xf32>
    %cst_17 = arith.constant 0.000000e+00 : f32
    %46 = vector.broadcast %cst_17 : f32 to vector<8x32xf32>
    %47 = vector.extract_strided_slice %38 {offsets = [0, 0], sizes = [1, 256], strides = [1, 1]} : vector<8x256xf32> to vector<1x256xf32>
    %cst_18 = arith.constant dense<0.000000e+00> : vector<1x256xf32>
    %48 = tpu.matmul %45, %39, %cst_18 {dimension_numbers = #tpu.dot_dimension_numbers<[1], [0], [0], [1], [0, 0, 1, 1], [], []>} : vector<1x64xf32>, vector<64x256xf32>, vector<1x256xf32> -> vector<1x256xf32>
    %49 = arith.addf %48, %40 : vector<1x256xf32>
    %50 = vector.extract_strided_slice %47 {offsets = [0, 0], sizes = [1, 128], strides = [1, 1]} : vector<1x256xf32> to vector<1x128xf32>
    %51 = vector.extract_strided_slice %49 {offsets = [0, 0], sizes = [1, 128], strides = [1, 1]} : vector<1x256xf32> to vector<1x128xf32>
    %52 = arith.addf %50, %51 : vector<1x128xf32>
    %53 = arith.negf %52 : vector<1x128xf32>
    %54 = math.exp %53 : vector<1x128xf32>
    %cst_19 = arith.constant 1.000000e+00 : f32
    %55 = vector.broadcast %cst_19 : f32 to vector<1x128xf32>
    %56 = arith.addf %55, %54 : vector<1x128xf32>
    %57 = arith.divf %55, %56 : vector<1x128xf32>
    %58 = vector.extract_strided_slice %57 {offsets = [0, 0], sizes = [1, 64], strides = [1, 1]} : vector<1x128xf32> to vector<1x64xf32>
    %59 = vector.extract_strided_slice %57 {offsets = [0, 64], sizes = [1, 64], strides = [1, 1]} : vector<1x128xf32> to vector<1x64xf32>
    %60 = vector.extract_strided_slice %47 {offsets = [0, 128], sizes = [1, 64], strides = [1, 1]} : vector<1x256xf32> to vector<1x64xf32>
    %61 = vector.extract_strided_slice %49 {offsets = [0, 128], sizes = [1, 64], strides = [1, 1]} : vector<1x256xf32> to vector<1x64xf32>
    %62 = arith.mulf %58, %61 : vector<1x64xf32>
    %63 = arith.addf %60, %62 : vector<1x64xf32>
    %64 = math.tanh %63 : vector<1x64xf32>
    %cst_20 = arith.constant 1.000000e+00 : f32
    %65 = vector.broadcast %cst_20 : f32 to vector<1x64xf32>
    %66 = arith.subf %65, %59 : vector<1x64xf32>
    %67 = arith.mulf %66, %64 : vector<1x64xf32>
    %68 = arith.mulf %59, %45 : vector<1x64xf32>
    %69 = arith.addf %67, %68 : vector<1x64xf32>
    %c32_i32 = arith.constant 32 : i32
    %70 = vector.broadcast %c32_i32 : i32 to vector<1x64xi32>
    %71 = arith.cmpi slt, %44, %70 : vector<1x64xi32>
    %c0_i32 = arith.constant 0 : i32
    %c7_i32 = arith.constant 7 : i32
    %72 = vector.broadcast %c0_i32 : i32 to vector<1x64xi32>
    %73 = vector.broadcast %c7_i32 : i32 to vector<1x64xi32>
    %74 = arith.select %71, %72, %73 : vector<1x64xi1>, vector<1x64xi32>
    %75 = vector.broadcast %0 : i32 to vector<1x64xi32>
    %76 = arith.cmpi slt, %74, %75 : vector<1x64xi32>
    %77 = arith.select %76, %69, %45 : vector<1x64xi1>, vector<1x64xf32>
    %c0_i32_21 = arith.constant 0 : i32
    %78 = vector.broadcast %c0_i32_21 : i32 to vector<8x1xi32>
    %79 = arith.cmpi eq, %41, %78 : vector<8x1xi32>
    %80 = arith.andi %79, %43 : vector<8x1xi1>
    %81 = vector.extract_strided_slice %77 {offsets = [0, 0], sizes = [1, 32], strides = [1, 1]} : vector<1x64xf32> to vector<1x32xf32>
    %cst_22 = arith.constant 0.000000e+00 : f32
    %82 = vector.shape_cast %80 : vector<8x1xi1> to vector<8x1xi1>
    %83 = vector.broadcast %82 : vector<8x1xi1> to vector<8x32xi1>
    %84 = vector.shape_cast %81 : vector<1x32xf32> to vector<1x32xf32>
    %85 = vector.broadcast %84 : vector<1x32xf32> to vector<8x32xf32>
    %86 = vector.broadcast %cst_22 : f32 to vector<8x32xf32>
    %87 = arith.select %83, %85, %86 : vector<8x32xi1>, vector<8x32xf32>
    %88 = arith.addf %46, %87 : vector<8x32xf32>
    %c7_i32_23 = arith.constant 7 : i32
    %89 = vector.broadcast %c7_i32_23 : i32 to vector<8x1xi32>
    %90 = arith.cmpi eq, %41, %89 : vector<8x1xi32>
    %91 = arith.andi %90, %43 : vector<8x1xi1>
    %92 = vector.extract_strided_slice %77 {offsets = [0, 32], sizes = [1, 32], strides = [1, 1]} : vector<1x64xf32> to vector<1x32xf32>
    %cst_24 = arith.constant 0.000000e+00 : f32
    %93 = vector.shape_cast %91 : vector<8x1xi1> to vector<8x1xi1>
    %94 = vector.broadcast %93 : vector<8x1xi1> to vector<8x32xi1>
    %95 = vector.shape_cast %92 : vector<1x32xf32> to vector<1x32xf32>
    %96 = vector.broadcast %95 : vector<1x32xf32> to vector<8x32xf32>
    %97 = vector.broadcast %cst_24 : f32 to vector<8x32xf32>
    %98 = arith.select %94, %96, %97 : vector<8x32xi1>, vector<8x32xf32>
    %99 = arith.addf %88, %98 : vector<8x32xf32>
    %100 = vector.extract_strided_slice %38 {offsets = [1, 0], sizes = [1, 256], strides = [1, 1]} : vector<8x256xf32> to vector<1x256xf32>
    %cst_25 = arith.constant dense<0.000000e+00> : vector<1x256xf32>
    %101 = tpu.matmul %77, %39, %cst_25 {dimension_numbers = #tpu.dot_dimension_numbers<[1], [0], [0], [1], [0, 0, 1, 1], [], []>} : vector<1x64xf32>, vector<64x256xf32>, vector<1x256xf32> -> vector<1x256xf32>
    %102 = arith.addf %101, %40 : vector<1x256xf32>
    %103 = vector.extract_strided_slice %100 {offsets = [0, 0], sizes = [1, 128], strides = [1, 1]} : vector<1x256xf32> to vector<1x128xf32>
    %104 = vector.extract_strided_slice %102 {offsets = [0, 0], sizes = [1, 128], strides = [1, 1]} : vector<1x256xf32> to vector<1x128xf32>
    %105 = arith.addf %103, %104 : vector<1x128xf32>
    %106 = arith.negf %105 : vector<1x128xf32>
    %107 = math.exp %106 : vector<1x128xf32>
    %cst_26 = arith.constant 1.000000e+00 : f32
    %108 = vector.broadcast %cst_26 : f32 to vector<1x128xf32>
    %109 = arith.addf %108, %107 : vector<1x128xf32>
    %110 = arith.divf %108, %109 : vector<1x128xf32>
    %111 = vector.extract_strided_slice %110 {offsets = [0, 0], sizes = [1, 64], strides = [1, 1]} : vector<1x128xf32> to vector<1x64xf32>
    %112 = vector.extract_strided_slice %110 {offsets = [0, 64], sizes = [1, 64], strides = [1, 1]} : vector<1x128xf32> to vector<1x64xf32>
    %113 = vector.extract_strided_slice %100 {offsets = [0, 128], sizes = [1, 64], strides = [1, 1]} : vector<1x256xf32> to vector<1x64xf32>
    %114 = vector.extract_strided_slice %102 {offsets = [0, 128], sizes = [1, 64], strides = [1, 1]} : vector<1x256xf32> to vector<1x64xf32>
    %115 = arith.mulf %111, %114 : vector<1x64xf32>
    %116 = arith.addf %113, %115 : vector<1x64xf32>
    %117 = math.tanh %116 : vector<1x64xf32>
    %cst_27 = arith.constant 1.000000e+00 : f32
    %118 = vector.broadcast %cst_27 : f32 to vector<1x64xf32>
    %119 = arith.subf %118, %112 : vector<1x64xf32>
    %120 = arith.mulf %119, %117 : vector<1x64xf32>
    %121 = arith.mulf %112, %77 : vector<1x64xf32>
    %122 = arith.addf %120, %121 : vector<1x64xf32>
    %c32_i32_28 = arith.constant 32 : i32
    %123 = vector.broadcast %c32_i32_28 : i32 to vector<1x64xi32>
    %124 = arith.cmpi slt, %44, %123 : vector<1x64xi32>
    %c1_i32 = arith.constant 1 : i32
    %c6_i32 = arith.constant 6 : i32
    %125 = vector.broadcast %c1_i32 : i32 to vector<1x64xi32>
    %126 = vector.broadcast %c6_i32 : i32 to vector<1x64xi32>
    %127 = arith.select %124, %125, %126 : vector<1x64xi1>, vector<1x64xi32>
    %128 = vector.broadcast %0 : i32 to vector<1x64xi32>
    %129 = arith.cmpi slt, %127, %128 : vector<1x64xi32>
    %130 = arith.select %129, %122, %77 : vector<1x64xi1>, vector<1x64xf32>
    %c1_i32_29 = arith.constant 1 : i32
    %131 = vector.broadcast %c1_i32_29 : i32 to vector<8x1xi32>
    %132 = arith.cmpi eq, %41, %131 : vector<8x1xi32>
    %133 = arith.andi %132, %43 : vector<8x1xi1>
    %134 = vector.extract_strided_slice %130 {offsets = [0, 0], sizes = [1, 32], strides = [1, 1]} : vector<1x64xf32> to vector<1x32xf32>
    %cst_30 = arith.constant 0.000000e+00 : f32
    %135 = vector.shape_cast %133 : vector<8x1xi1> to vector<8x1xi1>
    %136 = vector.broadcast %135 : vector<8x1xi1> to vector<8x32xi1>
    %137 = vector.shape_cast %134 : vector<1x32xf32> to vector<1x32xf32>
    %138 = vector.broadcast %137 : vector<1x32xf32> to vector<8x32xf32>
    %139 = vector.broadcast %cst_30 : f32 to vector<8x32xf32>
    %140 = arith.select %136, %138, %139 : vector<8x32xi1>, vector<8x32xf32>
    %141 = arith.addf %99, %140 : vector<8x32xf32>
    %c6_i32_31 = arith.constant 6 : i32
    %142 = vector.broadcast %c6_i32_31 : i32 to vector<8x1xi32>
    %143 = arith.cmpi eq, %41, %142 : vector<8x1xi32>
    %144 = arith.andi %143, %43 : vector<8x1xi1>
    %145 = vector.extract_strided_slice %130 {offsets = [0, 32], sizes = [1, 32], strides = [1, 1]} : vector<1x64xf32> to vector<1x32xf32>
    %cst_32 = arith.constant 0.000000e+00 : f32
    %146 = vector.shape_cast %144 : vector<8x1xi1> to vector<8x1xi1>
    %147 = vector.broadcast %146 : vector<8x1xi1> to vector<8x32xi1>
    %148 = vector.shape_cast %145 : vector<1x32xf32> to vector<1x32xf32>
    %149 = vector.broadcast %148 : vector<1x32xf32> to vector<8x32xf32>
    %150 = vector.broadcast %cst_32 : f32 to vector<8x32xf32>
    %151 = arith.select %147, %149, %150 : vector<8x32xi1>, vector<8x32xf32>
    %152 = arith.addf %141, %151 : vector<8x32xf32>
    %153 = vector.extract_strided_slice %38 {offsets = [2, 0], sizes = [1, 256], strides = [1, 1]} : vector<8x256xf32> to vector<1x256xf32>
    %cst_33 = arith.constant dense<0.000000e+00> : vector<1x256xf32>
    %154 = tpu.matmul %130, %39, %cst_33 {dimension_numbers = #tpu.dot_dimension_numbers<[1], [0], [0], [1], [0, 0, 1, 1], [], []>} : vector<1x64xf32>, vector<64x256xf32>, vector<1x256xf32> -> vector<1x256xf32>
    %155 = arith.addf %154, %40 : vector<1x256xf32>
    %156 = vector.extract_strided_slice %153 {offsets = [0, 0], sizes = [1, 128], strides = [1, 1]} : vector<1x256xf32> to vector<1x128xf32>
    %157 = vector.extract_strided_slice %155 {offsets = [0, 0], sizes = [1, 128], strides = [1, 1]} : vector<1x256xf32> to vector<1x128xf32>
    %158 = arith.addf %156, %157 : vector<1x128xf32>
    %159 = arith.negf %158 : vector<1x128xf32>
    %160 = math.exp %159 : vector<1x128xf32>
    %cst_34 = arith.constant 1.000000e+00 : f32
    %161 = vector.broadcast %cst_34 : f32 to vector<1x128xf32>
    %162 = arith.addf %161, %160 : vector<1x128xf32>
    %163 = arith.divf %161, %162 : vector<1x128xf32>
    %164 = vector.extract_strided_slice %163 {offsets = [0, 0], sizes = [1, 64], strides = [1, 1]} : vector<1x128xf32> to vector<1x64xf32>
    %165 = vector.extract_strided_slice %163 {offsets = [0, 64], sizes = [1, 64], strides = [1, 1]} : vector<1x128xf32> to vector<1x64xf32>
    %166 = vector.extract_strided_slice %153 {offsets = [0, 128], sizes = [1, 64], strides = [1, 1]} : vector<1x256xf32> to vector<1x64xf32>
    %167 = vector.extract_strided_slice %155 {offsets = [0, 128], sizes = [1, 64], strides = [1, 1]} : vector<1x256xf32> to vector<1x64xf32>
    %168 = arith.mulf %164, %167 : vector<1x64xf32>
    %169 = arith.addf %166, %168 : vector<1x64xf32>
    %170 = math.tanh %169 : vector<1x64xf32>
    %cst_35 = arith.constant 1.000000e+00 : f32
    %171 = vector.broadcast %cst_35 : f32 to vector<1x64xf32>
    %172 = arith.subf %171, %165 : vector<1x64xf32>
    %173 = arith.mulf %172, %170 : vector<1x64xf32>
    %174 = arith.mulf %165, %130 : vector<1x64xf32>
    %175 = arith.addf %173, %174 : vector<1x64xf32>
    %c32_i32_36 = arith.constant 32 : i32
    %176 = vector.broadcast %c32_i32_36 : i32 to vector<1x64xi32>
    %177 = arith.cmpi slt, %44, %176 : vector<1x64xi32>
    %c2_i32 = arith.constant 2 : i32
    %c5_i32 = arith.constant 5 : i32
    %178 = vector.broadcast %c2_i32 : i32 to vector<1x64xi32>
    %179 = vector.broadcast %c5_i32 : i32 to vector<1x64xi32>
    %180 = arith.select %177, %178, %179 : vector<1x64xi1>, vector<1x64xi32>
    %181 = vector.broadcast %0 : i32 to vector<1x64xi32>
    %182 = arith.cmpi slt, %180, %181 : vector<1x64xi32>
    %183 = arith.select %182, %175, %130 : vector<1x64xi1>, vector<1x64xf32>
    %c2_i32_37 = arith.constant 2 : i32
    %184 = vector.broadcast %c2_i32_37 : i32 to vector<8x1xi32>
    %185 = arith.cmpi eq, %41, %184 : vector<8x1xi32>
    %186 = arith.andi %185, %43 : vector<8x1xi1>
    %187 = vector.extract_strided_slice %183 {offsets = [0, 0], sizes = [1, 32], strides = [1, 1]} : vector<1x64xf32> to vector<1x32xf32>
    %cst_38 = arith.constant 0.000000e+00 : f32
    %188 = vector.shape_cast %186 : vector<8x1xi1> to vector<8x1xi1>
    %189 = vector.broadcast %188 : vector<8x1xi1> to vector<8x32xi1>
    %190 = vector.shape_cast %187 : vector<1x32xf32> to vector<1x32xf32>
    %191 = vector.broadcast %190 : vector<1x32xf32> to vector<8x32xf32>
    %192 = vector.broadcast %cst_38 : f32 to vector<8x32xf32>
    %193 = arith.select %189, %191, %192 : vector<8x32xi1>, vector<8x32xf32>
    %194 = arith.addf %152, %193 : vector<8x32xf32>
    %c5_i32_39 = arith.constant 5 : i32
    %195 = vector.broadcast %c5_i32_39 : i32 to vector<8x1xi32>
    %196 = arith.cmpi eq, %41, %195 : vector<8x1xi32>
    %197 = arith.andi %196, %43 : vector<8x1xi1>
    %198 = vector.extract_strided_slice %183 {offsets = [0, 32], sizes = [1, 32], strides = [1, 1]} : vector<1x64xf32> to vector<1x32xf32>
    %cst_40 = arith.constant 0.000000e+00 : f32
    %199 = vector.shape_cast %197 : vector<8x1xi1> to vector<8x1xi1>
    %200 = vector.broadcast %199 : vector<8x1xi1> to vector<8x32xi1>
    %201 = vector.shape_cast %198 : vector<1x32xf32> to vector<1x32xf32>
    %202 = vector.broadcast %201 : vector<1x32xf32> to vector<8x32xf32>
    %203 = vector.broadcast %cst_40 : f32 to vector<8x32xf32>
    %204 = arith.select %200, %202, %203 : vector<8x32xi1>, vector<8x32xf32>
    %205 = arith.addf %194, %204 : vector<8x32xf32>
    %206 = vector.extract_strided_slice %38 {offsets = [3, 0], sizes = [1, 256], strides = [1, 1]} : vector<8x256xf32> to vector<1x256xf32>
    %cst_41 = arith.constant dense<0.000000e+00> : vector<1x256xf32>
    %207 = tpu.matmul %183, %39, %cst_41 {dimension_numbers = #tpu.dot_dimension_numbers<[1], [0], [0], [1], [0, 0, 1, 1], [], []>} : vector<1x64xf32>, vector<64x256xf32>, vector<1x256xf32> -> vector<1x256xf32>
    %208 = arith.addf %207, %40 : vector<1x256xf32>
    %209 = vector.extract_strided_slice %206 {offsets = [0, 0], sizes = [1, 128], strides = [1, 1]} : vector<1x256xf32> to vector<1x128xf32>
    %210 = vector.extract_strided_slice %208 {offsets = [0, 0], sizes = [1, 128], strides = [1, 1]} : vector<1x256xf32> to vector<1x128xf32>
    %211 = arith.addf %209, %210 : vector<1x128xf32>
    %212 = arith.negf %211 : vector<1x128xf32>
    %213 = math.exp %212 : vector<1x128xf32>
    %cst_42 = arith.constant 1.000000e+00 : f32
    %214 = vector.broadcast %cst_42 : f32 to vector<1x128xf32>
    %215 = arith.addf %214, %213 : vector<1x128xf32>
    %216 = arith.divf %214, %215 : vector<1x128xf32>
    %217 = vector.extract_strided_slice %216 {offsets = [0, 0], sizes = [1, 64], strides = [1, 1]} : vector<1x128xf32> to vector<1x64xf32>
    %218 = vector.extract_strided_slice %216 {offsets = [0, 64], sizes = [1, 64], strides = [1, 1]} : vector<1x128xf32> to vector<1x64xf32>
    %219 = vector.extract_strided_slice %206 {offsets = [0, 128], sizes = [1, 64], strides = [1, 1]} : vector<1x256xf32> to vector<1x64xf32>
    %220 = vector.extract_strided_slice %208 {offsets = [0, 128], sizes = [1, 64], strides = [1, 1]} : vector<1x256xf32> to vector<1x64xf32>
    %221 = arith.mulf %217, %220 : vector<1x64xf32>
    %222 = arith.addf %219, %221 : vector<1x64xf32>
    %223 = math.tanh %222 : vector<1x64xf32>
    %cst_43 = arith.constant 1.000000e+00 : f32
    %224 = vector.broadcast %cst_43 : f32 to vector<1x64xf32>
    %225 = arith.subf %224, %218 : vector<1x64xf32>
    %226 = arith.mulf %225, %223 : vector<1x64xf32>
    %227 = arith.mulf %218, %183 : vector<1x64xf32>
    %228 = arith.addf %226, %227 : vector<1x64xf32>
    %c32_i32_44 = arith.constant 32 : i32
    %229 = vector.broadcast %c32_i32_44 : i32 to vector<1x64xi32>
    %230 = arith.cmpi slt, %44, %229 : vector<1x64xi32>
    %c3_i32 = arith.constant 3 : i32
    %c4_i32 = arith.constant 4 : i32
    %231 = vector.broadcast %c3_i32 : i32 to vector<1x64xi32>
    %232 = vector.broadcast %c4_i32 : i32 to vector<1x64xi32>
    %233 = arith.select %230, %231, %232 : vector<1x64xi1>, vector<1x64xi32>
    %234 = vector.broadcast %0 : i32 to vector<1x64xi32>
    %235 = arith.cmpi slt, %233, %234 : vector<1x64xi32>
    %236 = arith.select %235, %228, %183 : vector<1x64xi1>, vector<1x64xf32>
    %c3_i32_45 = arith.constant 3 : i32
    %237 = vector.broadcast %c3_i32_45 : i32 to vector<8x1xi32>
    %238 = arith.cmpi eq, %41, %237 : vector<8x1xi32>
    %239 = arith.andi %238, %43 : vector<8x1xi1>
    %240 = vector.extract_strided_slice %236 {offsets = [0, 0], sizes = [1, 32], strides = [1, 1]} : vector<1x64xf32> to vector<1x32xf32>
    %cst_46 = arith.constant 0.000000e+00 : f32
    %241 = vector.shape_cast %239 : vector<8x1xi1> to vector<8x1xi1>
    %242 = vector.broadcast %241 : vector<8x1xi1> to vector<8x32xi1>
    %243 = vector.shape_cast %240 : vector<1x32xf32> to vector<1x32xf32>
    %244 = vector.broadcast %243 : vector<1x32xf32> to vector<8x32xf32>
    %245 = vector.broadcast %cst_46 : f32 to vector<8x32xf32>
    %246 = arith.select %242, %244, %245 : vector<8x32xi1>, vector<8x32xf32>
    %247 = arith.addf %205, %246 : vector<8x32xf32>
    %c4_i32_47 = arith.constant 4 : i32
    %248 = vector.broadcast %c4_i32_47 : i32 to vector<8x1xi32>
    %249 = arith.cmpi eq, %41, %248 : vector<8x1xi32>
    %250 = arith.andi %249, %43 : vector<8x1xi1>
    %251 = vector.extract_strided_slice %236 {offsets = [0, 32], sizes = [1, 32], strides = [1, 1]} : vector<1x64xf32> to vector<1x32xf32>
    %cst_48 = arith.constant 0.000000e+00 : f32
    %252 = vector.shape_cast %250 : vector<8x1xi1> to vector<8x1xi1>
    %253 = vector.broadcast %252 : vector<8x1xi1> to vector<8x32xi1>
    %254 = vector.shape_cast %251 : vector<1x32xf32> to vector<1x32xf32>
    %255 = vector.broadcast %254 : vector<1x32xf32> to vector<8x32xf32>
    %256 = vector.broadcast %cst_48 : f32 to vector<8x32xf32>
    %257 = arith.select %253, %255, %256 : vector<8x32xi1>, vector<8x32xf32>
    %258 = arith.addf %247, %257 : vector<8x32xf32>
    %259 = vector.extract_strided_slice %38 {offsets = [4, 0], sizes = [1, 256], strides = [1, 1]} : vector<8x256xf32> to vector<1x256xf32>
    %cst_49 = arith.constant dense<0.000000e+00> : vector<1x256xf32>
    %260 = tpu.matmul %236, %39, %cst_49 {dimension_numbers = #tpu.dot_dimension_numbers<[1], [0], [0], [1], [0, 0, 1, 1], [], []>} : vector<1x64xf32>, vector<64x256xf32>, vector<1x256xf32> -> vector<1x256xf32>
    %261 = arith.addf %260, %40 : vector<1x256xf32>
    %262 = vector.extract_strided_slice %259 {offsets = [0, 0], sizes = [1, 128], strides = [1, 1]} : vector<1x256xf32> to vector<1x128xf32>
    %263 = vector.extract_strided_slice %261 {offsets = [0, 0], sizes = [1, 128], strides = [1, 1]} : vector<1x256xf32> to vector<1x128xf32>
    %264 = arith.addf %262, %263 : vector<1x128xf32>
    %265 = arith.negf %264 : vector<1x128xf32>
    %266 = math.exp %265 : vector<1x128xf32>
    %cst_50 = arith.constant 1.000000e+00 : f32
    %267 = vector.broadcast %cst_50 : f32 to vector<1x128xf32>
    %268 = arith.addf %267, %266 : vector<1x128xf32>
    %269 = arith.divf %267, %268 : vector<1x128xf32>
    %270 = vector.extract_strided_slice %269 {offsets = [0, 0], sizes = [1, 64], strides = [1, 1]} : vector<1x128xf32> to vector<1x64xf32>
    %271 = vector.extract_strided_slice %269 {offsets = [0, 64], sizes = [1, 64], strides = [1, 1]} : vector<1x128xf32> to vector<1x64xf32>
    %272 = vector.extract_strided_slice %259 {offsets = [0, 128], sizes = [1, 64], strides = [1, 1]} : vector<1x256xf32> to vector<1x64xf32>
    %273 = vector.extract_strided_slice %261 {offsets = [0, 128], sizes = [1, 64], strides = [1, 1]} : vector<1x256xf32> to vector<1x64xf32>
    %274 = arith.mulf %270, %273 : vector<1x64xf32>
    %275 = arith.addf %272, %274 : vector<1x64xf32>
    %276 = math.tanh %275 : vector<1x64xf32>
    %cst_51 = arith.constant 1.000000e+00 : f32
    %277 = vector.broadcast %cst_51 : f32 to vector<1x64xf32>
    %278 = arith.subf %277, %271 : vector<1x64xf32>
    %279 = arith.mulf %278, %276 : vector<1x64xf32>
    %280 = arith.mulf %271, %236 : vector<1x64xf32>
    %281 = arith.addf %279, %280 : vector<1x64xf32>
    %c32_i32_52 = arith.constant 32 : i32
    %282 = vector.broadcast %c32_i32_52 : i32 to vector<1x64xi32>
    %283 = arith.cmpi slt, %44, %282 : vector<1x64xi32>
    %c4_i32_53 = arith.constant 4 : i32
    %c3_i32_54 = arith.constant 3 : i32
    %284 = vector.broadcast %c4_i32_53 : i32 to vector<1x64xi32>
    %285 = vector.broadcast %c3_i32_54 : i32 to vector<1x64xi32>
    %286 = arith.select %283, %284, %285 : vector<1x64xi1>, vector<1x64xi32>
    %287 = vector.broadcast %0 : i32 to vector<1x64xi32>
    %288 = arith.cmpi slt, %286, %287 : vector<1x64xi32>
    %289 = arith.select %288, %281, %236 : vector<1x64xi1>, vector<1x64xf32>
    %c4_i32_55 = arith.constant 4 : i32
    %290 = vector.broadcast %c4_i32_55 : i32 to vector<8x1xi32>
    %291 = arith.cmpi eq, %41, %290 : vector<8x1xi32>
    %292 = arith.andi %291, %43 : vector<8x1xi1>
    %293 = vector.extract_strided_slice %289 {offsets = [0, 0], sizes = [1, 32], strides = [1, 1]} : vector<1x64xf32> to vector<1x32xf32>
    %cst_56 = arith.constant 0.000000e+00 : f32
    %294 = vector.shape_cast %292 : vector<8x1xi1> to vector<8x1xi1>
    %295 = vector.broadcast %294 : vector<8x1xi1> to vector<8x32xi1>
    %296 = vector.shape_cast %293 : vector<1x32xf32> to vector<1x32xf32>
    %297 = vector.broadcast %296 : vector<1x32xf32> to vector<8x32xf32>
    %298 = vector.broadcast %cst_56 : f32 to vector<8x32xf32>
    %299 = arith.select %295, %297, %298 : vector<8x32xi1>, vector<8x32xf32>
    %300 = arith.addf %258, %299 : vector<8x32xf32>
    %c3_i32_57 = arith.constant 3 : i32
    %301 = vector.broadcast %c3_i32_57 : i32 to vector<8x1xi32>
    %302 = arith.cmpi eq, %41, %301 : vector<8x1xi32>
    %303 = arith.andi %302, %43 : vector<8x1xi1>
    %304 = vector.extract_strided_slice %289 {offsets = [0, 32], sizes = [1, 32], strides = [1, 1]} : vector<1x64xf32> to vector<1x32xf32>
    %cst_58 = arith.constant 0.000000e+00 : f32
    %305 = vector.shape_cast %303 : vector<8x1xi1> to vector<8x1xi1>
    %306 = vector.broadcast %305 : vector<8x1xi1> to vector<8x32xi1>
    %307 = vector.shape_cast %304 : vector<1x32xf32> to vector<1x32xf32>
    %308 = vector.broadcast %307 : vector<1x32xf32> to vector<8x32xf32>
    %309 = vector.broadcast %cst_58 : f32 to vector<8x32xf32>
    %310 = arith.select %306, %308, %309 : vector<8x32xi1>, vector<8x32xf32>
    %311 = arith.addf %300, %310 : vector<8x32xf32>
    %312 = vector.extract_strided_slice %38 {offsets = [5, 0], sizes = [1, 256], strides = [1, 1]} : vector<8x256xf32> to vector<1x256xf32>
    %cst_59 = arith.constant dense<0.000000e+00> : vector<1x256xf32>
    %313 = tpu.matmul %289, %39, %cst_59 {dimension_numbers = #tpu.dot_dimension_numbers<[1], [0], [0], [1], [0, 0, 1, 1], [], []>} : vector<1x64xf32>, vector<64x256xf32>, vector<1x256xf32> -> vector<1x256xf32>
    %314 = arith.addf %313, %40 : vector<1x256xf32>
    %315 = vector.extract_strided_slice %312 {offsets = [0, 0], sizes = [1, 128], strides = [1, 1]} : vector<1x256xf32> to vector<1x128xf32>
    %316 = vector.extract_strided_slice %314 {offsets = [0, 0], sizes = [1, 128], strides = [1, 1]} : vector<1x256xf32> to vector<1x128xf32>
    %317 = arith.addf %315, %316 : vector<1x128xf32>
    %318 = arith.negf %317 : vector<1x128xf32>
    %319 = math.exp %318 : vector<1x128xf32>
    %cst_60 = arith.constant 1.000000e+00 : f32
    %320 = vector.broadcast %cst_60 : f32 to vector<1x128xf32>
    %321 = arith.addf %320, %319 : vector<1x128xf32>
    %322 = arith.divf %320, %321 : vector<1x128xf32>
    %323 = vector.extract_strided_slice %322 {offsets = [0, 0], sizes = [1, 64], strides = [1, 1]} : vector<1x128xf32> to vector<1x64xf32>
    %324 = vector.extract_strided_slice %322 {offsets = [0, 64], sizes = [1, 64], strides = [1, 1]} : vector<1x128xf32> to vector<1x64xf32>
    %325 = vector.extract_strided_slice %312 {offsets = [0, 128], sizes = [1, 64], strides = [1, 1]} : vector<1x256xf32> to vector<1x64xf32>
    %326 = vector.extract_strided_slice %314 {offsets = [0, 128], sizes = [1, 64], strides = [1, 1]} : vector<1x256xf32> to vector<1x64xf32>
    %327 = arith.mulf %323, %326 : vector<1x64xf32>
    %328 = arith.addf %325, %327 : vector<1x64xf32>
    %329 = math.tanh %328 : vector<1x64xf32>
    %cst_61 = arith.constant 1.000000e+00 : f32
    %330 = vector.broadcast %cst_61 : f32 to vector<1x64xf32>
    %331 = arith.subf %330, %324 : vector<1x64xf32>
    %332 = arith.mulf %331, %329 : vector<1x64xf32>
    %333 = arith.mulf %324, %289 : vector<1x64xf32>
    %334 = arith.addf %332, %333 : vector<1x64xf32>
    %c32_i32_62 = arith.constant 32 : i32
    %335 = vector.broadcast %c32_i32_62 : i32 to vector<1x64xi32>
    %336 = arith.cmpi slt, %44, %335 : vector<1x64xi32>
    %c5_i32_63 = arith.constant 5 : i32
    %c2_i32_64 = arith.constant 2 : i32
    %337 = vector.broadcast %c5_i32_63 : i32 to vector<1x64xi32>
    %338 = vector.broadcast %c2_i32_64 : i32 to vector<1x64xi32>
    %339 = arith.select %336, %337, %338 : vector<1x64xi1>, vector<1x64xi32>
    %340 = vector.broadcast %0 : i32 to vector<1x64xi32>
    %341 = arith.cmpi slt, %339, %340 : vector<1x64xi32>
    %342 = arith.select %341, %334, %289 : vector<1x64xi1>, vector<1x64xf32>
    %c5_i32_65 = arith.constant 5 : i32
    %343 = vector.broadcast %c5_i32_65 : i32 to vector<8x1xi32>
    %344 = arith.cmpi eq, %41, %343 : vector<8x1xi32>
    %345 = arith.andi %344, %43 : vector<8x1xi1>
    %346 = vector.extract_strided_slice %342 {offsets = [0, 0], sizes = [1, 32], strides = [1, 1]} : vector<1x64xf32> to vector<1x32xf32>
    %cst_66 = arith.constant 0.000000e+00 : f32
    %347 = vector.shape_cast %345 : vector<8x1xi1> to vector<8x1xi1>
    %348 = vector.broadcast %347 : vector<8x1xi1> to vector<8x32xi1>
    %349 = vector.shape_cast %346 : vector<1x32xf32> to vector<1x32xf32>
    %350 = vector.broadcast %349 : vector<1x32xf32> to vector<8x32xf32>
    %351 = vector.broadcast %cst_66 : f32 to vector<8x32xf32>
    %352 = arith.select %348, %350, %351 : vector<8x32xi1>, vector<8x32xf32>
    %353 = arith.addf %311, %352 : vector<8x32xf32>
    %c2_i32_67 = arith.constant 2 : i32
    %354 = vector.broadcast %c2_i32_67 : i32 to vector<8x1xi32>
    %355 = arith.cmpi eq, %41, %354 : vector<8x1xi32>
    %356 = arith.andi %355, %43 : vector<8x1xi1>
    %357 = vector.extract_strided_slice %342 {offsets = [0, 32], sizes = [1, 32], strides = [1, 1]} : vector<1x64xf32> to vector<1x32xf32>
    %cst_68 = arith.constant 0.000000e+00 : f32
    %358 = vector.shape_cast %356 : vector<8x1xi1> to vector<8x1xi1>
    %359 = vector.broadcast %358 : vector<8x1xi1> to vector<8x32xi1>
    %360 = vector.shape_cast %357 : vector<1x32xf32> to vector<1x32xf32>
    %361 = vector.broadcast %360 : vector<1x32xf32> to vector<8x32xf32>
    %362 = vector.broadcast %cst_68 : f32 to vector<8x32xf32>
    %363 = arith.select %359, %361, %362 : vector<8x32xi1>, vector<8x32xf32>
    %364 = arith.addf %353, %363 : vector<8x32xf32>
    %365 = vector.extract_strided_slice %38 {offsets = [6, 0], sizes = [1, 256], strides = [1, 1]} : vector<8x256xf32> to vector<1x256xf32>
    %cst_69 = arith.constant dense<0.000000e+00> : vector<1x256xf32>
    %366 = tpu.matmul %342, %39, %cst_69 {dimension_numbers = #tpu.dot_dimension_numbers<[1], [0], [0], [1], [0, 0, 1, 1], [], []>} : vector<1x64xf32>, vector<64x256xf32>, vector<1x256xf32> -> vector<1x256xf32>
    %367 = arith.addf %366, %40 : vector<1x256xf32>
    %368 = vector.extract_strided_slice %365 {offsets = [0, 0], sizes = [1, 128], strides = [1, 1]} : vector<1x256xf32> to vector<1x128xf32>
    %369 = vector.extract_strided_slice %367 {offsets = [0, 0], sizes = [1, 128], strides = [1, 1]} : vector<1x256xf32> to vector<1x128xf32>
    %370 = arith.addf %368, %369 : vector<1x128xf32>
    %371 = arith.negf %370 : vector<1x128xf32>
    %372 = math.exp %371 : vector<1x128xf32>
    %cst_70 = arith.constant 1.000000e+00 : f32
    %373 = vector.broadcast %cst_70 : f32 to vector<1x128xf32>
    %374 = arith.addf %373, %372 : vector<1x128xf32>
    %375 = arith.divf %373, %374 : vector<1x128xf32>
    %376 = vector.extract_strided_slice %375 {offsets = [0, 0], sizes = [1, 64], strides = [1, 1]} : vector<1x128xf32> to vector<1x64xf32>
    %377 = vector.extract_strided_slice %375 {offsets = [0, 64], sizes = [1, 64], strides = [1, 1]} : vector<1x128xf32> to vector<1x64xf32>
    %378 = vector.extract_strided_slice %365 {offsets = [0, 128], sizes = [1, 64], strides = [1, 1]} : vector<1x256xf32> to vector<1x64xf32>
    %379 = vector.extract_strided_slice %367 {offsets = [0, 128], sizes = [1, 64], strides = [1, 1]} : vector<1x256xf32> to vector<1x64xf32>
    %380 = arith.mulf %376, %379 : vector<1x64xf32>
    %381 = arith.addf %378, %380 : vector<1x64xf32>
    %382 = math.tanh %381 : vector<1x64xf32>
    %cst_71 = arith.constant 1.000000e+00 : f32
    %383 = vector.broadcast %cst_71 : f32 to vector<1x64xf32>
    %384 = arith.subf %383, %377 : vector<1x64xf32>
    %385 = arith.mulf %384, %382 : vector<1x64xf32>
    %386 = arith.mulf %377, %342 : vector<1x64xf32>
    %387 = arith.addf %385, %386 : vector<1x64xf32>
    %c32_i32_72 = arith.constant 32 : i32
    %388 = vector.broadcast %c32_i32_72 : i32 to vector<1x64xi32>
    %389 = arith.cmpi slt, %44, %388 : vector<1x64xi32>
    %c6_i32_73 = arith.constant 6 : i32
    %c1_i32_74 = arith.constant 1 : i32
    %390 = vector.broadcast %c6_i32_73 : i32 to vector<1x64xi32>
    %391 = vector.broadcast %c1_i32_74 : i32 to vector<1x64xi32>
    %392 = arith.select %389, %390, %391 : vector<1x64xi1>, vector<1x64xi32>
    %393 = vector.broadcast %0 : i32 to vector<1x64xi32>
    %394 = arith.cmpi slt, %392, %393 : vector<1x64xi32>
    %395 = arith.select %394, %387, %342 : vector<1x64xi1>, vector<1x64xf32>
    %c6_i32_75 = arith.constant 6 : i32
    %396 = vector.broadcast %c6_i32_75 : i32 to vector<8x1xi32>
    %397 = arith.cmpi eq, %41, %396 : vector<8x1xi32>
    %398 = arith.andi %397, %43 : vector<8x1xi1>
    %399 = vector.extract_strided_slice %395 {offsets = [0, 0], sizes = [1, 32], strides = [1, 1]} : vector<1x64xf32> to vector<1x32xf32>
    %cst_76 = arith.constant 0.000000e+00 : f32
    %400 = vector.shape_cast %398 : vector<8x1xi1> to vector<8x1xi1>
    %401 = vector.broadcast %400 : vector<8x1xi1> to vector<8x32xi1>
    %402 = vector.shape_cast %399 : vector<1x32xf32> to vector<1x32xf32>
    %403 = vector.broadcast %402 : vector<1x32xf32> to vector<8x32xf32>
    %404 = vector.broadcast %cst_76 : f32 to vector<8x32xf32>
    %405 = arith.select %401, %403, %404 : vector<8x32xi1>, vector<8x32xf32>
    %406 = arith.addf %364, %405 : vector<8x32xf32>
    %c1_i32_77 = arith.constant 1 : i32
    %407 = vector.broadcast %c1_i32_77 : i32 to vector<8x1xi32>
    %408 = arith.cmpi eq, %41, %407 : vector<8x1xi32>
    %409 = arith.andi %408, %43 : vector<8x1xi1>
    %410 = vector.extract_strided_slice %395 {offsets = [0, 32], sizes = [1, 32], strides = [1, 1]} : vector<1x64xf32> to vector<1x32xf32>
    %cst_78 = arith.constant 0.000000e+00 : f32
    %411 = vector.shape_cast %409 : vector<8x1xi1> to vector<8x1xi1>
    %412 = vector.broadcast %411 : vector<8x1xi1> to vector<8x32xi1>
    %413 = vector.shape_cast %410 : vector<1x32xf32> to vector<1x32xf32>
    %414 = vector.broadcast %413 : vector<1x32xf32> to vector<8x32xf32>
    %415 = vector.broadcast %cst_78 : f32 to vector<8x32xf32>
    %416 = arith.select %412, %414, %415 : vector<8x32xi1>, vector<8x32xf32>
    %417 = arith.addf %406, %416 : vector<8x32xf32>
    %418 = vector.extract_strided_slice %38 {offsets = [7, 0], sizes = [1, 256], strides = [1, 1]} : vector<8x256xf32> to vector<1x256xf32>
    %cst_79 = arith.constant dense<0.000000e+00> : vector<1x256xf32>
    %419 = tpu.matmul %395, %39, %cst_79 {dimension_numbers = #tpu.dot_dimension_numbers<[1], [0], [0], [1], [0, 0, 1, 1], [], []>} : vector<1x64xf32>, vector<64x256xf32>, vector<1x256xf32> -> vector<1x256xf32>
    %420 = arith.addf %419, %40 : vector<1x256xf32>
    %421 = vector.extract_strided_slice %418 {offsets = [0, 0], sizes = [1, 128], strides = [1, 1]} : vector<1x256xf32> to vector<1x128xf32>
    %422 = vector.extract_strided_slice %420 {offsets = [0, 0], sizes = [1, 128], strides = [1, 1]} : vector<1x256xf32> to vector<1x128xf32>
    %423 = arith.addf %421, %422 : vector<1x128xf32>
    %424 = arith.negf %423 : vector<1x128xf32>
    %425 = math.exp %424 : vector<1x128xf32>
    %cst_80 = arith.constant 1.000000e+00 : f32
    %426 = vector.broadcast %cst_80 : f32 to vector<1x128xf32>
    %427 = arith.addf %426, %425 : vector<1x128xf32>
    %428 = arith.divf %426, %427 : vector<1x128xf32>
    %429 = vector.extract_strided_slice %428 {offsets = [0, 0], sizes = [1, 64], strides = [1, 1]} : vector<1x128xf32> to vector<1x64xf32>
    %430 = vector.extract_strided_slice %428 {offsets = [0, 64], sizes = [1, 64], strides = [1, 1]} : vector<1x128xf32> to vector<1x64xf32>
    %431 = vector.extract_strided_slice %418 {offsets = [0, 128], sizes = [1, 64], strides = [1, 1]} : vector<1x256xf32> to vector<1x64xf32>
    %432 = vector.extract_strided_slice %420 {offsets = [0, 128], sizes = [1, 64], strides = [1, 1]} : vector<1x256xf32> to vector<1x64xf32>
    %433 = arith.mulf %429, %432 : vector<1x64xf32>
    %434 = arith.addf %431, %433 : vector<1x64xf32>
    %435 = math.tanh %434 : vector<1x64xf32>
    %cst_81 = arith.constant 1.000000e+00 : f32
    %436 = vector.broadcast %cst_81 : f32 to vector<1x64xf32>
    %437 = arith.subf %436, %430 : vector<1x64xf32>
    %438 = arith.mulf %437, %435 : vector<1x64xf32>
    %439 = arith.mulf %430, %395 : vector<1x64xf32>
    %440 = arith.addf %438, %439 : vector<1x64xf32>
    %c32_i32_82 = arith.constant 32 : i32
    %441 = vector.broadcast %c32_i32_82 : i32 to vector<1x64xi32>
    %442 = arith.cmpi slt, %44, %441 : vector<1x64xi32>
    %c7_i32_83 = arith.constant 7 : i32
    %c0_i32_84 = arith.constant 0 : i32
    %443 = vector.broadcast %c7_i32_83 : i32 to vector<1x64xi32>
    %444 = vector.broadcast %c0_i32_84 : i32 to vector<1x64xi32>
    %445 = arith.select %442, %443, %444 : vector<1x64xi1>, vector<1x64xi32>
    %446 = vector.broadcast %0 : i32 to vector<1x64xi32>
    %447 = arith.cmpi slt, %445, %446 : vector<1x64xi32>
    %448 = arith.select %447, %440, %395 : vector<1x64xi1>, vector<1x64xf32>
    %c7_i32_85 = arith.constant 7 : i32
    %449 = vector.broadcast %c7_i32_85 : i32 to vector<8x1xi32>
    %450 = arith.cmpi eq, %41, %449 : vector<8x1xi32>
    %451 = arith.andi %450, %43 : vector<8x1xi1>
    %452 = vector.extract_strided_slice %448 {offsets = [0, 0], sizes = [1, 32], strides = [1, 1]} : vector<1x64xf32> to vector<1x32xf32>
    %cst_86 = arith.constant 0.000000e+00 : f32
    %453 = vector.shape_cast %451 : vector<8x1xi1> to vector<8x1xi1>
    %454 = vector.broadcast %453 : vector<8x1xi1> to vector<8x32xi1>
    %455 = vector.shape_cast %452 : vector<1x32xf32> to vector<1x32xf32>
    %456 = vector.broadcast %455 : vector<1x32xf32> to vector<8x32xf32>
    %457 = vector.broadcast %cst_86 : f32 to vector<8x32xf32>
    %458 = arith.select %454, %456, %457 : vector<8x32xi1>, vector<8x32xf32>
    %459 = arith.addf %417, %458 : vector<8x32xf32>
    %c0_i32_87 = arith.constant 0 : i32
    %460 = vector.broadcast %c0_i32_87 : i32 to vector<8x1xi32>
    %461 = arith.cmpi eq, %41, %460 : vector<8x1xi32>
    %462 = arith.andi %461, %43 : vector<8x1xi1>
    %463 = vector.extract_strided_slice %448 {offsets = [0, 32], sizes = [1, 32], strides = [1, 1]} : vector<1x64xf32> to vector<1x32xf32>
    %cst_88 = arith.constant 0.000000e+00 : f32
    %464 = vector.shape_cast %462 : vector<8x1xi1> to vector<8x1xi1>
    %465 = vector.broadcast %464 : vector<8x1xi1> to vector<8x32xi1>
    %466 = vector.shape_cast %463 : vector<1x32xf32> to vector<1x32xf32>
    %467 = vector.broadcast %466 : vector<1x32xf32> to vector<8x32xf32>
    %468 = vector.broadcast %cst_88 : f32 to vector<8x32xf32>
    %469 = arith.select %465, %467, %468 : vector<8x32xi1>, vector<8x32xf32>
    %470 = arith.addf %459, %469 : vector<8x32xf32>
    %cst_89 = arith.constant 0.000000e+00 : f32
    %471 = vector.broadcast %cst_89 : f32 to vector<8x96xf32>
    %472 = tpu.concatenate %470, %471 in 1 : vector<8x32xf32>, vector<8x96xf32> -> vector<8x128xf32>
    %473 = tpu.transpose %472, [1, 0] : vector<8x128xf32> -> vector<128x8xf32>
    %474 = vector.extract_strided_slice %473 {offsets = [0, 0], sizes = [32, 8], strides = [1, 1]} : vector<128x8xf32> to vector<32x8xf32>
    %475 = tpu.iota {dimensions = array<i32: 1>} : vector<1x8xi32>
    %476 = vector.broadcast %0 : i32 to vector<1x8xi32>
    %477 = arith.cmpi slt, %475, %476 : vector<1x8xi32>
    %cst_90 = arith.constant 0.000000e+00 : f32
    %cst_91 = arith.constant -1.000000e+30 : f32
    %478 = vector.broadcast %cst_90 : f32 to vector<1x8xf32>
    %479 = vector.broadcast %cst_91 : f32 to vector<1x8xf32>
    %480 = arith.select %477, %478, %479 : vector<1x8xi1>, vector<1x8xf32>
    %c0_92 = arith.constant 0 : index
    %c0_93 = arith.constant 0 : index
    %481 = vector.load %arg6[%c0_92, %c0_93] : memref<33x128xf32, #tpu.memory_space<vmem>>, vector<32x128xf32>
    %c32 = arith.constant 32 : index
    %c0_94 = arith.constant 0 : index
    %482 = vector.load %arg6[%c32, %c0_94] : memref<33x128xf32, #tpu.memory_space<vmem>>, vector<1x128xf32>
    %c0_95 = arith.constant 0 : index
    %c0_96 = arith.constant 0 : index
    %483 = vector.load %arg7[%c0_95, %c0_96] : memref<65x32xf32, #tpu.memory_space<vmem>>, vector<64x32xf32>
    %c64_97 = arith.constant 64 : index
    %c0_98 = arith.constant 0 : index
    %484 = vector.load %arg7[%c64_97, %c0_98] : memref<65x32xf32, #tpu.memory_space<vmem>>, vector<1x32xf32>
    %c0_99 = arith.constant 0 : index
    %c0_100 = arith.constant 0 : index
    %485 = vector.load %arg8[%c0_99, %c0_100] : memref<33x32xf32, #tpu.memory_space<vmem>>, vector<32x32xf32>
    %c32_101 = arith.constant 32 : index
    %c0_102 = arith.constant 0 : index
    %486 = vector.load %arg8[%c32_101, %c0_102] : memref<33x32xf32, #tpu.memory_space<vmem>>, vector<1x32xf32>
    %c0_103 = arith.constant 0 : index
    %c0_104 = arith.constant 0 : index
    %487 = vector.load %arg2[%c0_103, %c0_104] : memref<32x32xf32, #tpu.memory_space<vmem>>, vector<32x32xf32>
    %c0_105 = arith.constant 0 : index
    %c0_106 = arith.constant 0 : index
    %488 = vector.load %arg5[%c0_105, %c0_106] : memref<33x128xf32, #tpu.memory_space<vmem>>, vector<32x128xf32>
    %cst_107 = arith.constant dense<0.000000e+00> : vector<32x128xf32>
    %489 = tpu.matmul %487, %488, %cst_107 {dimension_numbers = #tpu.dot_dimension_numbers<[1], [0], [0], [1], [0, 0, 1, 1], [], []>} : vector<32x32xf32>, vector<32x128xf32>, vector<32x128xf32> -> vector<32x128xf32>
    %c32_108 = arith.constant 32 : index
    %c0_109 = arith.constant 0 : index
    %490 = vector.load %arg5[%c32_108, %c0_109] : memref<33x128xf32, #tpu.memory_space<vmem>>, vector<1x128xf32>
    %491 = vector.broadcast %490 : vector<1x128xf32> to vector<32x128xf32>
    %492 = arith.addf %489, %491 : vector<32x128xf32>
    %493 = tpu.iota {dimensions = array<i32: 1>} : vector<1x32xi32>
    %494 = tpu.iota {dimensions = array<i32: 1>} : vector<1x8xi32>
    %495 = vector.extract_strided_slice %448 {offsets = [0, 0], sizes = [1, 32], strides = [1, 1]} : vector<1x64xf32> to vector<1x32xf32>
    %496 = vector.extract_strided_slice %492 {offsets = [1, 0], sizes = [1, 128], strides = [1, 1]} : vector<32x128xf32> to vector<1x128xf32>
    %c0_i32_110 = arith.constant 0 : i32
    %497 = vector.broadcast %c0_i32_110 : i32 to vector<1x8xi32>
    %cst_111 = arith.constant 0.000000e+00 : f32
    %498 = vector.broadcast %cst_111 : f32 to vector<1x8xf32>
    %cst_112 = arith.constant dense<0.000000e+00> : vector<1x128xf32>
    %499 = tpu.matmul %495, %481, %cst_112 {dimension_numbers = #tpu.dot_dimension_numbers<[1], [0], [0], [1], [0, 0, 1, 1], [], []>} : vector<1x32xf32>, vector<32x128xf32>, vector<1x128xf32> -> vector<1x128xf32>
    %500 = arith.addf %499, %482 : vector<1x128xf32>
    %501 = vector.extract_strided_slice %496 {offsets = [0, 0], sizes = [1, 64], strides = [1, 1]} : vector<1x128xf32> to vector<1x64xf32>
    %502 = vector.extract_strided_slice %500 {offsets = [0, 0], sizes = [1, 64], strides = [1, 1]} : vector<1x128xf32> to vector<1x64xf32>
    %503 = arith.addf %501, %502 : vector<1x64xf32>
    %504 = arith.negf %503 : vector<1x64xf32>
    %505 = math.exp %504 : vector<1x64xf32>
    %cst_113 = arith.constant 1.000000e+00 : f32
    %506 = vector.broadcast %cst_113 : f32 to vector<1x64xf32>
    %507 = arith.addf %506, %505 : vector<1x64xf32>
    %508 = arith.divf %506, %507 : vector<1x64xf32>
    %509 = vector.extract_strided_slice %508 {offsets = [0, 0], sizes = [1, 32], strides = [1, 1]} : vector<1x64xf32> to vector<1x32xf32>
    %510 = vector.extract_strided_slice %508 {offsets = [0, 32], sizes = [1, 32], strides = [1, 1]} : vector<1x64xf32> to vector<1x32xf32>
    %511 = vector.extract_strided_slice %496 {offsets = [0, 64], sizes = [1, 32], strides = [1, 1]} : vector<1x128xf32> to vector<1x32xf32>
    %512 = vector.extract_strided_slice %500 {offsets = [0, 64], sizes = [1, 32], strides = [1, 1]} : vector<1x128xf32> to vector<1x32xf32>
    %513 = arith.mulf %509, %512 : vector<1x32xf32>
    %514 = arith.addf %511, %513 : vector<1x32xf32>
    %515 = math.tanh %514 : vector<1x32xf32>
    %cst_114 = arith.constant 1.000000e+00 : f32
    %516 = vector.broadcast %cst_114 : f32 to vector<1x32xf32>
    %517 = arith.subf %516, %510 : vector<1x32xf32>
    %518 = arith.mulf %517, %515 : vector<1x32xf32>
    %519 = arith.mulf %510, %495 : vector<1x32xf32>
    %520 = arith.addf %518, %519 : vector<1x32xf32>
    %cst_115 = arith.constant dense<0.000000e+00> : vector<1x8xf32>
    %521 = tpu.matmul %520, %474, %cst_115 {dimension_numbers = #tpu.dot_dimension_numbers<[1], [0], [0], [1], [0, 0, 1, 1], [], []>} : vector<1x32xf32>, vector<32x8xf32>, vector<1x8xf32> -> vector<1x8xf32>
    %522 = arith.addf %521, %480 : vector<1x8xf32>
    %cst_116 = arith.constant dense<0xFF800000> : vector<1xf32>
    %523 = vector.multi_reduction <maximumf>, %522, %cst_116 [1] : vector<1x8xf32> to vector<1xf32>
    %524 = vector.shape_cast %523 : vector<1xf32> to vector<1x1xf32>
    %525 = vector.broadcast %524 : vector<1x1xf32> to vector<1x8xf32>
    %526 = arith.subf %522, %525 : vector<1x8xf32>
    %527 = math.exp %526 : vector<1x8xf32>
    %cst_117 = arith.constant dense<0.000000e+00> : vector<1xf32>
    %528 = vector.multi_reduction <add>, %527, %cst_117 [1] : vector<1x8xf32> to vector<1xf32>
    %529 = vector.shape_cast %528 : vector<1xf32> to vector<1x1xf32>
    %530 = vector.broadcast %529 : vector<1x1xf32> to vector<1x8xf32>
    %531 = arith.divf %527, %530 : vector<1x8xf32>
    %cst_118 = arith.constant dense<0.000000e+00> : vector<1x32xf32>
    %532 = tpu.matmul %531, %470, %cst_118 {dimension_numbers = #tpu.dot_dimension_numbers<[1], [0], [0], [1], [0, 0, 1, 1], [], []>} : vector<1x8xf32>, vector<8x32xf32>, vector<1x32xf32> -> vector<1x32xf32>
    %533 = tpu.concatenate %520, %532 in 1 : vector<1x32xf32>, vector<1x32xf32> -> vector<1x64xf32>
    %cst_119 = arith.constant dense<0.000000e+00> : vector<1x32xf32>
    %534 = tpu.matmul %533, %483, %cst_119 {dimension_numbers = #tpu.dot_dimension_numbers<[1], [0], [0], [1], [0, 0, 1, 1], [], []>} : vector<1x64xf32>, vector<64x32xf32>, vector<1x32xf32> -> vector<1x32xf32>
    %535 = arith.addf %534, %484 : vector<1x32xf32>
    %536 = math.tanh %535 : vector<1x32xf32>
    %cst_120 = arith.constant dense<0.000000e+00> : vector<1x32xf32>
    %537 = tpu.matmul %536, %485, %cst_120 {dimension_numbers = #tpu.dot_dimension_numbers<[1], [0], [0], [1], [0, 0, 1, 1], [], []>} : vector<1x32xf32>, vector<32x32xf32>, vector<1x32xf32> -> vector<1x32xf32>
    %538 = arith.addf %537, %486 : vector<1x32xf32>
    %cst_121 = arith.constant dense<0xFF800000> : vector<1xf32>
    %539 = vector.multi_reduction <maximumf>, %538, %cst_121 [1] : vector<1x32xf32> to vector<1xf32>
    %540 = vector.shape_cast %539 : vector<1xf32> to vector<1x1xf32>
    %541 = vector.broadcast %540 : vector<1x1xf32> to vector<1x32xf32>
    %542 = arith.subf %538, %541 : vector<1x32xf32>
    %543 = math.exp %542 : vector<1x32xf32>
    %cst_122 = arith.constant dense<0.000000e+00> : vector<1xf32>
    %544 = vector.multi_reduction <add>, %543, %cst_122 [1] : vector<1x32xf32> to vector<1xf32>
    %545 = vector.shape_cast %544 : vector<1xf32> to vector<1x1xf32>
    %546 = tpu.reciprocal %545 {approx = true} : vector<1x1xf32> -> vector<1x1xf32>
    %547 = vector.broadcast %540 : vector<1x1xf32> to vector<1x32xf32>
    %548 = arith.cmpf oeq, %538, %547 : vector<1x32xf32>
    %c32_i32_123 = arith.constant 32 : i32
    %549 = vector.broadcast %c32_i32_123 : i32 to vector<1x32xi32>
    %550 = arith.select %548, %493, %549 : vector<1x32xi1>, vector<1x32xi32>
    %cst_124 = arith.constant dense<2147483647> : vector<1xi32>
    %551 = vector.multi_reduction <minsi>, %550, %cst_124 [1] : vector<1x32xi32> to vector<1xi32>
    %552 = vector.shape_cast %551 : vector<1xi32> to vector<1x1xi32>
    %c0_i32_125 = arith.constant 0 : i32
    %553 = vector.broadcast %c0_i32_125 : i32 to vector<1x8xi32>
    %554 = arith.cmpi eq, %494, %553 : vector<1x8xi32>
    %555 = vector.shape_cast %552 : vector<1x1xi32> to vector<1x1xi32>
    %556 = vector.broadcast %555 : vector<1x1xi32> to vector<1x8xi32>
    %557 = arith.select %554, %556, %497 : vector<1x8xi1>, vector<1x8xi32>
    %c0_i32_126 = arith.constant 0 : i32
    %558 = vector.broadcast %c0_i32_126 : i32 to vector<1x8xi32>
    %559 = arith.cmpi eq, %494, %558 : vector<1x8xi32>
    %560 = vector.shape_cast %546 : vector<1x1xf32> to vector<1x1xf32>
    %561 = vector.broadcast %560 : vector<1x1xf32> to vector<1x8xf32>
    %562 = arith.select %559, %561, %498 : vector<1x8xi1>, vector<1x8xf32>
    %563 = vector.broadcast %552 : vector<1x1xi32> to vector<1x32xi32>
    %564 = arith.cmpi eq, %493, %563 : vector<1x32xi32>
    %565 = arith.extui %564 : vector<1x32xi1> to vector<1x32xi32>
    %566 = arith.sitofp %565 : vector<1x32xi32> to vector<1x32xf32>
    %cst_127 = arith.constant dense<0.000000e+00> : vector<1x128xf32>
    %567 = tpu.matmul %566, %492, %cst_127 {dimension_numbers = #tpu.dot_dimension_numbers<[1], [0], [0], [1], [0, 0, 1, 1], [], []>} : vector<1x32xf32>, vector<32x128xf32>, vector<1x128xf32> -> vector<1x128xf32>
    %cst_128 = arith.constant dense<0.000000e+00> : vector<1x128xf32>
    %568 = tpu.matmul %520, %481, %cst_128 {dimension_numbers = #tpu.dot_dimension_numbers<[1], [0], [0], [1], [0, 0, 1, 1], [], []>} : vector<1x32xf32>, vector<32x128xf32>, vector<1x128xf32> -> vector<1x128xf32>
    %569 = arith.addf %568, %482 : vector<1x128xf32>
    %570 = vector.extract_strided_slice %567 {offsets = [0, 0], sizes = [1, 64], strides = [1, 1]} : vector<1x128xf32> to vector<1x64xf32>
    %571 = vector.extract_strided_slice %569 {offsets = [0, 0], sizes = [1, 64], strides = [1, 1]} : vector<1x128xf32> to vector<1x64xf32>
    %572 = arith.addf %570, %571 : vector<1x64xf32>
    %573 = arith.negf %572 : vector<1x64xf32>
    %574 = math.exp %573 : vector<1x64xf32>
    %cst_129 = arith.constant 1.000000e+00 : f32
    %575 = vector.broadcast %cst_129 : f32 to vector<1x64xf32>
    %576 = arith.addf %575, %574 : vector<1x64xf32>
    %577 = arith.divf %575, %576 : vector<1x64xf32>
    %578 = vector.extract_strided_slice %577 {offsets = [0, 0], sizes = [1, 32], strides = [1, 1]} : vector<1x64xf32> to vector<1x32xf32>
    %579 = vector.extract_strided_slice %577 {offsets = [0, 32], sizes = [1, 32], strides = [1, 1]} : vector<1x64xf32> to vector<1x32xf32>
    %580 = vector.extract_strided_slice %567 {offsets = [0, 64], sizes = [1, 32], strides = [1, 1]} : vector<1x128xf32> to vector<1x32xf32>
    %581 = vector.extract_strided_slice %569 {offsets = [0, 64], sizes = [1, 32], strides = [1, 1]} : vector<1x128xf32> to vector<1x32xf32>
    %582 = arith.mulf %578, %581 : vector<1x32xf32>
    %583 = arith.addf %580, %582 : vector<1x32xf32>
    %584 = math.tanh %583 : vector<1x32xf32>
    %cst_130 = arith.constant 1.000000e+00 : f32
    %585 = vector.broadcast %cst_130 : f32 to vector<1x32xf32>
    %586 = arith.subf %585, %579 : vector<1x32xf32>
    %587 = arith.mulf %586, %584 : vector<1x32xf32>
    %588 = arith.mulf %579, %520 : vector<1x32xf32>
    %589 = arith.addf %587, %588 : vector<1x32xf32>
    %cst_131 = arith.constant dense<0.000000e+00> : vector<1x8xf32>
    %590 = tpu.matmul %589, %474, %cst_131 {dimension_numbers = #tpu.dot_dimension_numbers<[1], [0], [0], [1], [0, 0, 1, 1], [], []>} : vector<1x32xf32>, vector<32x8xf32>, vector<1x8xf32> -> vector<1x8xf32>
    %591 = arith.addf %590, %480 : vector<1x8xf32>
    %cst_132 = arith.constant dense<0xFF800000> : vector<1xf32>
    %592 = vector.multi_reduction <maximumf>, %591, %cst_132 [1] : vector<1x8xf32> to vector<1xf32>
    %593 = vector.shape_cast %592 : vector<1xf32> to vector<1x1xf32>
    %594 = vector.broadcast %593 : vector<1x1xf32> to vector<1x8xf32>
    %595 = arith.subf %591, %594 : vector<1x8xf32>
    %596 = math.exp %595 : vector<1x8xf32>
    %cst_133 = arith.constant dense<0.000000e+00> : vector<1xf32>
    %597 = vector.multi_reduction <add>, %596, %cst_133 [1] : vector<1x8xf32> to vector<1xf32>
    %598 = vector.shape_cast %597 : vector<1xf32> to vector<1x1xf32>
    %599 = vector.broadcast %598 : vector<1x1xf32> to vector<1x8xf32>
    %600 = arith.divf %596, %599 : vector<1x8xf32>
    %cst_134 = arith.constant dense<0.000000e+00> : vector<1x32xf32>
    %601 = tpu.matmul %600, %470, %cst_134 {dimension_numbers = #tpu.dot_dimension_numbers<[1], [0], [0], [1], [0, 0, 1, 1], [], []>} : vector<1x8xf32>, vector<8x32xf32>, vector<1x32xf32> -> vector<1x32xf32>
    %602 = tpu.concatenate %589, %601 in 1 : vector<1x32xf32>, vector<1x32xf32> -> vector<1x64xf32>
    %cst_135 = arith.constant dense<0.000000e+00> : vector<1x32xf32>
    %603 = tpu.matmul %602, %483, %cst_135 {dimension_numbers = #tpu.dot_dimension_numbers<[1], [0], [0], [1], [0, 0, 1, 1], [], []>} : vector<1x64xf32>, vector<64x32xf32>, vector<1x32xf32> -> vector<1x32xf32>
    %604 = arith.addf %603, %484 : vector<1x32xf32>
    %605 = math.tanh %604 : vector<1x32xf32>
    %cst_136 = arith.constant dense<0.000000e+00> : vector<1x32xf32>
    %606 = tpu.matmul %605, %485, %cst_136 {dimension_numbers = #tpu.dot_dimension_numbers<[1], [0], [0], [1], [0, 0, 1, 1], [], []>} : vector<1x32xf32>, vector<32x32xf32>, vector<1x32xf32> -> vector<1x32xf32>
    %607 = arith.addf %606, %486 : vector<1x32xf32>
    %cst_137 = arith.constant dense<0xFF800000> : vector<1xf32>
    %608 = vector.multi_reduction <maximumf>, %607, %cst_137 [1] : vector<1x32xf32> to vector<1xf32>
    %609 = vector.shape_cast %608 : vector<1xf32> to vector<1x1xf32>
    %610 = vector.broadcast %609 : vector<1x1xf32> to vector<1x32xf32>
    %611 = arith.subf %607, %610 : vector<1x32xf32>
    %612 = math.exp %611 : vector<1x32xf32>
    %cst_138 = arith.constant dense<0.000000e+00> : vector<1xf32>
    %613 = vector.multi_reduction <add>, %612, %cst_138 [1] : vector<1x32xf32> to vector<1xf32>
    %614 = vector.shape_cast %613 : vector<1xf32> to vector<1x1xf32>
    %615 = tpu.reciprocal %614 {approx = true} : vector<1x1xf32> -> vector<1x1xf32>
    %616 = vector.broadcast %609 : vector<1x1xf32> to vector<1x32xf32>
    %617 = arith.cmpf oeq, %607, %616 : vector<1x32xf32>
    %c32_i32_139 = arith.constant 32 : i32
    %618 = vector.broadcast %c32_i32_139 : i32 to vector<1x32xi32>
    %619 = arith.select %617, %493, %618 : vector<1x32xi1>, vector<1x32xi32>
    %cst_140 = arith.constant dense<2147483647> : vector<1xi32>
    %620 = vector.multi_reduction <minsi>, %619, %cst_140 [1] : vector<1x32xi32> to vector<1xi32>
    %621 = vector.shape_cast %620 : vector<1xi32> to vector<1x1xi32>
    %c1_i32_141 = arith.constant 1 : i32
    %622 = vector.broadcast %c1_i32_141 : i32 to vector<1x8xi32>
    %623 = arith.cmpi eq, %494, %622 : vector<1x8xi32>
    %624 = vector.shape_cast %621 : vector<1x1xi32> to vector<1x1xi32>
    %625 = vector.broadcast %624 : vector<1x1xi32> to vector<1x8xi32>
    %626 = arith.select %623, %625, %557 : vector<1x8xi1>, vector<1x8xi32>
    %c1_i32_142 = arith.constant 1 : i32
    %627 = vector.broadcast %c1_i32_142 : i32 to vector<1x8xi32>
    %628 = arith.cmpi eq, %494, %627 : vector<1x8xi32>
    %629 = vector.shape_cast %615 : vector<1x1xf32> to vector<1x1xf32>
    %630 = vector.broadcast %629 : vector<1x1xf32> to vector<1x8xf32>
    %631 = arith.select %628, %630, %562 : vector<1x8xi1>, vector<1x8xf32>
    %632 = vector.broadcast %621 : vector<1x1xi32> to vector<1x32xi32>
    %633 = arith.cmpi eq, %493, %632 : vector<1x32xi32>
    %634 = arith.extui %633 : vector<1x32xi1> to vector<1x32xi32>
    %635 = arith.sitofp %634 : vector<1x32xi32> to vector<1x32xf32>
    %cst_143 = arith.constant dense<0.000000e+00> : vector<1x128xf32>
    %636 = tpu.matmul %635, %492, %cst_143 {dimension_numbers = #tpu.dot_dimension_numbers<[1], [0], [0], [1], [0, 0, 1, 1], [], []>} : vector<1x32xf32>, vector<32x128xf32>, vector<1x128xf32> -> vector<1x128xf32>
    %cst_144 = arith.constant dense<0.000000e+00> : vector<1x128xf32>
    %637 = tpu.matmul %589, %481, %cst_144 {dimension_numbers = #tpu.dot_dimension_numbers<[1], [0], [0], [1], [0, 0, 1, 1], [], []>} : vector<1x32xf32>, vector<32x128xf32>, vector<1x128xf32> -> vector<1x128xf32>
    %638 = arith.addf %637, %482 : vector<1x128xf32>
    %639 = vector.extract_strided_slice %636 {offsets = [0, 0], sizes = [1, 64], strides = [1, 1]} : vector<1x128xf32> to vector<1x64xf32>
    %640 = vector.extract_strided_slice %638 {offsets = [0, 0], sizes = [1, 64], strides = [1, 1]} : vector<1x128xf32> to vector<1x64xf32>
    %641 = arith.addf %639, %640 : vector<1x64xf32>
    %642 = arith.negf %641 : vector<1x64xf32>
    %643 = math.exp %642 : vector<1x64xf32>
    %cst_145 = arith.constant 1.000000e+00 : f32
    %644 = vector.broadcast %cst_145 : f32 to vector<1x64xf32>
    %645 = arith.addf %644, %643 : vector<1x64xf32>
    %646 = arith.divf %644, %645 : vector<1x64xf32>
    %647 = vector.extract_strided_slice %646 {offsets = [0, 0], sizes = [1, 32], strides = [1, 1]} : vector<1x64xf32> to vector<1x32xf32>
    %648 = vector.extract_strided_slice %646 {offsets = [0, 32], sizes = [1, 32], strides = [1, 1]} : vector<1x64xf32> to vector<1x32xf32>
    %649 = vector.extract_strided_slice %636 {offsets = [0, 64], sizes = [1, 32], strides = [1, 1]} : vector<1x128xf32> to vector<1x32xf32>
    %650 = vector.extract_strided_slice %638 {offsets = [0, 64], sizes = [1, 32], strides = [1, 1]} : vector<1x128xf32> to vector<1x32xf32>
    %651 = arith.mulf %647, %650 : vector<1x32xf32>
    %652 = arith.addf %649, %651 : vector<1x32xf32>
    %653 = math.tanh %652 : vector<1x32xf32>
    %cst_146 = arith.constant 1.000000e+00 : f32
    %654 = vector.broadcast %cst_146 : f32 to vector<1x32xf32>
    %655 = arith.subf %654, %648 : vector<1x32xf32>
    %656 = arith.mulf %655, %653 : vector<1x32xf32>
    %657 = arith.mulf %648, %589 : vector<1x32xf32>
    %658 = arith.addf %656, %657 : vector<1x32xf32>
    %cst_147 = arith.constant dense<0.000000e+00> : vector<1x8xf32>
    %659 = tpu.matmul %658, %474, %cst_147 {dimension_numbers = #tpu.dot_dimension_numbers<[1], [0], [0], [1], [0, 0, 1, 1], [], []>} : vector<1x32xf32>, vector<32x8xf32>, vector<1x8xf32> -> vector<1x8xf32>
    %660 = arith.addf %659, %480 : vector<1x8xf32>
    %cst_148 = arith.constant dense<0xFF800000> : vector<1xf32>
    %661 = vector.multi_reduction <maximumf>, %660, %cst_148 [1] : vector<1x8xf32> to vector<1xf32>
    %662 = vector.shape_cast %661 : vector<1xf32> to vector<1x1xf32>
    %663 = vector.broadcast %662 : vector<1x1xf32> to vector<1x8xf32>
    %664 = arith.subf %660, %663 : vector<1x8xf32>
    %665 = math.exp %664 : vector<1x8xf32>
    %cst_149 = arith.constant dense<0.000000e+00> : vector<1xf32>
    %666 = vector.multi_reduction <add>, %665, %cst_149 [1] : vector<1x8xf32> to vector<1xf32>
    %667 = vector.shape_cast %666 : vector<1xf32> to vector<1x1xf32>
    %668 = vector.broadcast %667 : vector<1x1xf32> to vector<1x8xf32>
    %669 = arith.divf %665, %668 : vector<1x8xf32>
    %cst_150 = arith.constant dense<0.000000e+00> : vector<1x32xf32>
    %670 = tpu.matmul %669, %470, %cst_150 {dimension_numbers = #tpu.dot_dimension_numbers<[1], [0], [0], [1], [0, 0, 1, 1], [], []>} : vector<1x8xf32>, vector<8x32xf32>, vector<1x32xf32> -> vector<1x32xf32>
    %671 = tpu.concatenate %658, %670 in 1 : vector<1x32xf32>, vector<1x32xf32> -> vector<1x64xf32>
    %cst_151 = arith.constant dense<0.000000e+00> : vector<1x32xf32>
    %672 = tpu.matmul %671, %483, %cst_151 {dimension_numbers = #tpu.dot_dimension_numbers<[1], [0], [0], [1], [0, 0, 1, 1], [], []>} : vector<1x64xf32>, vector<64x32xf32>, vector<1x32xf32> -> vector<1x32xf32>
    %673 = arith.addf %672, %484 : vector<1x32xf32>
    %674 = math.tanh %673 : vector<1x32xf32>
    %cst_152 = arith.constant dense<0.000000e+00> : vector<1x32xf32>
    %675 = tpu.matmul %674, %485, %cst_152 {dimension_numbers = #tpu.dot_dimension_numbers<[1], [0], [0], [1], [0, 0, 1, 1], [], []>} : vector<1x32xf32>, vector<32x32xf32>, vector<1x32xf32> -> vector<1x32xf32>
    %676 = arith.addf %675, %486 : vector<1x32xf32>
    %cst_153 = arith.constant dense<0xFF800000> : vector<1xf32>
    %677 = vector.multi_reduction <maximumf>, %676, %cst_153 [1] : vector<1x32xf32> to vector<1xf32>
    %678 = vector.shape_cast %677 : vector<1xf32> to vector<1x1xf32>
    %679 = vector.broadcast %678 : vector<1x1xf32> to vector<1x32xf32>
    %680 = arith.subf %676, %679 : vector<1x32xf32>
    %681 = math.exp %680 : vector<1x32xf32>
    %cst_154 = arith.constant dense<0.000000e+00> : vector<1xf32>
    %682 = vector.multi_reduction <add>, %681, %cst_154 [1] : vector<1x32xf32> to vector<1xf32>
    %683 = vector.shape_cast %682 : vector<1xf32> to vector<1x1xf32>
    %684 = tpu.reciprocal %683 {approx = true} : vector<1x1xf32> -> vector<1x1xf32>
    %685 = vector.broadcast %678 : vector<1x1xf32> to vector<1x32xf32>
    %686 = arith.cmpf oeq, %676, %685 : vector<1x32xf32>
    %c32_i32_155 = arith.constant 32 : i32
    %687 = vector.broadcast %c32_i32_155 : i32 to vector<1x32xi32>
    %688 = arith.select %686, %493, %687 : vector<1x32xi1>, vector<1x32xi32>
    %cst_156 = arith.constant dense<2147483647> : vector<1xi32>
    %689 = vector.multi_reduction <minsi>, %688, %cst_156 [1] : vector<1x32xi32> to vector<1xi32>
    %690 = vector.shape_cast %689 : vector<1xi32> to vector<1x1xi32>
    %c2_i32_157 = arith.constant 2 : i32
    %691 = vector.broadcast %c2_i32_157 : i32 to vector<1x8xi32>
    %692 = arith.cmpi eq, %494, %691 : vector<1x8xi32>
    %693 = vector.shape_cast %690 : vector<1x1xi32> to vector<1x1xi32>
    %694 = vector.broadcast %693 : vector<1x1xi32> to vector<1x8xi32>
    %695 = arith.select %692, %694, %626 : vector<1x8xi1>, vector<1x8xi32>
    %c2_i32_158 = arith.constant 2 : i32
    %696 = vector.broadcast %c2_i32_158 : i32 to vector<1x8xi32>
    %697 = arith.cmpi eq, %494, %696 : vector<1x8xi32>
    %698 = vector.shape_cast %684 : vector<1x1xf32> to vector<1x1xf32>
    %699 = vector.broadcast %698 : vector<1x1xf32> to vector<1x8xf32>
    %700 = arith.select %697, %699, %631 : vector<1x8xi1>, vector<1x8xf32>
    %701 = vector.broadcast %690 : vector<1x1xi32> to vector<1x32xi32>
    %702 = arith.cmpi eq, %493, %701 : vector<1x32xi32>
    %703 = arith.extui %702 : vector<1x32xi1> to vector<1x32xi32>
    %704 = arith.sitofp %703 : vector<1x32xi32> to vector<1x32xf32>
    %cst_159 = arith.constant dense<0.000000e+00> : vector<1x128xf32>
    %705 = tpu.matmul %704, %492, %cst_159 {dimension_numbers = #tpu.dot_dimension_numbers<[1], [0], [0], [1], [0, 0, 1, 1], [], []>} : vector<1x32xf32>, vector<32x128xf32>, vector<1x128xf32> -> vector<1x128xf32>
    %cst_160 = arith.constant dense<0.000000e+00> : vector<1x128xf32>
    %706 = tpu.matmul %658, %481, %cst_160 {dimension_numbers = #tpu.dot_dimension_numbers<[1], [0], [0], [1], [0, 0, 1, 1], [], []>} : vector<1x32xf32>, vector<32x128xf32>, vector<1x128xf32> -> vector<1x128xf32>
    %707 = arith.addf %706, %482 : vector<1x128xf32>
    %708 = vector.extract_strided_slice %705 {offsets = [0, 0], sizes = [1, 64], strides = [1, 1]} : vector<1x128xf32> to vector<1x64xf32>
    %709 = vector.extract_strided_slice %707 {offsets = [0, 0], sizes = [1, 64], strides = [1, 1]} : vector<1x128xf32> to vector<1x64xf32>
    %710 = arith.addf %708, %709 : vector<1x64xf32>
    %711 = arith.negf %710 : vector<1x64xf32>
    %712 = math.exp %711 : vector<1x64xf32>
    %cst_161 = arith.constant 1.000000e+00 : f32
    %713 = vector.broadcast %cst_161 : f32 to vector<1x64xf32>
    %714 = arith.addf %713, %712 : vector<1x64xf32>
    %715 = arith.divf %713, %714 : vector<1x64xf32>
    %716 = vector.extract_strided_slice %715 {offsets = [0, 0], sizes = [1, 32], strides = [1, 1]} : vector<1x64xf32> to vector<1x32xf32>
    %717 = vector.extract_strided_slice %715 {offsets = [0, 32], sizes = [1, 32], strides = [1, 1]} : vector<1x64xf32> to vector<1x32xf32>
    %718 = vector.extract_strided_slice %705 {offsets = [0, 64], sizes = [1, 32], strides = [1, 1]} : vector<1x128xf32> to vector<1x32xf32>
    %719 = vector.extract_strided_slice %707 {offsets = [0, 64], sizes = [1, 32], strides = [1, 1]} : vector<1x128xf32> to vector<1x32xf32>
    %720 = arith.mulf %716, %719 : vector<1x32xf32>
    %721 = arith.addf %718, %720 : vector<1x32xf32>
    %722 = math.tanh %721 : vector<1x32xf32>
    %cst_162 = arith.constant 1.000000e+00 : f32
    %723 = vector.broadcast %cst_162 : f32 to vector<1x32xf32>
    %724 = arith.subf %723, %717 : vector<1x32xf32>
    %725 = arith.mulf %724, %722 : vector<1x32xf32>
    %726 = arith.mulf %717, %658 : vector<1x32xf32>
    %727 = arith.addf %725, %726 : vector<1x32xf32>
    %cst_163 = arith.constant dense<0.000000e+00> : vector<1x8xf32>
    %728 = tpu.matmul %727, %474, %cst_163 {dimension_numbers = #tpu.dot_dimension_numbers<[1], [0], [0], [1], [0, 0, 1, 1], [], []>} : vector<1x32xf32>, vector<32x8xf32>, vector<1x8xf32> -> vector<1x8xf32>
    %729 = arith.addf %728, %480 : vector<1x8xf32>
    %cst_164 = arith.constant dense<0xFF800000> : vector<1xf32>
    %730 = vector.multi_reduction <maximumf>, %729, %cst_164 [1] : vector<1x8xf32> to vector<1xf32>
    %731 = vector.shape_cast %730 : vector<1xf32> to vector<1x1xf32>
    %732 = vector.broadcast %731 : vector<1x1xf32> to vector<1x8xf32>
    %733 = arith.subf %729, %732 : vector<1x8xf32>
    %734 = math.exp %733 : vector<1x8xf32>
    %cst_165 = arith.constant dense<0.000000e+00> : vector<1xf32>
    %735 = vector.multi_reduction <add>, %734, %cst_165 [1] : vector<1x8xf32> to vector<1xf32>
    %736 = vector.shape_cast %735 : vector<1xf32> to vector<1x1xf32>
    %737 = vector.broadcast %736 : vector<1x1xf32> to vector<1x8xf32>
    %738 = arith.divf %734, %737 : vector<1x8xf32>
    %cst_166 = arith.constant dense<0.000000e+00> : vector<1x32xf32>
    %739 = tpu.matmul %738, %470, %cst_166 {dimension_numbers = #tpu.dot_dimension_numbers<[1], [0], [0], [1], [0, 0, 1, 1], [], []>} : vector<1x8xf32>, vector<8x32xf32>, vector<1x32xf32> -> vector<1x32xf32>
    %740 = tpu.concatenate %727, %739 in 1 : vector<1x32xf32>, vector<1x32xf32> -> vector<1x64xf32>
    %cst_167 = arith.constant dense<0.000000e+00> : vector<1x32xf32>
    %741 = tpu.matmul %740, %483, %cst_167 {dimension_numbers = #tpu.dot_dimension_numbers<[1], [0], [0], [1], [0, 0, 1, 1], [], []>} : vector<1x64xf32>, vector<64x32xf32>, vector<1x32xf32> -> vector<1x32xf32>
    %742 = arith.addf %741, %484 : vector<1x32xf32>
    %743 = math.tanh %742 : vector<1x32xf32>
    %cst_168 = arith.constant dense<0.000000e+00> : vector<1x32xf32>
    %744 = tpu.matmul %743, %485, %cst_168 {dimension_numbers = #tpu.dot_dimension_numbers<[1], [0], [0], [1], [0, 0, 1, 1], [], []>} : vector<1x32xf32>, vector<32x32xf32>, vector<1x32xf32> -> vector<1x32xf32>
    %745 = arith.addf %744, %486 : vector<1x32xf32>
    %cst_169 = arith.constant dense<0xFF800000> : vector<1xf32>
    %746 = vector.multi_reduction <maximumf>, %745, %cst_169 [1] : vector<1x32xf32> to vector<1xf32>
    %747 = vector.shape_cast %746 : vector<1xf32> to vector<1x1xf32>
    %748 = vector.broadcast %747 : vector<1x1xf32> to vector<1x32xf32>
    %749 = arith.subf %745, %748 : vector<1x32xf32>
    %750 = math.exp %749 : vector<1x32xf32>
    %cst_170 = arith.constant dense<0.000000e+00> : vector<1xf32>
    %751 = vector.multi_reduction <add>, %750, %cst_170 [1] : vector<1x32xf32> to vector<1xf32>
    %752 = vector.shape_cast %751 : vector<1xf32> to vector<1x1xf32>
    %753 = tpu.reciprocal %752 {approx = true} : vector<1x1xf32> -> vector<1x1xf32>
    %754 = vector.broadcast %747 : vector<1x1xf32> to vector<1x32xf32>
    %755 = arith.cmpf oeq, %745, %754 : vector<1x32xf32>
    %c32_i32_171 = arith.constant 32 : i32
    %756 = vector.broadcast %c32_i32_171 : i32 to vector<1x32xi32>
    %757 = arith.select %755, %493, %756 : vector<1x32xi1>, vector<1x32xi32>
    %cst_172 = arith.constant dense<2147483647> : vector<1xi32>
    %758 = vector.multi_reduction <minsi>, %757, %cst_172 [1] : vector<1x32xi32> to vector<1xi32>
    %759 = vector.shape_cast %758 : vector<1xi32> to vector<1x1xi32>
    %c3_i32_173 = arith.constant 3 : i32
    %760 = vector.broadcast %c3_i32_173 : i32 to vector<1x8xi32>
    %761 = arith.cmpi eq, %494, %760 : vector<1x8xi32>
    %762 = vector.shape_cast %759 : vector<1x1xi32> to vector<1x1xi32>
    %763 = vector.broadcast %762 : vector<1x1xi32> to vector<1x8xi32>
    %764 = arith.select %761, %763, %695 : vector<1x8xi1>, vector<1x8xi32>
    %c3_i32_174 = arith.constant 3 : i32
    %765 = vector.broadcast %c3_i32_174 : i32 to vector<1x8xi32>
    %766 = arith.cmpi eq, %494, %765 : vector<1x8xi32>
    %767 = vector.shape_cast %753 : vector<1x1xf32> to vector<1x1xf32>
    %768 = vector.broadcast %767 : vector<1x1xf32> to vector<1x8xf32>
    %769 = arith.select %766, %768, %700 : vector<1x8xi1>, vector<1x8xf32>
    %770 = vector.broadcast %759 : vector<1x1xi32> to vector<1x32xi32>
    %771 = arith.cmpi eq, %493, %770 : vector<1x32xi32>
    %772 = arith.extui %771 : vector<1x32xi1> to vector<1x32xi32>
    %773 = arith.sitofp %772 : vector<1x32xi32> to vector<1x32xf32>
    %cst_175 = arith.constant dense<0.000000e+00> : vector<1x128xf32>
    %774 = tpu.matmul %773, %492, %cst_175 {dimension_numbers = #tpu.dot_dimension_numbers<[1], [0], [0], [1], [0, 0, 1, 1], [], []>} : vector<1x32xf32>, vector<32x128xf32>, vector<1x128xf32> -> vector<1x128xf32>
    %cst_176 = arith.constant dense<0.000000e+00> : vector<1x128xf32>
    %775 = tpu.matmul %727, %481, %cst_176 {dimension_numbers = #tpu.dot_dimension_numbers<[1], [0], [0], [1], [0, 0, 1, 1], [], []>} : vector<1x32xf32>, vector<32x128xf32>, vector<1x128xf32> -> vector<1x128xf32>
    %776 = arith.addf %775, %482 : vector<1x128xf32>
    %777 = vector.extract_strided_slice %774 {offsets = [0, 0], sizes = [1, 64], strides = [1, 1]} : vector<1x128xf32> to vector<1x64xf32>
    %778 = vector.extract_strided_slice %776 {offsets = [0, 0], sizes = [1, 64], strides = [1, 1]} : vector<1x128xf32> to vector<1x64xf32>
    %779 = arith.addf %777, %778 : vector<1x64xf32>
    %780 = arith.negf %779 : vector<1x64xf32>
    %781 = math.exp %780 : vector<1x64xf32>
    %cst_177 = arith.constant 1.000000e+00 : f32
    %782 = vector.broadcast %cst_177 : f32 to vector<1x64xf32>
    %783 = arith.addf %782, %781 : vector<1x64xf32>
    %784 = arith.divf %782, %783 : vector<1x64xf32>
    %785 = vector.extract_strided_slice %784 {offsets = [0, 0], sizes = [1, 32], strides = [1, 1]} : vector<1x64xf32> to vector<1x32xf32>
    %786 = vector.extract_strided_slice %784 {offsets = [0, 32], sizes = [1, 32], strides = [1, 1]} : vector<1x64xf32> to vector<1x32xf32>
    %787 = vector.extract_strided_slice %774 {offsets = [0, 64], sizes = [1, 32], strides = [1, 1]} : vector<1x128xf32> to vector<1x32xf32>
    %788 = vector.extract_strided_slice %776 {offsets = [0, 64], sizes = [1, 32], strides = [1, 1]} : vector<1x128xf32> to vector<1x32xf32>
    %789 = arith.mulf %785, %788 : vector<1x32xf32>
    %790 = arith.addf %787, %789 : vector<1x32xf32>
    %791 = math.tanh %790 : vector<1x32xf32>
    %cst_178 = arith.constant 1.000000e+00 : f32
    %792 = vector.broadcast %cst_178 : f32 to vector<1x32xf32>
    %793 = arith.subf %792, %786 : vector<1x32xf32>
    %794 = arith.mulf %793, %791 : vector<1x32xf32>
    %795 = arith.mulf %786, %727 : vector<1x32xf32>
    %796 = arith.addf %794, %795 : vector<1x32xf32>
    %cst_179 = arith.constant dense<0.000000e+00> : vector<1x8xf32>
    %797 = tpu.matmul %796, %474, %cst_179 {dimension_numbers = #tpu.dot_dimension_numbers<[1], [0], [0], [1], [0, 0, 1, 1], [], []>} : vector<1x32xf32>, vector<32x8xf32>, vector<1x8xf32> -> vector<1x8xf32>
    %798 = arith.addf %797, %480 : vector<1x8xf32>
    %cst_180 = arith.constant dense<0xFF800000> : vector<1xf32>
    %799 = vector.multi_reduction <maximumf>, %798, %cst_180 [1] : vector<1x8xf32> to vector<1xf32>
    %800 = vector.shape_cast %799 : vector<1xf32> to vector<1x1xf32>
    %801 = vector.broadcast %800 : vector<1x1xf32> to vector<1x8xf32>
    %802 = arith.subf %798, %801 : vector<1x8xf32>
    %803 = math.exp %802 : vector<1x8xf32>
    %cst_181 = arith.constant dense<0.000000e+00> : vector<1xf32>
    %804 = vector.multi_reduction <add>, %803, %cst_181 [1] : vector<1x8xf32> to vector<1xf32>
    %805 = vector.shape_cast %804 : vector<1xf32> to vector<1x1xf32>
    %806 = vector.broadcast %805 : vector<1x1xf32> to vector<1x8xf32>
    %807 = arith.divf %803, %806 : vector<1x8xf32>
    %cst_182 = arith.constant dense<0.000000e+00> : vector<1x32xf32>
    %808 = tpu.matmul %807, %470, %cst_182 {dimension_numbers = #tpu.dot_dimension_numbers<[1], [0], [0], [1], [0, 0, 1, 1], [], []>} : vector<1x8xf32>, vector<8x32xf32>, vector<1x32xf32> -> vector<1x32xf32>
    %809 = tpu.concatenate %796, %808 in 1 : vector<1x32xf32>, vector<1x32xf32> -> vector<1x64xf32>
    %cst_183 = arith.constant dense<0.000000e+00> : vector<1x32xf32>
    %810 = tpu.matmul %809, %483, %cst_183 {dimension_numbers = #tpu.dot_dimension_numbers<[1], [0], [0], [1], [0, 0, 1, 1], [], []>} : vector<1x64xf32>, vector<64x32xf32>, vector<1x32xf32> -> vector<1x32xf32>
    %811 = arith.addf %810, %484 : vector<1x32xf32>
    %812 = math.tanh %811 : vector<1x32xf32>
    %cst_184 = arith.constant dense<0.000000e+00> : vector<1x32xf32>
    %813 = tpu.matmul %812, %485, %cst_184 {dimension_numbers = #tpu.dot_dimension_numbers<[1], [0], [0], [1], [0, 0, 1, 1], [], []>} : vector<1x32xf32>, vector<32x32xf32>, vector<1x32xf32> -> vector<1x32xf32>
    %814 = arith.addf %813, %486 : vector<1x32xf32>
    %cst_185 = arith.constant dense<0xFF800000> : vector<1xf32>
    %815 = vector.multi_reduction <maximumf>, %814, %cst_185 [1] : vector<1x32xf32> to vector<1xf32>
    %816 = vector.shape_cast %815 : vector<1xf32> to vector<1x1xf32>
    %817 = vector.broadcast %816 : vector<1x1xf32> to vector<1x32xf32>
    %818 = arith.subf %814, %817 : vector<1x32xf32>
    %819 = math.exp %818 : vector<1x32xf32>
    %cst_186 = arith.constant dense<0.000000e+00> : vector<1xf32>
    %820 = vector.multi_reduction <add>, %819, %cst_186 [1] : vector<1x32xf32> to vector<1xf32>
    %821 = vector.shape_cast %820 : vector<1xf32> to vector<1x1xf32>
    %822 = tpu.reciprocal %821 {approx = true} : vector<1x1xf32> -> vector<1x1xf32>
    %823 = vector.broadcast %816 : vector<1x1xf32> to vector<1x32xf32>
    %824 = arith.cmpf oeq, %814, %823 : vector<1x32xf32>
    %c32_i32_187 = arith.constant 32 : i32
    %825 = vector.broadcast %c32_i32_187 : i32 to vector<1x32xi32>
    %826 = arith.select %824, %493, %825 : vector<1x32xi1>, vector<1x32xi32>
    %cst_188 = arith.constant dense<2147483647> : vector<1xi32>
    %827 = vector.multi_reduction <minsi>, %826, %cst_188 [1] : vector<1x32xi32> to vector<1xi32>
    %828 = vector.shape_cast %827 : vector<1xi32> to vector<1x1xi32>
    %c4_i32_189 = arith.constant 4 : i32
    %829 = vector.broadcast %c4_i32_189 : i32 to vector<1x8xi32>
    %830 = arith.cmpi eq, %494, %829 : vector<1x8xi32>
    %831 = vector.shape_cast %828 : vector<1x1xi32> to vector<1x1xi32>
    %832 = vector.broadcast %831 : vector<1x1xi32> to vector<1x8xi32>
    %833 = arith.select %830, %832, %764 : vector<1x8xi1>, vector<1x8xi32>
    %c4_i32_190 = arith.constant 4 : i32
    %834 = vector.broadcast %c4_i32_190 : i32 to vector<1x8xi32>
    %835 = arith.cmpi eq, %494, %834 : vector<1x8xi32>
    %836 = vector.shape_cast %822 : vector<1x1xf32> to vector<1x1xf32>
    %837 = vector.broadcast %836 : vector<1x1xf32> to vector<1x8xf32>
    %838 = arith.select %835, %837, %769 : vector<1x8xi1>, vector<1x8xf32>
    %839 = vector.broadcast %828 : vector<1x1xi32> to vector<1x32xi32>
    %840 = arith.cmpi eq, %493, %839 : vector<1x32xi32>
    %841 = arith.extui %840 : vector<1x32xi1> to vector<1x32xi32>
    %842 = arith.sitofp %841 : vector<1x32xi32> to vector<1x32xf32>
    %cst_191 = arith.constant dense<0.000000e+00> : vector<1x128xf32>
    %843 = tpu.matmul %842, %492, %cst_191 {dimension_numbers = #tpu.dot_dimension_numbers<[1], [0], [0], [1], [0, 0, 1, 1], [], []>} : vector<1x32xf32>, vector<32x128xf32>, vector<1x128xf32> -> vector<1x128xf32>
    %cst_192 = arith.constant dense<0.000000e+00> : vector<1x128xf32>
    %844 = tpu.matmul %796, %481, %cst_192 {dimension_numbers = #tpu.dot_dimension_numbers<[1], [0], [0], [1], [0, 0, 1, 1], [], []>} : vector<1x32xf32>, vector<32x128xf32>, vector<1x128xf32> -> vector<1x128xf32>
    %845 = arith.addf %844, %482 : vector<1x128xf32>
    %846 = vector.extract_strided_slice %843 {offsets = [0, 0], sizes = [1, 64], strides = [1, 1]} : vector<1x128xf32> to vector<1x64xf32>
    %847 = vector.extract_strided_slice %845 {offsets = [0, 0], sizes = [1, 64], strides = [1, 1]} : vector<1x128xf32> to vector<1x64xf32>
    %848 = arith.addf %846, %847 : vector<1x64xf32>
    %849 = arith.negf %848 : vector<1x64xf32>
    %850 = math.exp %849 : vector<1x64xf32>
    %cst_193 = arith.constant 1.000000e+00 : f32
    %851 = vector.broadcast %cst_193 : f32 to vector<1x64xf32>
    %852 = arith.addf %851, %850 : vector<1x64xf32>
    %853 = arith.divf %851, %852 : vector<1x64xf32>
    %854 = vector.extract_strided_slice %853 {offsets = [0, 0], sizes = [1, 32], strides = [1, 1]} : vector<1x64xf32> to vector<1x32xf32>
    %855 = vector.extract_strided_slice %853 {offsets = [0, 32], sizes = [1, 32], strides = [1, 1]} : vector<1x64xf32> to vector<1x32xf32>
    %856 = vector.extract_strided_slice %843 {offsets = [0, 64], sizes = [1, 32], strides = [1, 1]} : vector<1x128xf32> to vector<1x32xf32>
    %857 = vector.extract_strided_slice %845 {offsets = [0, 64], sizes = [1, 32], strides = [1, 1]} : vector<1x128xf32> to vector<1x32xf32>
    %858 = arith.mulf %854, %857 : vector<1x32xf32>
    %859 = arith.addf %856, %858 : vector<1x32xf32>
    %860 = math.tanh %859 : vector<1x32xf32>
    %cst_194 = arith.constant 1.000000e+00 : f32
    %861 = vector.broadcast %cst_194 : f32 to vector<1x32xf32>
    %862 = arith.subf %861, %855 : vector<1x32xf32>
    %863 = arith.mulf %862, %860 : vector<1x32xf32>
    %864 = arith.mulf %855, %796 : vector<1x32xf32>
    %865 = arith.addf %863, %864 : vector<1x32xf32>
    %cst_195 = arith.constant dense<0.000000e+00> : vector<1x8xf32>
    %866 = tpu.matmul %865, %474, %cst_195 {dimension_numbers = #tpu.dot_dimension_numbers<[1], [0], [0], [1], [0, 0, 1, 1], [], []>} : vector<1x32xf32>, vector<32x8xf32>, vector<1x8xf32> -> vector<1x8xf32>
    %867 = arith.addf %866, %480 : vector<1x8xf32>
    %cst_196 = arith.constant dense<0xFF800000> : vector<1xf32>
    %868 = vector.multi_reduction <maximumf>, %867, %cst_196 [1] : vector<1x8xf32> to vector<1xf32>
    %869 = vector.shape_cast %868 : vector<1xf32> to vector<1x1xf32>
    %870 = vector.broadcast %869 : vector<1x1xf32> to vector<1x8xf32>
    %871 = arith.subf %867, %870 : vector<1x8xf32>
    %872 = math.exp %871 : vector<1x8xf32>
    %cst_197 = arith.constant dense<0.000000e+00> : vector<1xf32>
    %873 = vector.multi_reduction <add>, %872, %cst_197 [1] : vector<1x8xf32> to vector<1xf32>
    %874 = vector.shape_cast %873 : vector<1xf32> to vector<1x1xf32>
    %875 = vector.broadcast %874 : vector<1x1xf32> to vector<1x8xf32>
    %876 = arith.divf %872, %875 : vector<1x8xf32>
    %cst_198 = arith.constant dense<0.000000e+00> : vector<1x32xf32>
    %877 = tpu.matmul %876, %470, %cst_198 {dimension_numbers = #tpu.dot_dimension_numbers<[1], [0], [0], [1], [0, 0, 1, 1], [], []>} : vector<1x8xf32>, vector<8x32xf32>, vector<1x32xf32> -> vector<1x32xf32>
    %878 = tpu.concatenate %865, %877 in 1 : vector<1x32xf32>, vector<1x32xf32> -> vector<1x64xf32>
    %cst_199 = arith.constant dense<0.000000e+00> : vector<1x32xf32>
    %879 = tpu.matmul %878, %483, %cst_199 {dimension_numbers = #tpu.dot_dimension_numbers<[1], [0], [0], [1], [0, 0, 1, 1], [], []>} : vector<1x64xf32>, vector<64x32xf32>, vector<1x32xf32> -> vector<1x32xf32>
    %880 = arith.addf %879, %484 : vector<1x32xf32>
    %881 = math.tanh %880 : vector<1x32xf32>
    %cst_200 = arith.constant dense<0.000000e+00> : vector<1x32xf32>
    %882 = tpu.matmul %881, %485, %cst_200 {dimension_numbers = #tpu.dot_dimension_numbers<[1], [0], [0], [1], [0, 0, 1, 1], [], []>} : vector<1x32xf32>, vector<32x32xf32>, vector<1x32xf32> -> vector<1x32xf32>
    %883 = arith.addf %882, %486 : vector<1x32xf32>
    %cst_201 = arith.constant dense<0xFF800000> : vector<1xf32>
    %884 = vector.multi_reduction <maximumf>, %883, %cst_201 [1] : vector<1x32xf32> to vector<1xf32>
    %885 = vector.shape_cast %884 : vector<1xf32> to vector<1x1xf32>
    %886 = vector.broadcast %885 : vector<1x1xf32> to vector<1x32xf32>
    %887 = arith.subf %883, %886 : vector<1x32xf32>
    %888 = math.exp %887 : vector<1x32xf32>
    %cst_202 = arith.constant dense<0.000000e+00> : vector<1xf32>
    %889 = vector.multi_reduction <add>, %888, %cst_202 [1] : vector<1x32xf32> to vector<1xf32>
    %890 = vector.shape_cast %889 : vector<1xf32> to vector<1x1xf32>
    %891 = tpu.reciprocal %890 {approx = true} : vector<1x1xf32> -> vector<1x1xf32>
    %892 = vector.broadcast %885 : vector<1x1xf32> to vector<1x32xf32>
    %893 = arith.cmpf oeq, %883, %892 : vector<1x32xf32>
    %c32_i32_203 = arith.constant 32 : i32
    %894 = vector.broadcast %c32_i32_203 : i32 to vector<1x32xi32>
    %895 = arith.select %893, %493, %894 : vector<1x32xi1>, vector<1x32xi32>
    %cst_204 = arith.constant dense<2147483647> : vector<1xi32>
    %896 = vector.multi_reduction <minsi>, %895, %cst_204 [1] : vector<1x32xi32> to vector<1xi32>
    %897 = vector.shape_cast %896 : vector<1xi32> to vector<1x1xi32>
    %c5_i32_205 = arith.constant 5 : i32
    %898 = vector.broadcast %c5_i32_205 : i32 to vector<1x8xi32>
    %899 = arith.cmpi eq, %494, %898 : vector<1x8xi32>
    %900 = vector.shape_cast %897 : vector<1x1xi32> to vector<1x1xi32>
    %901 = vector.broadcast %900 : vector<1x1xi32> to vector<1x8xi32>
    %902 = arith.select %899, %901, %833 : vector<1x8xi1>, vector<1x8xi32>
    %c5_i32_206 = arith.constant 5 : i32
    %903 = vector.broadcast %c5_i32_206 : i32 to vector<1x8xi32>
    %904 = arith.cmpi eq, %494, %903 : vector<1x8xi32>
    %905 = vector.shape_cast %891 : vector<1x1xf32> to vector<1x1xf32>
    %906 = vector.broadcast %905 : vector<1x1xf32> to vector<1x8xf32>
    %907 = arith.select %904, %906, %838 : vector<1x8xi1>, vector<1x8xf32>
    %908 = vector.broadcast %897 : vector<1x1xi32> to vector<1x32xi32>
    %909 = arith.cmpi eq, %493, %908 : vector<1x32xi32>
    %910 = arith.extui %909 : vector<1x32xi1> to vector<1x32xi32>
    %911 = arith.sitofp %910 : vector<1x32xi32> to vector<1x32xf32>
    %cst_207 = arith.constant dense<0.000000e+00> : vector<1x128xf32>
    %912 = tpu.matmul %911, %492, %cst_207 {dimension_numbers = #tpu.dot_dimension_numbers<[1], [0], [0], [1], [0, 0, 1, 1], [], []>} : vector<1x32xf32>, vector<32x128xf32>, vector<1x128xf32> -> vector<1x128xf32>
    %cst_208 = arith.constant dense<0.000000e+00> : vector<1x128xf32>
    %913 = tpu.matmul %865, %481, %cst_208 {dimension_numbers = #tpu.dot_dimension_numbers<[1], [0], [0], [1], [0, 0, 1, 1], [], []>} : vector<1x32xf32>, vector<32x128xf32>, vector<1x128xf32> -> vector<1x128xf32>
    %914 = arith.addf %913, %482 : vector<1x128xf32>
    %915 = vector.extract_strided_slice %912 {offsets = [0, 0], sizes = [1, 64], strides = [1, 1]} : vector<1x128xf32> to vector<1x64xf32>
    %916 = vector.extract_strided_slice %914 {offsets = [0, 0], sizes = [1, 64], strides = [1, 1]} : vector<1x128xf32> to vector<1x64xf32>
    %917 = arith.addf %915, %916 : vector<1x64xf32>
    %918 = arith.negf %917 : vector<1x64xf32>
    %919 = math.exp %918 : vector<1x64xf32>
    %cst_209 = arith.constant 1.000000e+00 : f32
    %920 = vector.broadcast %cst_209 : f32 to vector<1x64xf32>
    %921 = arith.addf %920, %919 : vector<1x64xf32>
    %922 = arith.divf %920, %921 : vector<1x64xf32>
    %923 = vector.extract_strided_slice %922 {offsets = [0, 0], sizes = [1, 32], strides = [1, 1]} : vector<1x64xf32> to vector<1x32xf32>
    %924 = vector.extract_strided_slice %922 {offsets = [0, 32], sizes = [1, 32], strides = [1, 1]} : vector<1x64xf32> to vector<1x32xf32>
    %925 = vector.extract_strided_slice %912 {offsets = [0, 64], sizes = [1, 32], strides = [1, 1]} : vector<1x128xf32> to vector<1x32xf32>
    %926 = vector.extract_strided_slice %914 {offsets = [0, 64], sizes = [1, 32], strides = [1, 1]} : vector<1x128xf32> to vector<1x32xf32>
    %927 = arith.mulf %923, %926 : vector<1x32xf32>
    %928 = arith.addf %925, %927 : vector<1x32xf32>
    %929 = math.tanh %928 : vector<1x32xf32>
    %cst_210 = arith.constant 1.000000e+00 : f32
    %930 = vector.broadcast %cst_210 : f32 to vector<1x32xf32>
    %931 = arith.subf %930, %924 : vector<1x32xf32>
    %932 = arith.mulf %931, %929 : vector<1x32xf32>
    %933 = arith.mulf %924, %865 : vector<1x32xf32>
    %934 = arith.addf %932, %933 : vector<1x32xf32>
    %cst_211 = arith.constant dense<0.000000e+00> : vector<1x8xf32>
    %935 = tpu.matmul %934, %474, %cst_211 {dimension_numbers = #tpu.dot_dimension_numbers<[1], [0], [0], [1], [0, 0, 1, 1], [], []>} : vector<1x32xf32>, vector<32x8xf32>, vector<1x8xf32> -> vector<1x8xf32>
    %936 = arith.addf %935, %480 : vector<1x8xf32>
    %cst_212 = arith.constant dense<0xFF800000> : vector<1xf32>
    %937 = vector.multi_reduction <maximumf>, %936, %cst_212 [1] : vector<1x8xf32> to vector<1xf32>
    %938 = vector.shape_cast %937 : vector<1xf32> to vector<1x1xf32>
    %939 = vector.broadcast %938 : vector<1x1xf32> to vector<1x8xf32>
    %940 = arith.subf %936, %939 : vector<1x8xf32>
    %941 = math.exp %940 : vector<1x8xf32>
    %cst_213 = arith.constant dense<0.000000e+00> : vector<1xf32>
    %942 = vector.multi_reduction <add>, %941, %cst_213 [1] : vector<1x8xf32> to vector<1xf32>
    %943 = vector.shape_cast %942 : vector<1xf32> to vector<1x1xf32>
    %944 = vector.broadcast %943 : vector<1x1xf32> to vector<1x8xf32>
    %945 = arith.divf %941, %944 : vector<1x8xf32>
    %cst_214 = arith.constant dense<0.000000e+00> : vector<1x32xf32>
    %946 = tpu.matmul %945, %470, %cst_214 {dimension_numbers = #tpu.dot_dimension_numbers<[1], [0], [0], [1], [0, 0, 1, 1], [], []>} : vector<1x8xf32>, vector<8x32xf32>, vector<1x32xf32> -> vector<1x32xf32>
    %947 = tpu.concatenate %934, %946 in 1 : vector<1x32xf32>, vector<1x32xf32> -> vector<1x64xf32>
    %cst_215 = arith.constant dense<0.000000e+00> : vector<1x32xf32>
    %948 = tpu.matmul %947, %483, %cst_215 {dimension_numbers = #tpu.dot_dimension_numbers<[1], [0], [0], [1], [0, 0, 1, 1], [], []>} : vector<1x64xf32>, vector<64x32xf32>, vector<1x32xf32> -> vector<1x32xf32>
    %949 = arith.addf %948, %484 : vector<1x32xf32>
    %950 = math.tanh %949 : vector<1x32xf32>
    %cst_216 = arith.constant dense<0.000000e+00> : vector<1x32xf32>
    %951 = tpu.matmul %950, %485, %cst_216 {dimension_numbers = #tpu.dot_dimension_numbers<[1], [0], [0], [1], [0, 0, 1, 1], [], []>} : vector<1x32xf32>, vector<32x32xf32>, vector<1x32xf32> -> vector<1x32xf32>
    %952 = arith.addf %951, %486 : vector<1x32xf32>
    %cst_217 = arith.constant dense<0xFF800000> : vector<1xf32>
    %953 = vector.multi_reduction <maximumf>, %952, %cst_217 [1] : vector<1x32xf32> to vector<1xf32>
    %954 = vector.shape_cast %953 : vector<1xf32> to vector<1x1xf32>
    %955 = vector.broadcast %954 : vector<1x1xf32> to vector<1x32xf32>
    %956 = arith.subf %952, %955 : vector<1x32xf32>
    %957 = math.exp %956 : vector<1x32xf32>
    %cst_218 = arith.constant dense<0.000000e+00> : vector<1xf32>
    %958 = vector.multi_reduction <add>, %957, %cst_218 [1] : vector<1x32xf32> to vector<1xf32>
    %959 = vector.shape_cast %958 : vector<1xf32> to vector<1x1xf32>
    %960 = tpu.reciprocal %959 {approx = true} : vector<1x1xf32> -> vector<1x1xf32>
    %961 = vector.broadcast %954 : vector<1x1xf32> to vector<1x32xf32>
    %962 = arith.cmpf oeq, %952, %961 : vector<1x32xf32>
    %c32_i32_219 = arith.constant 32 : i32
    %963 = vector.broadcast %c32_i32_219 : i32 to vector<1x32xi32>
    %964 = arith.select %962, %493, %963 : vector<1x32xi1>, vector<1x32xi32>
    %cst_220 = arith.constant dense<2147483647> : vector<1xi32>
    %965 = vector.multi_reduction <minsi>, %964, %cst_220 [1] : vector<1x32xi32> to vector<1xi32>
    %966 = vector.shape_cast %965 : vector<1xi32> to vector<1x1xi32>
    %c6_i32_221 = arith.constant 6 : i32
    %967 = vector.broadcast %c6_i32_221 : i32 to vector<1x8xi32>
    %968 = arith.cmpi eq, %494, %967 : vector<1x8xi32>
    %969 = vector.shape_cast %966 : vector<1x1xi32> to vector<1x1xi32>
    %970 = vector.broadcast %969 : vector<1x1xi32> to vector<1x8xi32>
    %971 = arith.select %968, %970, %902 : vector<1x8xi1>, vector<1x8xi32>
    %c6_i32_222 = arith.constant 6 : i32
    %972 = vector.broadcast %c6_i32_222 : i32 to vector<1x8xi32>
    %973 = arith.cmpi eq, %494, %972 : vector<1x8xi32>
    %974 = vector.shape_cast %960 : vector<1x1xf32> to vector<1x1xf32>
    %975 = vector.broadcast %974 : vector<1x1xf32> to vector<1x8xf32>
    %976 = arith.select %973, %975, %907 : vector<1x8xi1>, vector<1x8xf32>
    %977 = vector.broadcast %966 : vector<1x1xi32> to vector<1x32xi32>
    %978 = arith.cmpi eq, %493, %977 : vector<1x32xi32>
    %979 = arith.extui %978 : vector<1x32xi1> to vector<1x32xi32>
    %980 = arith.sitofp %979 : vector<1x32xi32> to vector<1x32xf32>
    %cst_223 = arith.constant dense<0.000000e+00> : vector<1x128xf32>
    %981 = tpu.matmul %980, %492, %cst_223 {dimension_numbers = #tpu.dot_dimension_numbers<[1], [0], [0], [1], [0, 0, 1, 1], [], []>} : vector<1x32xf32>, vector<32x128xf32>, vector<1x128xf32> -> vector<1x128xf32>
    %cst_224 = arith.constant dense<0.000000e+00> : vector<1x128xf32>
    %982 = tpu.matmul %934, %481, %cst_224 {dimension_numbers = #tpu.dot_dimension_numbers<[1], [0], [0], [1], [0, 0, 1, 1], [], []>} : vector<1x32xf32>, vector<32x128xf32>, vector<1x128xf32> -> vector<1x128xf32>
    %983 = arith.addf %982, %482 : vector<1x128xf32>
    %984 = vector.extract_strided_slice %981 {offsets = [0, 0], sizes = [1, 64], strides = [1, 1]} : vector<1x128xf32> to vector<1x64xf32>
    %985 = vector.extract_strided_slice %983 {offsets = [0, 0], sizes = [1, 64], strides = [1, 1]} : vector<1x128xf32> to vector<1x64xf32>
    %986 = arith.addf %984, %985 : vector<1x64xf32>
    %987 = arith.negf %986 : vector<1x64xf32>
    %988 = math.exp %987 : vector<1x64xf32>
    %cst_225 = arith.constant 1.000000e+00 : f32
    %989 = vector.broadcast %cst_225 : f32 to vector<1x64xf32>
    %990 = arith.addf %989, %988 : vector<1x64xf32>
    %991 = arith.divf %989, %990 : vector<1x64xf32>
    %992 = vector.extract_strided_slice %991 {offsets = [0, 0], sizes = [1, 32], strides = [1, 1]} : vector<1x64xf32> to vector<1x32xf32>
    %993 = vector.extract_strided_slice %991 {offsets = [0, 32], sizes = [1, 32], strides = [1, 1]} : vector<1x64xf32> to vector<1x32xf32>
    %994 = vector.extract_strided_slice %981 {offsets = [0, 64], sizes = [1, 32], strides = [1, 1]} : vector<1x128xf32> to vector<1x32xf32>
    %995 = vector.extract_strided_slice %983 {offsets = [0, 64], sizes = [1, 32], strides = [1, 1]} : vector<1x128xf32> to vector<1x32xf32>
    %996 = arith.mulf %992, %995 : vector<1x32xf32>
    %997 = arith.addf %994, %996 : vector<1x32xf32>
    %998 = math.tanh %997 : vector<1x32xf32>
    %cst_226 = arith.constant 1.000000e+00 : f32
    %999 = vector.broadcast %cst_226 : f32 to vector<1x32xf32>
    %1000 = arith.subf %999, %993 : vector<1x32xf32>
    %1001 = arith.mulf %1000, %998 : vector<1x32xf32>
    %1002 = arith.mulf %993, %934 : vector<1x32xf32>
    %1003 = arith.addf %1001, %1002 : vector<1x32xf32>
    %cst_227 = arith.constant dense<0.000000e+00> : vector<1x8xf32>
    %1004 = tpu.matmul %1003, %474, %cst_227 {dimension_numbers = #tpu.dot_dimension_numbers<[1], [0], [0], [1], [0, 0, 1, 1], [], []>} : vector<1x32xf32>, vector<32x8xf32>, vector<1x8xf32> -> vector<1x8xf32>
    %1005 = arith.addf %1004, %480 : vector<1x8xf32>
    %cst_228 = arith.constant dense<0xFF800000> : vector<1xf32>
    %1006 = vector.multi_reduction <maximumf>, %1005, %cst_228 [1] : vector<1x8xf32> to vector<1xf32>
    %1007 = vector.shape_cast %1006 : vector<1xf32> to vector<1x1xf32>
    %1008 = vector.broadcast %1007 : vector<1x1xf32> to vector<1x8xf32>
    %1009 = arith.subf %1005, %1008 : vector<1x8xf32>
    %1010 = math.exp %1009 : vector<1x8xf32>
    %cst_229 = arith.constant dense<0.000000e+00> : vector<1xf32>
    %1011 = vector.multi_reduction <add>, %1010, %cst_229 [1] : vector<1x8xf32> to vector<1xf32>
    %1012 = vector.shape_cast %1011 : vector<1xf32> to vector<1x1xf32>
    %1013 = vector.broadcast %1012 : vector<1x1xf32> to vector<1x8xf32>
    %1014 = arith.divf %1010, %1013 : vector<1x8xf32>
    %cst_230 = arith.constant dense<0.000000e+00> : vector<1x32xf32>
    %1015 = tpu.matmul %1014, %470, %cst_230 {dimension_numbers = #tpu.dot_dimension_numbers<[1], [0], [0], [1], [0, 0, 1, 1], [], []>} : vector<1x8xf32>, vector<8x32xf32>, vector<1x32xf32> -> vector<1x32xf32>
    %1016 = tpu.concatenate %1003, %1015 in 1 : vector<1x32xf32>, vector<1x32xf32> -> vector<1x64xf32>
    %cst_231 = arith.constant dense<0.000000e+00> : vector<1x32xf32>
    %1017 = tpu.matmul %1016, %483, %cst_231 {dimension_numbers = #tpu.dot_dimension_numbers<[1], [0], [0], [1], [0, 0, 1, 1], [], []>} : vector<1x64xf32>, vector<64x32xf32>, vector<1x32xf32> -> vector<1x32xf32>
    %1018 = arith.addf %1017, %484 : vector<1x32xf32>
    %1019 = math.tanh %1018 : vector<1x32xf32>
    %cst_232 = arith.constant dense<0.000000e+00> : vector<1x32xf32>
    %1020 = tpu.matmul %1019, %485, %cst_232 {dimension_numbers = #tpu.dot_dimension_numbers<[1], [0], [0], [1], [0, 0, 1, 1], [], []>} : vector<1x32xf32>, vector<32x32xf32>, vector<1x32xf32> -> vector<1x32xf32>
    %1021 = arith.addf %1020, %486 : vector<1x32xf32>
    %cst_233 = arith.constant dense<0xFF800000> : vector<1xf32>
    %1022 = vector.multi_reduction <maximumf>, %1021, %cst_233 [1] : vector<1x32xf32> to vector<1xf32>
    %1023 = vector.shape_cast %1022 : vector<1xf32> to vector<1x1xf32>
    %1024 = vector.broadcast %1023 : vector<1x1xf32> to vector<1x32xf32>
    %1025 = arith.subf %1021, %1024 : vector<1x32xf32>
    %1026 = math.exp %1025 : vector<1x32xf32>
    %cst_234 = arith.constant dense<0.000000e+00> : vector<1xf32>
    %1027 = vector.multi_reduction <add>, %1026, %cst_234 [1] : vector<1x32xf32> to vector<1xf32>
    %1028 = vector.shape_cast %1027 : vector<1xf32> to vector<1x1xf32>
    %1029 = tpu.reciprocal %1028 {approx = true} : vector<1x1xf32> -> vector<1x1xf32>
    %1030 = vector.broadcast %1023 : vector<1x1xf32> to vector<1x32xf32>
    %1031 = arith.cmpf oeq, %1021, %1030 : vector<1x32xf32>
    %c32_i32_235 = arith.constant 32 : i32
    %1032 = vector.broadcast %c32_i32_235 : i32 to vector<1x32xi32>
    %1033 = arith.select %1031, %493, %1032 : vector<1x32xi1>, vector<1x32xi32>
    %cst_236 = arith.constant dense<2147483647> : vector<1xi32>
    %1034 = vector.multi_reduction <minsi>, %1033, %cst_236 [1] : vector<1x32xi32> to vector<1xi32>
    %1035 = vector.shape_cast %1034 : vector<1xi32> to vector<1x1xi32>
    %c7_i32_237 = arith.constant 7 : i32
    %1036 = vector.broadcast %c7_i32_237 : i32 to vector<1x8xi32>
    %1037 = arith.cmpi eq, %494, %1036 : vector<1x8xi32>
    %1038 = vector.shape_cast %1035 : vector<1x1xi32> to vector<1x1xi32>
    %1039 = vector.broadcast %1038 : vector<1x1xi32> to vector<1x8xi32>
    %1040 = arith.select %1037, %1039, %971 : vector<1x8xi1>, vector<1x8xi32>
    %c7_i32_238 = arith.constant 7 : i32
    %1041 = vector.broadcast %c7_i32_238 : i32 to vector<1x8xi32>
    %1042 = arith.cmpi eq, %494, %1041 : vector<1x8xi32>
    %1043 = vector.shape_cast %1029 : vector<1x1xf32> to vector<1x1xf32>
    %1044 = vector.broadcast %1043 : vector<1x1xf32> to vector<1x8xf32>
    %1045 = arith.select %1042, %1044, %976 : vector<1x8xi1>, vector<1x8xf32>
    %c0_239 = arith.constant 0 : index
    %c0_240 = arith.constant 0 : index
    %1046 = vector.load %arg9[%c0_239, %c0_240] : memref<1x8xi32, #tpu.memory_space<vmem>>, vector<1x8xi32>
    tpu.vector_store %arg9[%c0_239, %c0_240], %1040 {strides = array<i32>} : memref<1x8xi32, #tpu.memory_space<vmem>>, vector<1x8xi32>,
    %c0_241 = arith.constant 0 : index
    %c0_242 = arith.constant 0 : index
    %1047 = vector.load %arg10[%c0_241, %c0_242] : memref<1x8xf32, #tpu.memory_space<vmem>>, vector<1x8xf32>
    tpu.vector_store %arg10[%c0_241, %c0_242], %1045 {strides = array<i32>} : memref<1x8xf32, #tpu.memory_space<vmem>>, vector<1x8xf32>,
    return
  }
}

</mosaic_0001>

<bundles_post_ra>
// kernel: tpu_custom_call.1
= control target key start
LH: loop header
LB: loop body
LE: loop exit
PB: predicated region body
PF: predicated region fallthrough
CT: control target
= control target key end

     0   :  { %17 = vsyncpa [#allocation6], 0  ;;  %s8605_s0 = inlined_call_operand.vmem [shape: s32[8], index: 0, kind: input, shape index: {}]   ;;  %s8606_s1 = inlined_call_operand.<no memory space> [shape: s32[1], index: 1, kind: input, shape index: {}]   ;;  %s8607_s2 = inlined_call_operand.hbm [shape: f32[32,32], index: 2, kind: input, shape index: {}]   ;;  %s8608_s3 = inlined_call_operand.vmem [shape: f32[65,256], index: 3, kind: input, shape index: {}]   ;;  %s8609_s4 = inlined_call_operand.hbm [shape: f32[65,256], index: 4, kind: input, shape index: {}]   ;;  %s8610_s5 = inlined_call_operand.vmem [shape: f32[33,128], index: 5, kind: input, shape index: {}]   ;;  %s8611_s6 = inlined_call_operand.hbm [shape: f32[33,128], index: 6, kind: input, shape index: {}]   ;;  %s8612_s7 = inlined_call_operand.vmem [shape: f32[65,32], index: 7, kind: input, shape index: {}]   ;;  %s8613_s8 = inlined_call_operand.vmem [shape: f32[33,32], index: 8, kind: input, shape index: {}]   ;;  %s8614_s9 = inlined_call_operand.hbm [shape: s32[1,8], index: 9, kind: output, shape index: {0}]   ;;  %s8615_s10 = inlined_call_operand.hbm [shape: f32[1,8], index: 10, kind: output, shape index: {1}]  }
   0x1   :  { %18 = vsyncpa [#allocation4], 0 }
   0x2   :  { %19 = vsyncpa [#allocation9], 0 }
   0x3   :  { %20 = vsyncpa [#allocation5], 0 }
   0x4   :  { %21 = vsyncpa [#allocation13], 0  ;;  %s7247_s13 = smov [#allocation8]   ;;  %s28_s17 = sshll.u32 %s8605_s0, 4  ;;  %s29_s17 = int_to_ptr.vmem [resolvable:$true] %s28_s17 }
   0x5   :  { %s53_s14 = sshll.u32 %s7247_s13, 4  ;;  %s7115_s20 = scalar_lea.hbm %s8609_s4, 2304  ;;  %s54_s14 = int_to_ptr.vmem [resolvable:$true] %s53_s14 }
   0x6   :  { %p7116_p0 = scmp.ne.s32.totalorder %s8609_s4, %s7115_s20  ;;  %p7119_p1 = scmp.lt.u32.totalorder %s7115_s20, %s8609_s4 }
   0x8   :  { %p7121_p2 = pnand %p7119_p1, %p7116_p0 }
   0xa   :  { %7124 = shalt.err (!%p7121_p2)
}
   0xb   :  { %s7125_s25 = scalar_lea.vmem %s54_s14, 2304  ;;  %p7130_p4 = scmp.lt.s32.totalorder %s54_s14, %s54_s14 }
   0xc   :  { %p7126_p3 = scmp.ne.s32.totalorder %s54_s14, %s7125_s25  ;;  %p7131_p5 = scmp.lt.s32.totalorder %s7125_s25, %s7125_s25 }
   0xe   :  { %p7132_p6 = por %p7131_p5, %p7130_p4 }
  0x10   :  { %p7133_p7 = pnand %p7132_p6, %p7126_p3 }
  0x12   :  { %7136 = shalt.err (!%p7133_p7)
}
  0x13   :  { %s7248_s0 = smov 256   ;;  %s7249_s26 = smov 16  }
  0x14   :  { %59 = dma.hbm_to_vmem [thread:$0]  %s8609_s4, 2304, %s54_s14, [#allocation9], %s7248_s0, %s7248_s0, %s7249_s26  }
  0x15   :  { %s7137_s29 = scalar_lea.vmem %s29_s17, 16  ;;  %p7142_p9 = scmp.lt.s32.totalorder %s29_s17, %s29_s17 }
  0x16   :  { %p7138_p8 = scmp.ne.s32.totalorder %s29_s17, %s7137_s29  ;;  %p7143_p10 = scmp.lt.s32.totalorder %s7137_s29, %s7137_s29 }
  0x18   :  { %p7144_p11 = por %p7143_p10, %p7142_p9 }
  0x1a   :  { %p7145_p12 = pnand %p7144_p11, %p7138_p8 }
  0x1c   :  { %7148 = shalt.err (!%p7145_p12)
}
  0x1d   :  { %s7250_s30 = smov [#allocation3]   ;;  %s7251_s11 = smov [#allocation7]  }
  0x1e   :  { %31 = dma.vmem_to_smem %s29_s17, 16, %s7250_s30, [#allocation6]  }
  0x1f   :  { %s39_s12 = sshll.u32 %s7251_s11, 4  ;;  %s7149_s16 = scalar_lea.hbm %s8607_s2, 512  ;;  %s40_s12 = int_to_ptr.vmem [resolvable:$true] %s39_s12 }
  0x20   :  { %p7150_p13 = scmp.ne.s32.totalorder %s8607_s2, %s7149_s16  ;;  %p7153_p0 = scmp.lt.u32.totalorder %s7149_s16, %s8607_s2 }
  0x22   :  { %p7155_p1 = pnand %p7153_p0, %p7150_p13 }
  0x24   :  { %7158 = shalt.err (!%p7155_p1)
}
  0x25   :  { %s7159_s20 = scalar_lea.vmem %s40_s12, 512  ;;  %p7164_p3 = scmp.lt.s32.totalorder %s40_s12, %s40_s12 }
  0x26   :  { %p7160_p2 = scmp.ne.s32.totalorder %s40_s12, %s7159_s20  ;;  %p7165_p4 = scmp.lt.s32.totalorder %s7159_s20, %s7159_s20 }
  0x28   :  { %p7166_p5 = por %p7165_p4, %p7164_p3 }
  0x2a   :  { %p7167_p6 = pnand %p7166_p5, %p7160_p2 }
  0x2c   :  { %7170 = shalt.err (!%p7167_p6)
}
  0x2d   :  { %s7252_s17 = smov 128   ;;  %s7253_s21 = smov 8  }
  0x2e   :  { %45 = dma.hbm_to_vmem [thread:$0]  %s8607_s2, 512, %s40_s12, [#allocation4], %s7252_s17, %s7252_s17, %s7253_s21  }
  0x2f   :  { %s7254_s24 = smov [#allocation10]   ;;  %s7171_s27 = scalar_lea.hbm %s8611_s6, 640 }
  0x30   :  { %s67_s25 = sshll.u32 %s7254_s24, 4  ;;  %p7172_p7 = scmp.ne.s32.totalorder %s8611_s6, %s7171_s27  ;;  %s68_s25 = int_to_ptr.vmem [resolvable:$true] %s67_s25 }
  0x31   :  { %p7175_p8 = scmp.lt.u32.totalorder %s7171_s27, %s8611_s6 }
  0x33   :  { %p7177_p9 = pnand %p7175_p8, %p7172_p7 }
  0x35   :  { %7180 = shalt.err (!%p7177_p9)
}
  0x36   :  { %s7181_s13 = scalar_lea.vmem %s68_s25, 640  ;;  %p7186_p11 = scmp.lt.s32.totalorder %s68_s25, %s68_s25 }
  0x37   :  { %p7182_p10 = scmp.ne.s32.totalorder %s68_s25, %s7181_s13  ;;  %p7187_p12 = scmp.lt.s32.totalorder %s7181_s13, %s7181_s13 }
  0x39   :  { %p7188_p13 = por %p7187_p12, %p7186_p11 }
  0x3b   :  { %p7189_p0 = pnand %p7188_p13, %p7182_p10 }
  0x3d   :  { %7192 = shalt.err (!%p7189_p0)
}
  0x3e   :  { %73 = dma.hbm_to_vmem [thread:$0]  %s8611_s6, 640, %s68_s25, [#allocation9], %s7252_s17, %s7252_s17, %s7253_s21  }
  0x3f   :  { %7237 = dma.done.wait [#allocation6], 16  }
  0x40   :  { %7238 = vsyncadd [#allocation6], 4294967280 }
  0x41   :  { %7239 = dma.done.wait [#allocation4], 512  }
  0x42   :  { %7240 = vsyncadd [#allocation4], 4294966784 }
  0x43   :  { %7241 = dma.done.wait [#allocation9], 2944  }
  0x44   :  { %7242 = vsyncadd [#allocation9], 4294964352 }
  0x45   :  { %90 = sfence }
  0x46   :  { %s7366_s15 = sld [smem:[#allocation3 + $0x6]]  ;;  %v297_v0 = vld [vmem:[#allocation8 + $0x8] sm:$0xff]  ;;  %v299_v1 = vld [vmem:[#allocation8 + $0x18] sm:$0xff]  ;;  %s7368_s16 = sld [smem:[#allocation3 + $0x7]]  ;;  %v296_v5 = vld [vmem:[#allocation8] sm:$0xff]  ;;  %v7256_v40 = vmov 0.0  }
  0x47   :  { %s7370_s18 = sld [smem:[#allocation3 + $0x5]]  ;;  %v7372_v2 = vpack.c.bf16 %v299_v1, %v297_v0  ;;  %v193_v3 = vld [vmem:[%s8608_s3 + $0x8] sm:$0xff]  ;;  %s7377_s6 = sld [smem:[#allocation3 + $0x4]]  ;;  %v195_v4 = vld [vmem:[%s8608_s3 + $0x18] sm:$0xff]  ;;  %v298_v7 = vld [vmem:[#allocation8 + $0x10] sm:$0xff]  ;;  %398 = vmatprep.mubr.f32.mxu1 %v7256_v40  ;;  %289 = vmatprep.mubr.f32.mxu0 %v7256_v40  ;;  %vm120_vm0 = vcmask 261120  }
  0x48   :  { %s7379_s14 = sld [smem:[#allocation3 + $0x3]]  ;;  %s7384_s21 = sld [smem:[#allocation3 + $0x2]]  ;;  %v6477_v6 = vpack.c.bf16 %v195_v4, %v193_v3  ;;  %v192_v8 = vld [vmem:[%s8608_s3] sm:$0xff]  ;;  %v7390_v9 = vpack.c.bf16 %v298_v7, %v296_v5  ;;  %v194_v10 = vld [vmem:[%s8608_s3 + $0x10] sm:$0xff]  ;;  %v301_v11 = vld [vmem:[#allocation8 + $0x28] sm:$0xff]  ;;  %vm178_vm1 = vcmask 1040384  }
  0x49   :  { %6494 = vmatprep.subr.bf16.mxu1 %v7372_v2  ;;  %v303_v12 = vld [vmem:[#allocation8 + $0x38] sm:$0xff]  ;;  %s7395_s0 = sld [smem:[#allocation3 + $0x1]]  ;;  %v6479_v13 = vpack.c.bf16 %v194_v10, %v192_v8  ;;  %v197_v15 = vld [vmem:[%s8608_s3 + $0x28] sm:$0xff]  ;;  %v300_v17 = vld [vmem:[#allocation8 + $0x20] sm:$0xff]  ;;  %s7405_s30 = sld [smem:[#allocation3]]  ;;  %vm180_vm2 = vcmask 1041408  }
  0x4a   :  { %6478 = vmatprep.subr.bf16.mxu0 %v6477_v6  ;;  %v7397_v14 = vpack.c.bf16 %v303_v12, %v301_v11  ;;  %v199_v16 = vld [vmem:[%s8608_s3 + $0x38] sm:$0xff]  ;;  %6496 = vmatpush1.bf16.msra.mxu1 %v7390_v9  ;;  %v302_v19 = vld [vmem:[#allocation8 + $0x30] sm:$0xff]  ;;  %v196_v20 = vld [vmem:[%s8608_s3 + $0x20] sm:$0xff]  ;;  %s7255_s4 = smov 32   ;;  %vm182_vm3 = vcmask 1042432   ;;  %vm184_vm4 = vcmask 1043456  }
  0x4b   :  { %v6481_v18 = vpack.c.bf16 %v199_v16, %v197_v15  ;;  %v198_v21 = vld [vmem:[%s8608_s3 + $0x30] sm:$0xff]  ;;  %6480 = vmatpush1.bf16.msra.mxu0 %v6479_v13  ;;  %v7418_v23 = vpack.c.bf16 %v302_v19, %v300_v17  ;;  %v305_v25 = vld [vmem:[#allocation8 + $0x48] sm:$0xff]  ;;  %v307_v26 = vld [vmem:[#allocation8 + $0x58] sm:$0xff]  ;;  %vm186_vm5 = vcmask 1044480   ;;  %vm188_vm6 = vcmask 1045504  }
  0x4c   :  { %s111_s19 = scalar_lea.vmem [#allocation7], %s7366_s15  ;;  %6498 = vmatprep.subr.bf16.mxu1 %v7397_v14  ;;  %v6483_v24 = vpack.c.bf16 %v198_v21, %v196_v20  ;;  %s114_s20 = scalar_lea.vmem [#allocation7], %s7368_s16  ;;  %v7425_v28 = vpack.c.bf16 %v307_v26, %v305_v25  ;;  %v201_v31 = vld [vmem:[%s8608_s3 + $0x48] sm:$0xff]  ;;  %v203_v33 = vld [vmem:[%s8608_s3 + $0x58] sm:$0xff]  ;;  %v304_v34 = vld [vmem:[#allocation8 + $0x40] sm:$0xff]  ;;  %vm190_vm7 = vcmask 1046528  }
  0x4d   :  { %v7415_v22 = vld [vmem:[%s111_s19] sm:$0x1]  ;;  %6482 = vmatprep.subr.bf16.mxu0 %v6481_v18  ;;  %s108_s15 = scalar_lea.vmem [#allocation7], %s7370_s18  ;;  %s105_s17 = scalar_lea.vmem [#allocation7], %s7377_s6  ;;  %v6485_v36 = vpack.c.bf16 %v203_v33, %v201_v31  ;;  %v306_v37 = vld [vmem:[#allocation8 + $0x50] sm:$0xff]  ;;  %v309_v43 = vld [vmem:[#allocation8 + $0x68] sm:$0xff] }
  0x4e   :  { %123 = vrot.lane.b32.xlu0 %v7415_v22, %s7255_s4  ;;  %v7423_v27 = vld [vmem:[%s114_s20] sm:$0x1]  ;;  %6500 = vmatpush1.bf16.msra.mxu1 %v7418_v23  ;;  %s102_s16 = scalar_lea.vmem [#allocation7], %s7379_s14  ;;  %s99_s18 = scalar_lea.vmem [#allocation7], %s7384_s21  ;;  %v202_v39 = vld [vmem:[%s8608_s3 + $0x50] sm:$0xff]  ;;  %v7458_v41 = vpack.c.bf16 %v306_v37, %v304_v34  ;;  %v311_v44 = vld [vmem:[#allocation8 + $0x78] sm:$0xff] }
  0x4f   :  { %117 = vrot.lane.b32.xlu1 %v7423_v27, %s7255_s4  ;;  %v7430_v29 = vld [vmem:[%s108_s15] sm:$0x1]  ;;  %6484 = vmatpush1.bf16.msra.mxu0 %v6483_v24  ;;  %v205_v45 = vld [vmem:[%s8608_s3 + $0x68] sm:$0xff]  ;;  %v7464_v46 = vpack.c.bf16 %v311_v44, %v309_v43  ;;  %v207_v47 = vld [vmem:[%s8608_s3 + $0x78] sm:$0xff]  ;;  %s96_s20 = scalar_lea.vmem [#allocation7], %s7395_s0  ;;  %s93_s15 = scalar_lea.vmem [#allocation7], %s7405_s30 }
  0x50   :  { %v7433_v30 = vld [vmem:[%s105_s17] sm:$0x1]  ;;  %6502 = vmatprep.subr.bf16.mxu1 %v7425_v28  ;;  %6486 = vmatprep.subr.bf16.mxu0 %v6485_v36  ;;  %v310_v49 = vld [vmem:[#allocation8 + $0x70] sm:$0xff]  ;;  %v6489_v50 = vpack.c.bf16 %v207_v47, %v205_v45  ;;  %vm221_vm8 = vcmask 523264  }
  0x51   :  { %v7440_v32 = vld [vmem:[%s102_s16] sm:$0x1]  ;;  %v206_v53 = vld [vmem:[%s8608_s3 + $0x70] sm:$0xff] }
  0x52   :  { %128 = vrot.lane.b32.xlu0 %v7430_v29, %s7255_s4  ;;  %v100_v35 = vld [vmem:[%s99_s18] sm:$0x1]  ;;  %6504 = vmatpush1.bf16.msra.mxu1 %v7458_v41 }
  0x53   :  { %v200_v38 = vld [vmem:[%s8608_s3 + $0x40] sm:$0xff]  ;;  %133 = vrot.lane.b32.xlu1 %v7433_v30, %s7255_s4  ;;  %6506 = vmatprep.subr.bf16.mxu1 %v7464_v46 }
  0x54   :  { %v6487_v42 = vpack.c.bf16 %v202_v39, %v200_v38  ;;  %v308_v48 = vld [vmem:[#allocation8 + $0x60] sm:$0xff] }
  0x55   :  { %v7470_v51 = vpack.c.bf16 %v310_v49, %v308_v48  ;;  %v204_v52 = vld [vmem:[%s8608_s3 + $0x60] sm:$0xff] }
  0x56   :  { %6488 = vmatpush1.bf16.msra.mxu0 %v6487_v42  ;;  %138 = vrot.lane.b32.xlu0 %v7440_v32, %s7255_s4  ;;  %v6491_v54 = vpack.c.bf16 %v206_v53, %v204_v52  ;;  %v97_v55 = vld [vmem:[%s96_s20] sm:$0x1] }
  0x57   :  { %143 = vrot.lane.b32.xlu1 %v100_v35, %s7255_s4  ;;  %6490 = vmatprep.subr.bf16.mxu0 %v6489_v50  ;;  %v94_v56 = vld [vmem:[%s93_s15] sm:$0x1] }
  0x58   :  { %6508 = vmatpush1.bf16.msra.mxu1 %v7470_v51  ;;  %v313_v33 = vld [vmem:[#allocation8 + $0x80] ss:$8 sm:$0x3] }
  0x59   :  { %6526 = vmatprep.subr.bf16.mxu1 %v7372_v2  ;;  %v5595_v34 = vld [vmem:[%s8608_s3 + $0x80] ss:$8 sm:$0x3]  ;;  %s7257_s3 = smov 64  }
  0x5a   :  { %6492 = vmatpush1.bf16.msra.mxu0 %v6491_v54  ;;  %148 = vrot.lane.b32.xlu0 %v97_v55, %s7255_s4 }
  0x5b   :  { %6510 = vmatprep.subr.bf16.mxu0 %v7372_v2  ;;  %153 = vrot.lane.b32.xlu1 %v94_v56, %s7255_s4 }
  0x5c   :  { %399 = vmatmul.mubr.f32.vlgmr.msra.gmra.mrb[0].mxu1 %v7256_v40 }
  0x5d   :  { %6528 = vmatpush1.bf16.msra.mxu1 %v7390_v9  ;;  %648 = vmatprep.mubr.f32.mxu1 %v7256_v40 }
  0x5e   :  { %6530 = vmatprep.subr.bf16.mxu1 %v7397_v14 }
  0x61   :  { %6532 = vmatpush1.bf16.msra.mxu1 %v7418_v23 }
  0x62   :  { %6534 = vmatprep.subr.bf16.mxu1 %v7425_v28 }
  0x65   :  { %6536 = vmatpush1.bf16.msra.mxu1 %v7458_v41 }
  0x66   :  { %6538 = vmatprep.subr.bf16.mxu1 %v7464_v46 }
  0x69   :  { %6540 = vmatpush1.bf16.msra.mxu1 %v7470_v51 }
  0x6a   :  { %6558 = vmatprep.subr.bf16.mxu1 %v7372_v2 }
  0xc0   :  { %v124_v57 = vpop.permute.xlu0 %123 }
  0xc1   :  { %v126_v58 = vsel %vm120_vm0, %v97_v55, %v124_v57  ;;  %v118_v59 = vpop.permute.xlu1 %117 }
  0xc2   :  { %v158_v60 = vrot.slane %v126_v58, 7  ;;  %v121_v61 = vsel %vm120_vm0, %v94_v56, %v118_v59 }
  0xc4   :  { %v129_v62 = vpop.permute.xlu0 %128  ;;  %v179_v4 = vsel %vm178_vm1, %v121_v61, %v158_v60 }
  0xc5   :  { %v131_v63 = vsel %vm120_vm0, %v100_v35, %v129_v62  ;;  %v134_v0 = vpop.permute.xlu1 %133 }
  0xc6   :  { %v161_v1 = vrot.slane %v131_v63, 6  ;;  %v136_v3 = vsel %vm120_vm0, %v7440_v32, %v134_v0  ;;  %v7553_v0 = vstv %s8606_s1 }
  0xc7   :  { %v164_v5 = vrot.slane %v136_v3, 5 }
  0xc8   :  { %v181_v6 = vsel %vm180_vm2, %v179_v4, %v161_v1  ;;  %v139_v7 = vpop.permute.xlu0 %138  ;;  %v7258_v1 = vmov 7   ;;  %vm7266_vm2 = vmmov 0  }
  0xc9   :  { %v141_v8 = vsel %vm120_vm0, %v7433_v30, %v139_v7  ;;  %v144_v10 = vpop.permute.xlu1 %143  ;;  %v183_v13 = vsel %vm182_vm3, %v181_v6, %v164_v5  ;;  %v211_v30 = vlaneseq }
  0xca   :  { %v167_v11 = vrot.slane %v141_v8, 4  ;;  %v146_v12 = vsel %vm120_vm0, %v7430_v29, %v144_v10 }
  0xcb   :  { %v170_v15 = vrot.slane %v146_v12, 3  ;;  %v7522_v31 = vshrl.u32 %v211_v30, 7  ;;  %v7547_v63 = vand.u32 127, %v211_v30 }
  0xcc   :  { %v185_v16 = vsel %vm184_vm4, %v183_v13, %v167_v11  ;;  %v149_v17 = vpop.permute.xlu0 %148 }
  0xcd   :  { %v151_v18 = vsel %vm120_vm0, %v7415_v22, %v149_v17  ;;  %v154_v19 = vpop.permute.xlu1 %153  ;;  %v187_v24 = vsel %vm186_vm5, %v185_v16, %v170_v15  ;;  %v7525_v32 = vsub.s32 0, %v7522_v31  ;;  %v217_v48 = vsub.s32 1, %v7522_v31 }
  0xce   :  { %v173_v20 = vrot.slane %v151_v18, 2  ;;  %v156_v21 = vsel %vm120_vm0, %v7423_v27, %v154_v19  ;;  %vm423_vm9 = vcmp.lt.s32.totalorder %v7547_v63, 32  ;;  %vm7758_vm4 = vcmp.lt.s32.totalorder %v7522_v31, %v7553_v0 }
  0xcf   :  { %v176_v25 = vrot.slane %v156_v21, 1  ;;  %v7531_v35 = vrot.slane %v313_v33, %v7525_v32  ;;  %v214_v36 = vrot.slane %v5595_v34, %v7525_v32  ;;  %v7539_v49 = vrot.slane %v313_v33, %v217_v48 }
  0xd0   :  { %v189_v26 = vsel %vm188_vm6, %v187_v24, %v173_v20  ;;  %v218_v50 = vrot.slane %v5595_v34, %v217_v48  ;;  %v424_v3 = vsel %vm423_vm9, 0, %v7258_v1  ;;  %v7259_v34 = vmov 6  }
  0xd1   :  { %v191_v29 = vsel %vm190_vm7, %v189_v26, %v176_v25  ;;  %vm425_vm10 = vcmp.lt.s32.totalorder %v424_v3, %v7553_v0  ;;  %vm441_vm5 = vcmp.eq.s32.totalorder %v7522_v31, 7  ;;  %vm701_vm7 = vcmp.eq.s32.totalorder %v7522_v31, 5 }
  0xd2   :  { %5596 = vmatmul.mubr.msk.f32.vlgmr.msra.gmra.mrb[0].mxu0 %vm221_vm8, %v191_v29  ;;  %vm7768_vm6 = vmand %vm441_vm5, %vm7758_vm4  ;;  %vm691_vm5 = vcmp.eq.s32.totalorder %v7522_v31, 2 }
  0xd3   :  { %6512 = vmatpush1.bf16.msra.mxu0 %v7390_v9  ;;  %518 = vmatprep.mubr.f32.mxu0 %v7256_v40 }
  0xd4   :  { %6514 = vmatprep.subr.bf16.mxu0 %v7397_v14 }
  0xd7   :  { %6516 = vmatpush1.bf16.msra.mxu0 %v7418_v23 }
  0xd8   :  { %6518 = vmatprep.subr.bf16.mxu0 %v7425_v28 }
  0xdb   :  { %6520 = vmatpush1.bf16.msra.mxu0 %v7458_v41 }
  0xdc   :  { %6522 = vmatprep.subr.bf16.mxu0 %v7464_v46 }
  0xdf   :  { %6524 = vmatpush1.bf16.msra.mxu0 %v7470_v51 }
  0xe0   :  { %6542 = vmatprep.subr.bf16.mxu0 %v7372_v2 }
 0x12f   :  { %v400_v22 = vpop.f32.mrb[0].mxu1 }
 0x130   :  { %v402_v27 = vpop.f32.mrb[1].mxu1  ;;  %v401_v37 = vadd.f32 %v400_v22, %v7531_v35 }
 0x131   :  { %v403_v52 = vadd.f32 %v402_v27, %v7539_v49 }
 0x1a5   :  { %v291_v38 = vpop.f32.mrb[0].mxu0 }
 0x1a6   :  { %v7535_v39 = vadd.f32 %v291_v38, %v214_v36  ;;  %v293_v42 = vpop.f32.mrb[1].mxu0  ;;  %v553_v36 = vsel %vm423_vm9, 1, %v7259_v34 }
 0x1a7   :  { %v7542_v55 = vadd.f32 %v293_v42, %v218_v50  ;;  %vm554_vm11 = vcmp.lt.s32.totalorder %v553_v36, %v7553_v0 }
 0x1a8   :  { %v405_v43 = vadd.f32 %v401_v37, %v7535_v39 }
 0x1aa   :  { %v5597_v44 = vmul.f32 -1.442695, %v405_v43 }
 0x1ac   :  { %6936 = vpow2.f32 %v5597_v44 }
 0x1b6   :  { %v6937_v45 = vpop.eup %6936 }
 0x1b7   :  { %v409_v47 = vadd.f32 1.0, %v6937_v45 }
 0x1b9   :  { %6938 = vrcp.f32 %v409_v47 }
 0x1c3   :  { %v6939_v53 = vpop.eup %6938 }
 0x1c4   :  { %v412_v54 = vmul.f32 %v6939_v53, %v403_v52  ;;  %v415_v58 = vsub.f32 1.0, %v6939_v53  ;;  %v421_v60 = vmul.f32 0.0, %v6939_v53 }
 0x1c6   :  { %v413_v56 = vadd.f32 %v412_v54, %v7542_v55 }
 0x1c8   :  { %6940 = vtanh.f32 %v413_v56 }
 0x1d2   :  { %v6941_v57 = vpop.eup %6940 }
 0x1d3   :  { %417 = vrot.lane.b32.xlu0 %v6941_v57, %s7257_s3 }
 0x245   :  { %v418_v59 = vpop.permute.xlu0 %417 }
 0x246   :  { %v420_v61 = vmul.f32 %v418_v59, %v415_v58 }
 0x248   :  { %v422_v62 = vadd.f32 %v421_v60, %v420_v61 }
 0x24a   :  { %427 = vrot.lane.b32.xlu1 %v422_v62, %s7257_s3 }
 0x2bc   :  { %v428_v4 = vpop.permute.xlu1 %427 }
 0x2bd   :  { %v7558_v5 = vsel %vm425_vm10, %v428_v4, 0.0  ;;  %vm431_vm10 = vcmp.eq.s32.totalorder %v7522_v31, 0 }
 0x2be   :  { %5598 = vmatmul.mubr.msk.f32.vlgmr.msra.gmra.mrb[2].mxu0 %vm221_vm8, %v7558_v5  ;;  %v547_v6 = vrot.slane %v7558_v5, 7 }
 0x2bf   :  { %6544 = vmatpush1.bf16.msra.mxu0 %v7390_v9  ;;  %778 = vmatprep.mubr.f32.mxu0 %v7256_v40 }
 0x2c0   :  { %548 = vrot.lane.b32.xlu1 %v547_v6, %s7257_s3  ;;  %6546 = vmatprep.subr.bf16.mxu0 %v7397_v14 }
 0x2c3   :  { %6548 = vmatpush1.bf16.msra.mxu0 %v7418_v23 }
 0x2c4   :  { %6550 = vmatprep.subr.bf16.mxu0 %v7425_v28 }
 0x2c7   :  { %6552 = vmatpush1.bf16.msra.mxu0 %v7458_v41 }
 0x2c8   :  { %6554 = vmatprep.subr.bf16.mxu0 %v7464_v46 }
 0x2cb   :  { %6556 = vmatpush1.bf16.msra.mxu0 %v7470_v51 }
 0x2cc   :  { %6574 = vmatprep.subr.bf16.mxu0 %v7372_v2 }
 0x332   :  { %v549_v26 = vpop.permute.xlu1 %548 }
 0x391   :  { %v520_v7 = vpop.f32.mrb[2].mxu0 }
 0x392   :  { %v521_v8 = vadd.f32 %v520_v7, %v7531_v35  ;;  %v522_v10 = vpop.f32.mrb[3].mxu0 }
 0x393   :  { %v523_v17 = vadd.f32 %v522_v10, %v7539_v49 }
 0x394   :  { %v526_v11 = vrot.slane %v521_v8, 7  ;;  %v7260_v8 = vmov 5  }
 0x395   :  { %v536_v18 = vrot.slane %v523_v17, 7  ;;  %v683_v10 = vsel %vm423_vm9, 2, %v7260_v8 }
 0x396   :  { %v528_v12 = vadd.f32 %v526_v11, %v7535_v39  ;;  %vm684_vm12 = vcmp.lt.s32.totalorder %v683_v10, %v7553_v0 }
 0x398   :  { %v5599_v13 = vmul.f32 -1.442695, %v528_v12 }
 0x39a   :  { %6942 = vpow2.f32 %v5599_v13 }
 0x3a4   :  { %v6943_v15 = vpop.eup %6942 }
 0x3a5   :  { %v532_v16 = vadd.f32 1.0, %v6943_v15 }
 0x3a7   :  { %6944 = vrcp.f32 %v532_v16 }
 0x3b1   :  { %v6945_v19 = vpop.eup %6944 }
 0x3b2   :  { %v538_v20 = vmul.f32 %v6945_v19, %v536_v18  ;;  %v541_v25 = vsub.f32 1.0, %v6945_v19  ;;  %v551_v22 = vmul.f32 %v6945_v19, %v549_v26 }
 0x3b4   :  { %v539_v21 = vadd.f32 %v538_v20, %v7542_v55 }
 0x3b6   :  { %6946 = vtanh.f32 %v539_v21 }
 0x3c0   :  { %v6947_v24 = vpop.eup %6946 }
 0x3c1   :  { %543 = vrot.lane.b32.xlu0 %v6947_v24, %s7257_s3 }
 0x433   :  { %v544_v29 = vpop.permute.xlu0 %543 }
 0x434   :  { %v546_v27 = vmul.f32 %v544_v29, %v541_v25 }
 0x436   :  { %v552_v30 = vadd.f32 %v551_v22, %v546_v27 }
 0x438   :  { %v556_v33 = vrot.slane %v552_v30, 1 }
 0x43a   :  { %557 = vrot.lane.b32.xlu0 %v556_v33, %s7257_s3 }
 0x4ac   :  { %v558_v37 = vpop.permute.xlu0 %557 }
 0x4ad   :  { %v7583_v38 = vsel %vm554_vm11, %v558_v37, %v7558_v5  ;;  %vm571_vm11 = vcmp.eq.s32.totalorder %v7522_v31, 6 }
 0x4ae   :  { %5600 = vmatmul.mubr.msk.f32.vlgmr.msra.gmra.mrb[2].mxu1 %vm221_vm8, %v7583_v38  ;;  %v677_v42 = vrot.slane %v7583_v38, 6 }
 0x4af   :  { %6560 = vmatpush1.bf16.msra.mxu1 %v7390_v9  ;;  %908 = vmatprep.mubr.f32.mxu1 %v7256_v40 }
 0x4b0   :  { %678 = vrot.lane.b32.xlu0 %v677_v42, %s7257_s3  ;;  %6562 = vmatprep.subr.bf16.mxu1 %v7397_v14 }
 0x4b3   :  { %6564 = vmatpush1.bf16.msra.mxu1 %v7418_v23 }
 0x4b4   :  { %6566 = vmatprep.subr.bf16.mxu1 %v7425_v28 }
 0x4b7   :  { %6568 = vmatpush1.bf16.msra.mxu1 %v7458_v41 }
 0x4b8   :  { %6570 = vmatprep.subr.bf16.mxu1 %v7464_v46 }
 0x4bb   :  { %6572 = vmatpush1.bf16.msra.mxu1 %v7470_v51 }
 0x4bc   :  { %6590 = vmatprep.subr.bf16.mxu1 %v7372_v2 }
 0x522   :  { %v679_v62 = vpop.permute.xlu0 %678 }
 0x581   :  { %v650_v43 = vpop.f32.mrb[2].mxu1 }
 0x582   :  { %v651_v44 = vadd.f32 %v650_v43, %v7531_v35  ;;  %v652_v45 = vpop.f32.mrb[3].mxu1 }
 0x583   :  { %v653_v54 = vadd.f32 %v652_v45, %v7539_v49 }
 0x584   :  { %v656_v47 = vrot.slane %v651_v44, 6  ;;  %v7261_v44 = vmov 4  }
 0x585   :  { %v666_v56 = vrot.slane %v653_v54, 6  ;;  %v813_v45 = vsel %vm423_vm9, 3, %v7261_v44  ;;  %v7263_v44 = vmov 2  }
 0x586   :  { %v658_v48 = vadd.f32 %v656_v47, %v7535_v39  ;;  %vm814_vm13 = vcmp.lt.s32.totalorder %v813_v45, %v7553_v0  ;;  %v1065_v45 = vsel %vm423_vm9, 5, %v7263_v44 }
 0x587   :  { %vm1066_vm15 = vcmp.lt.s32.totalorder %v1065_v45, %v7553_v0  ;;  %v1384_v45 = vld [vmem:[#allocation7 + $0x8] sm:$0xff] }
 0x588   :  { %v5601_v50 = vmul.f32 -1.442695, %v658_v48 }
 0x58a   :  { %6948 = vpow2.f32 %v5601_v50 }
 0x594   :  { %v6949_v52 = vpop.eup %6948 }
 0x595   :  { %v662_v53 = vadd.f32 1.0, %v6949_v52 }
 0x597   :  { %6950 = vrcp.f32 %v662_v53 }
 0x5a1   :  { %v6951_v57 = vpop.eup %6950 }
 0x5a2   :  { %v668_v58 = vmul.f32 %v6951_v57, %v666_v56  ;;  %v671_v61 = vsub.f32 1.0, %v6951_v57  ;;  %v681_v3 = vmul.f32 %v6951_v57, %v679_v62 }
 0x5a4   :  { %v669_v59 = vadd.f32 %v668_v58, %v7542_v55 }
 0x5a6   :  { %6952 = vtanh.f32 %v669_v59 }
 0x5b0   :  { %v6953_v60 = vpop.eup %6952 }
 0x5b1   :  { %673 = vrot.lane.b32.xlu1 %v6953_v60, %s7257_s3 }
 0x623   :  { %v674_v1 = vpop.permute.xlu1 %673 }
 0x624   :  { %v676_v4 = vmul.f32 %v674_v1, %v671_v61 }
 0x626   :  { %v682_v6 = vadd.f32 %v681_v3, %v676_v4 }
 0x628   :  { %v686_v7 = vrot.slane %v682_v6, 2 }
 0x62a   :  { %687 = vrot.lane.b32.xlu1 %v686_v7, %s7257_s3 }
 0x69c   :  { %v688_v11 = vpop.permute.xlu1 %687 }
 0x69d   :  { %v7608_v12 = vsel %vm684_vm12, %v688_v11, %v7583_v38  ;;  %vm561_vm12 = vcmp.eq.s32.totalorder %v7522_v31, 1 }
 0x69e   :  { %5602 = vmatmul.mubr.msk.f32.vlgmr.msra.gmra.mrb[4].mxu0 %vm221_vm8, %v7608_v12  ;;  %v807_v13 = vrot.slane %v7608_v12, 5 }
 0x69f   :  { %6576 = vmatpush1.bf16.msra.mxu0 %v7390_v9  ;;  %1030 = vmatprep.mubr.f32.mxu0 %v7256_v40 }
 0x6a0   :  { %808 = vrot.lane.b32.xlu1 %v807_v13, %s7257_s3  ;;  %6578 = vmatprep.subr.bf16.mxu0 %v7397_v14 }
 0x6a3   :  { %6580 = vmatpush1.bf16.msra.mxu0 %v7418_v23 }
 0x6a4   :  { %6582 = vmatprep.subr.bf16.mxu0 %v7425_v28 }
 0x6a7   :  { %6584 = vmatpush1.bf16.msra.mxu0 %v7458_v41 }
 0x6a8   :  { %6586 = vmatprep.subr.bf16.mxu0 %v7464_v46 }
 0x6ab   :  { %6588 = vmatpush1.bf16.msra.mxu0 %v7470_v51 }
 0x6ac   :  { %6606 = vmatprep.subr.bf16.mxu0 %v7372_v2 }
 0x712   :  { %v809_v33 = vpop.permute.xlu1 %808 }
 0x771   :  { %v780_v15 = vpop.f32.mrb[4].mxu0 }
 0x772   :  { %v781_v16 = vadd.f32 %v780_v15, %v7531_v35  ;;  %v782_v17 = vpop.f32.mrb[5].mxu0 }
 0x773   :  { %v783_v25 = vadd.f32 %v782_v17, %v7539_v49  ;;  %v7262_v17 = vmov 3  }
 0x774   :  { %v786_v18 = vrot.slane %v781_v16, 5 }
 0x775   :  { %v796_v26 = vrot.slane %v783_v25, 5 }
 0x776   :  { %v788_v19 = vadd.f32 %v786_v18, %v7535_v39  ;;  %v943_v18 = vsel %vm423_vm9, 4, %v7262_v17 }
 0x777   :  { %vm944_vm14 = vcmp.lt.s32.totalorder %v943_v18, %v7553_v0  ;;  %v7264_v18 = vmov 1  }
 0x778   :  { %v5603_v20 = vmul.f32 -1.442695, %v788_v19 }
 0x77a   :  { %6954 = vpow2.f32 %v5603_v20 }
 0x784   :  { %v6955_v21 = vpop.eup %6954 }
 0x785   :  { %v792_v24 = vadd.f32 1.0, %v6955_v21 }
 0x787   :  { %6956 = vrcp.f32 %v792_v24 }
 0x791   :  { %v6957_v29 = vpop.eup %6956 }
 0x792   :  { %v798_v22 = vmul.f32 %v6957_v29, %v796_v26  ;;  %v801_v30 = vsub.f32 1.0, %v6957_v29  ;;  %v811_v36 = vmul.f32 %v6957_v29, %v809_v33 }
 0x794   :  { %v799_v27 = vadd.f32 %v798_v22, %v7542_v55 }
 0x796   :  { %6958 = vtanh.f32 %v799_v27 }
 0x7a0   :  { %v6959_v2 = vpop.eup %6958 }
 0x7a1   :  { %803 = vrot.lane.b32.xlu0 %v6959_v2, %s7257_s3 }
 0x813   :  { %v804_v34 = vpop.permute.xlu0 %803 }
 0x814   :  { %v806_v37 = vmul.f32 %v804_v34, %v801_v30 }
 0x816   :  { %v812_v42 = vadd.f32 %v811_v36, %v806_v37 }
 0x818   :  { %v816_v43 = vrot.slane %v812_v42, 3 }
 0x81a   :  { %817 = vrot.lane.b32.xlu0 %v816_v43, %s7257_s3 }
 0x88c   :  { %v818_v47 = vpop.permute.xlu0 %817 }
 0x88d   :  { %v7633_v48 = vsel %vm814_vm13, %v818_v47, %v7608_v12  ;;  %vm7795_vm13 = vmand %vm431_vm10, %vm7758_vm4  ;;  %vm821_vm10 = vcmp.eq.s32.totalorder %v7522_v31, 3 }
 0x88e   :  { %5604 = vmatmul.mubr.msk.f32.vlgmr.msra.gmra.mrb[4].mxu1 %vm221_vm8, %v7633_v48  ;;  %v937_v50 = vrot.slane %v7633_v48, 4 }
 0x88f   :  { %6592 = vmatpush1.bf16.msra.mxu1 %v7390_v9  ;;  %1152 = vmatprep.mubr.f32.mxu1 %v7256_v40 }
 0x890   :  { %938 = vrot.lane.b32.xlu0 %v937_v50, %s7257_s3  ;;  %6594 = vmatprep.subr.bf16.mxu1 %v7397_v14 }
 0x893   :  { %6596 = vmatpush1.bf16.msra.mxu1 %v7418_v23 }
 0x894   :  { %6598 = vmatprep.subr.bf16.mxu1 %v7425_v28 }
 0x897   :  { %6600 = vmatpush1.bf16.msra.mxu1 %v7458_v41 }
 0x898   :  { %6602 = vmatprep.subr.bf16.mxu1 %v7464_v46 }
 0x89b   :  { %6604 = vmatpush1.bf16.msra.mxu1 %v7470_v51 }
 0x902   :  { %v939_v8 = vpop.permute.xlu0 %938 }
 0x961   :  { %v910_v52 = vpop.f32.mrb[4].mxu1 }
 0x962   :  { %v911_v53 = vadd.f32 %v910_v52, %v7531_v35  ;;  %v912_v54 = vpop.f32.mrb[5].mxu1 }
 0x963   :  { %v913_v61 = vadd.f32 %v912_v54, %v7539_v49 }
 0x964   :  { %v916_v56 = vrot.slane %v911_v53, 4 }
 0x965   :  { %v926_v62 = vrot.slane %v913_v61, 4 }
 0x966   :  { %v918_v57 = vadd.f32 %v916_v56, %v7535_v39 }
 0x968   :  { %v5605_v58 = vmul.f32 -1.442695, %v918_v57 }
 0x96a   :  { %6960 = vpow2.f32 %v5605_v58 }
 0x974   :  { %v6961_v59 = vpop.eup %6960 }
 0x975   :  { %v922_v60 = vadd.f32 1.0, %v6961_v59 }
 0x977   :  { %6962 = vrcp.f32 %v922_v60 }
 0x981   :  { %v6963_v1 = vpop.eup %6962 }
 0x982   :  { %v928_v3 = vmul.f32 %v6963_v1, %v926_v62  ;;  %v931_v7 = vsub.f32 1.0, %v6963_v1  ;;  %v941_v11 = vmul.f32 %v6963_v1, %v939_v8 }
 0x984   :  { %v929_v4 = vadd.f32 %v928_v3, %v7542_v55 }
 0x986   :  { %6964 = vtanh.f32 %v929_v4 }
 0x990   :  { %v6965_v6 = vpop.eup %6964 }
 0x991   :  { %933 = vrot.lane.b32.xlu1 %v6965_v6, %s7257_s3 }
 0xa03   :  { %v934_v10 = vpop.permute.xlu1 %933 }
 0xa04   :  { %v936_v13 = vmul.f32 %v934_v10, %v931_v7 }
 0xa06   :  { %v942_v15 = vadd.f32 %v941_v11, %v936_v13 }
 0xa08   :  { %v946_v16 = vrot.slane %v942_v15, 4 }
 0xa0a   :  { %947 = vrot.lane.b32.xlu1 %v946_v16, %s7257_s3 }
 0xa7c   :  { %v948_v19 = vpop.permute.xlu1 %947 }
 0xa7d   :  { %v7657_v20 = vsel %vm944_vm14, %v948_v19, %v7633_v48  ;;  %v1187_v19 = vsel %vm423_vm9, 6, %v7264_v18  ;;  %vm7803_vm14 = vmand %vm571_vm11, %vm7758_vm4 }
 0xa7e   :  { %5606 = vmatmul.mubr.msk.f32.vlgmr.msra.gmra.mrb[6].mxu0 %vm221_vm8, %v7657_v20  ;;  %v1059_v21 = vrot.slane %v7657_v20, 3  ;;  %vm1188_vm1 = vcmp.lt.s32.totalorder %v1187_v19, %v7553_v0  ;;  %vm822_vm11 = vmand %vm821_vm10, %vm7758_vm4 }
 0xa7f   :  { %6608 = vmatpush1.bf16.msra.mxu0 %v7390_v9  ;;  %1274 = vmatprep.mubr.f32.mxu0 %v7256_v40 }
 0xa80   :  { %1060 = vrot.lane.b32.xlu1 %v1059_v21, %s7257_s3  ;;  %6610 = vmatprep.subr.bf16.mxu0 %v7397_v14 }
 0xa83   :  { %6612 = vmatpush1.bf16.msra.mxu0 %v7418_v23 }
 0xa84   :  { %6614 = vmatprep.subr.bf16.mxu0 %v7425_v28 }
 0xa87   :  { %6616 = vmatpush1.bf16.msra.mxu0 %v7458_v41 }
 0xa88   :  { %6618 = vmatprep.subr.bf16.mxu0 %v7464_v46 }
 0xa8b   :  { %6620 = vmatpush1.bf16.msra.mxu0 %v7470_v51 }
 0xaf2   :  { %v1061_v33 = vpop.permute.xlu1 %1060 }
 0xb51   :  { %v1032_v24 = vpop.f32.mrb[6].mxu0 }
 0xb52   :  { %v1033_v25 = vadd.f32 %v1032_v24, %v7531_v35  ;;  %v1034_v9 = vpop.f32.mrb[7].mxu0 }
 0xb53   :  { %v1035_v23 = vadd.f32 %v1034_v9, %v7539_v49 }
 0xb54   :  { %v1038_v26 = vrot.slane %v1033_v25, 3 }
 0xb55   :  { %v1048_v28 = vrot.slane %v1035_v23, 3 }
 0xb56   :  { %v1040_v29 = vadd.f32 %v1038_v26, %v7535_v39 }
 0xb58   :  { %v5607_v22 = vmul.f32 -1.442695, %v1040_v29 }
 0xb5a   :  { %6966 = vpow2.f32 %v5607_v22 }
 0xb64   :  { %v6967_v14 = vpop.eup %6966 }
 0xb65   :  { %v1044_v27 = vadd.f32 1.0, %v6967_v14 }
 0xb67   :  { %6968 = vrcp.f32 %v1044_v27 }
 0xb71   :  { %v6969_v41 = vpop.eup %6968 }
 0xb72   :  { %v1050_v2 = vmul.f32 %v6969_v41, %v1048_v28  ;;  %v1053_v30 = vsub.f32 1.0, %v6969_v41  ;;  %v1063_v36 = vmul.f32 %v6969_v41, %v1061_v33  ;;  %v1389_v33 = vld [vmem:[%s8610_s5 + $0x10] sm:$0xff] }
 0xb74   :  { %v1051_v46 = vadd.f32 %v1050_v2, %v7542_v55 }
 0xb76   :  { %6970 = vtanh.f32 %v1051_v46 }
 0xb80   :  { %v6971_v51 = vpop.eup %6970 }
 0xb81   :  { %1055 = vrot.lane.b32.xlu0 %v6971_v51, %s7257_s3 }
 0xbf3   :  { %v1056_v34 = vpop.permute.xlu0 %1055 }
 0xbf4   :  { %v1058_v37 = vmul.f32 %v1056_v34, %v1053_v30 }
 0xbf6   :  { %v1064_v42 = vadd.f32 %v1063_v36, %v1058_v37  ;;  %v1383_v36 = vld [vmem:[#allocation7] sm:$0xff] }
 0xbf8   :  { %v1068_v43 = vrot.slane %v1064_v42, 5  ;;  %v1364_v42 = vld [vmem:[#allocation10] sm:$0xff] }
 0xbfa   :  { %1069 = vrot.lane.b32.xlu0 %v1068_v43, %s7257_s3  ;;  %v1365_v43 = vld [vmem:[#allocation10 + $0x8] sm:$0xff] }
 0xc6c   :  { %v1070_v47 = vpop.permute.xlu0 %1069 }
 0xc6d   :  { %v7681_v50 = vsel %vm1066_vm15, %v1070_v47, %v7657_v20  ;;  %v7722_v47 = vpack.c.bf16 %v1365_v43, %v1364_v42  ;;  %vm7810_vm15 = vmand %vm561_vm12, %vm7758_vm4  ;;  %vm1917_vm12 = vcmask 253952  }
 0xc6e   :  { %5608 = vmatmul.mubr.msk.f32.vlgmr.msra.gmra.mrb[6].mxu1 %vm221_vm8, %v7681_v50  ;;  %v1181_v52 = vrot.slane %v7681_v50, 2 }
 0xc6f   :  { %5938 = vmatprep.mubr.msk.f32.mxu1 %vm120_vm0, %v1383_v36  ;;  %v568_v36 = vrot.slane %v7583_v38, %v7525_v32 }
 0xc70   :  { %1182 = vrot.lane.b32.xlu0 %v1181_v52, %s7257_s3  ;;  %v1385_v52 = vld [vmem:[#allocation7 + $0x10] sm:$0xff] }
 0xce2   :  { %v1183_v10 = vpop.permute.xlu0 %1182 }
 0xd41   :  { %v1154_v53 = vpop.f32.mrb[6].mxu1 }
 0xd42   :  { %v1155_v54 = vadd.f32 %v1154_v53, %v7531_v35  ;;  %v1156_v56 = vpop.f32.mrb[7].mxu1  ;;  %v1366_v53 = vld [vmem:[#allocation10 + $0x10] sm:$0xff] }
 0xd43   :  { %v1157_v62 = vadd.f32 %v1156_v56, %v7539_v49  ;;  %v1386_v56 = vld [vmem:[#allocation7 + $0x18] sm:$0xff] }
 0xd44   :  { %v1160_v57 = vrot.slane %v1155_v54, 2  ;;  %v1367_v54 = vld [vmem:[#allocation10 + $0x18] sm:$0xff] }
 0xd45   :  { %v1170_v1 = vrot.slane %v1157_v62, 2 }
 0xd46   :  { %v1162_v58 = vadd.f32 %v1160_v57, %v7535_v39  ;;  %v7728_v57 = vpack.c.bf16 %v1367_v54, %v1366_v53  ;;  %v569_v53 = vsel %vm7810_vm15, %v568_v36, 0.0 }
 0xd48   :  { %v5609_v59 = vmul.f32 -1.442695, %v1162_v58 }
 0xd4a   :  { %6972 = vpow2.f32 %v5609_v59 }
 0xd54   :  { %v6973_v60 = vpop.eup %6972 }
 0xd55   :  { %v1166_v61 = vadd.f32 1.0, %v6973_v60 }
 0xd57   :  { %6974 = vrcp.f32 %v1166_v61 }
 0xd61   :  { %v6975_v3 = vpop.eup %6974 }
 0xd62   :  { %v1172_v4 = vmul.f32 %v6975_v3, %v1170_v1  ;;  %v1175_v8 = vsub.f32 1.0, %v6975_v3  ;;  %v1185_v13 = vmul.f32 %v6975_v3, %v1183_v10 }
 0xd64   :  { %v1173_v6 = vadd.f32 %v1172_v4, %v7542_v55  ;;  %v5612_v4 = vld [vmem:[%s8610_s5 + $0x20] ss:$0 sm:$0xff] }
 0xd66   :  { %6976 = vtanh.f32 %v1173_v6 }
 0xd70   :  { %v6977_v7 = vpop.eup %6976 }
 0xd71   :  { %1177 = vrot.lane.b32.xlu1 %v6977_v7, %s7257_s3 }
 0xde3   :  { %v1178_v11 = vpop.permute.xlu1 %1177 }
 0xde4   :  { %v1180_v15 = vmul.f32 %v1178_v11, %v1175_v8 }
 0xde6   :  { %v1186_v16 = vadd.f32 %v1185_v13, %v1180_v15 }
 0xde8   :  { %v1190_v17 = vrot.slane %v1186_v16, 6 }
 0xdea   :  { %1191 = vrot.lane.b32.xlu1 %v1190_v17, %s7257_s3  ;;  %v7267_v17 = vmov 0  }
 0xdeb   :  { %v1309_v18 = vsel %vm423_vm9, 7, %v7267_v17  ;;  %vm7780_vm9 = vmand %vm701_vm7, %vm7758_vm4 }
 0xdec   :  { %vm1310_vm3 = vcmp.lt.s32.totalorder %v1309_v18, %v7553_v0  ;;  %vm692_vm7 = vmand %vm691_vm5, %vm7758_vm4  ;;  %vm1945_vm5 = vcmp.eq.s32.totalorder %v7547_v63, 0 }
 0xe5c   :  { %v1192_v21 = vpop.permute.xlu1 %1191 }
 0xe5d   :  { %v7697_v24 = vsel %vm1188_vm1, %v1192_v21, %v7681_v50  ;;  %vm831_vm1 = vcmp.eq.s32.totalorder %v7522_v31, 4 }
 0xe5e   :  { %5610 = vmatmul.mubr.msk.f32.vlgmr.msra.gmra.mrb[8].mxu0 %vm221_vm8, %v7697_v24  ;;  %v1303_v25 = vrot.slane %v7697_v24, 1 }
 0xe5f   :  { %5963 = vmatprep.mubr.msk.f32.mxu0 %vm7266_vm2, %v7256_v40 }
 0xe60   :  { %1304 = vrot.lane.b32.xlu1 %v1303_v25, %s7257_s3  ;;  %v7753_v25 = vld [vmem:[#allocation10 + $0x20] sm:$0x1] }
 0xed2   :  { %v1305_v59 = vpop.permute.xlu1 %1304 }
 0xf31   :  { %v1276_v9 = vpop.f32.mrb[8].mxu0 }
 0xf32   :  { %v1277_v26 = vadd.f32 %v1276_v9, %v7531_v35  ;;  %v1278_v29 = vpop.f32.mrb[9].mxu0  ;;  %v1387_v35 = vld [vmem:[%s8610_s5] sm:$0xff] }
 0xf33   :  { %v1279_v41 = vadd.f32 %v1278_v29, %v7539_v49  ;;  %v1390_v49 = vld [vmem:[%s8610_s5 + $0x18] sm:$0xff] }
 0xf34   :  { %v1282_v22 = vrot.slane %v1277_v26, 1  ;;  %v6625_v37 = vpack.c.bf16 %v1390_v49, %v1389_v33 }
 0xf35   :  { %v1292_v2 = vrot.slane %v1279_v41, 1  ;;  %v698_v41 = vrot.slane %v7608_v12, %v7525_v32 }
 0xf36   :  { %v1284_v14 = vadd.f32 %v1282_v22, %v7535_v39  ;;  %v1388_v39 = vld [vmem:[%s8610_s5 + $0x8] sm:$0xff]  ;;  %s7268_s5 = smov 96  }
 0xf37   :  { %v6621_v34 = vpack.c.bf16 %v1388_v39, %v1387_v35 }
 0xf38   :  { %v5611_v27 = vmul.f32 -1.442695, %v1284_v14 }
 0xf39   :  { %6622 = vmatprep.subr.bf16.mxu1 %v6621_v34 }
 0xf3a   :  { %6978 = vpow2.f32 %v5611_v27  ;;  %6624 = vmatpush3.bf16.msra.mxu1 %v6621_v34  ;;  %v438_v27 = vrot.slane %v7558_v5, %v7525_v32 }
 0xf3b   :  { %6626 = vmatprep.subr.bf16.mxu1 %v6625_v37 }
 0xf3e   :  { %6628 = vmatpush3.bf16.msra.mxu1 %v6625_v37 }
 0xf41   :  { %5939 = vmatmul.mubr.msk.f32.vlgmr.msra.gmra.mrb[8].mxu1 %vm120_vm0, %v1384_v45  ;;  %v575_v45 = vsel %vm7803_vm14, %v568_v36, 0.0 }
 0xf42   :  { %5941 = vmatprep.mubr.msk.f32.mxu1 %vm120_vm0, %v1385_v52  ;;  %v828_v52 = vrot.slane %v7633_v48, %v7525_v32  ;;  %v1076_v48 = vrot.slane %v7681_v50, %v7525_v32 }
 0xf44   :  { %v6979_v23 = vpop.eup %6978 }
 0xf45   :  { %v1288_v28 = vadd.f32 1.0, %v6979_v23  ;;  %5942 = vmatmul.mubr.msk.f32.gmra.mrb[10].mxu1 %vm120_vm0, %v1386_v56 }
 0xf46   :  { %5952 = vmatprep.mubr.msk.f32.mxu1 %vm7266_vm2, %v7256_v40 }
 0xf47   :  { %6980 = vrcp.f32 %v1288_v28  ;;  %v445_v28 = vsel %vm7768_vm6, %v438_v27, 0.0 }
 0xf51   :  { %v6981_v46 = vpop.eup %6980 }
 0xf52   :  { %v1294_v51 = vmul.f32 %v6981_v46, %v1292_v2  ;;  %v1297_v58 = vsub.f32 1.0, %v6981_v46  ;;  %v1307_v61 = vmul.f32 %v6981_v46, %v1305_v59  ;;  %v705_v2 = vsel %vm7780_vm9, %v698_v41, 0.0 }
 0xf54   :  { %v1295_v30 = vadd.f32 %v1294_v51, %v7542_v55  ;;  %v7265_v55 = vmov 0.0|0.0  }
 0xf55   :  { %6635 = vmatprep.subr.bf16.mxu0 %v7265_v55  ;;  %6629 = vmatprep.subr.bf16.mxu1 %v7265_v55 }
 0xf56   :  { %6982 = vtanh.f32 %v1295_v30  ;;  %6631 = vmatpush3.bf16.msra.mxu1 %v7722_v47 }
 0xf57   :  { %6632 = vmatprep.subr.bf16.mxu1 %v7265_v55 }
 0xf5a   :  { %6634 = vmatpush3.bf16.msra.mxu1 %v7728_v57 }
 0xf5b   :  { %5966 = vmatprep.subr.mxu1 %v7256_v40 }
 0xf60   :  { %v6983_v44 = vpop.eup %6982 }
 0xf61   :  { %1299 = vrot.lane.b32.xlu0 %v6983_v44, %s7257_s3  ;;  %v439_v44 = vsel %vm7795_vm13, %v438_v27, 0.0 }
 0xfd3   :  { %v1300_v60 = vpop.permute.xlu0 %1299 }
 0xfd4   :  { %v1302_v62 = vmul.f32 %v1300_v60, %v1297_v58 }
 0xfd6   :  { %v1308_v1 = vadd.f32 %v1307_v61, %v1302_v62  ;;  %v1079_v61 = vsel %vm692_vm7, %v1076_v48, 0.0 }
 0xfd8   :  { %v1312_v3 = vrot.slane %v1308_v1, 7 }
 0xfda   :  { %1313 = vrot.lane.b32.xlu0 %v1312_v3, %s7257_s3 }
0x1014   :  { %v5940_v6 = vpop.f32.mrb[8].mxu1 }
0x1015   :  { %v7742_v7 = vadd.f32 %v5940_v6, %v5612_v4  ;;  %v1474_v8 = vpop.f32.mrb[9].mxu1  ;;  %v699_v6 = vsel %vm692_vm7, %v698_v41, 0.0  ;;  %vm2460_vm7 = vcmp.eq.s32.totalorder %v7547_v63, 1 }
0x1016   :  { %v7787_v46 = vadd.f32 %v5612_v4, %v1474_v8 }
0x1018   :  { %v5943_v10 = vpop.f32.mrb[10].mxu1 }
0x1019   :  { %v1490_v11 = vadd.f32 %v5943_v10, %v5612_v4  ;;  %v1484_v13 = vpop.f32.mrb[11].mxu1 }
0x101a   :  { %v1485_v15 = vadd.f32 %v5612_v4, %v1484_v13  ;;  %v829_v13 = vsel %vm822_vm11, %v828_v52, 0.0 }
0x101c   :  { %v7744_v16 = vpack.c.bf16 %v1490_v11, %v1485_v15  ;;  %v954_v15 = vrot.slane %v7657_v20, %v7525_v32 }
0x104c   :  { %v1314_v19 = vpop.permute.xlu0 %1313 }
0x104d   :  { %v1316_v21 = vsel %vm1310_vm3, %v1314_v19, %v7697_v24  ;;  %vm7826_vm3 = vmand %vm831_vm1, %vm7758_vm4  ;;  %vm1362_vm4 = vcmp.lt.s32.totalorder %v7547_v63, %v7553_v0 }
0x104e   :  { %5953 = vmatmul.mubr.msk.f32.vlgmr.msra.gmra.mrb[12].mxu1 %vm120_vm0, %v1316_v21  ;;  %v835_v58 = vsel %vm7826_vm3, %v828_v52, 0.0  ;;  %v1592_v59 = vrot.slane %v1316_v21, 7  ;;  %v1320_v60 = vrot.slane %v1316_v21, %v7525_v32 }
0x104f   :  { %5968 = vmatprep.mubr.msk.f32.mxu1 %vm7266_vm2, %v7256_v40 }
0x1050   :  { %v1323_v62 = vsel %vm7795_vm13, %v1320_v60, 0.0  ;;  %v1321_v42 = vsel %vm7768_vm6, %v1320_v60, 0.0  ;;  %vm1674_vm6 = vcmask 57344  }
0x1121   :  { %v1562_v9 = vpop.f32.mrb[12].mxu1 }
0x1122   :  { %v1563_v26 = vadd.f32 %v1562_v9, %v7753_v25  ;;  %v5954_v29 = vpop.f32.mrb[13].mxu1  ;;  %v955_v9 = vsel %vm7826_vm3, %v954_v15, 0.0 }
0x1123   :  { %v957_v29 = vsel %vm822_vm11, %v954_v15, 0.0  ;;  %v1371_v15 = vld [vmem:[%s8612_s7 + $0x10] sm:$0xff] }
0x1124   :  { %v1567_v14 = vrot.slane %v1563_v26, 7  ;;  %v1198_v26 = vrot.slane %v7697_v24, %v7525_v32  ;;  %v1077_v32 = vsel %vm7780_vm9, %v1076_v48, 0.0  ;;  %vm1686_vm9 = vcmask 64512  }
0x1126   :  { %1576 = vrot.lane.b32.xlu1 %v1567_v14, %s7257_s3  ;;  %v1569_v51 = vadd.f32 %v1567_v14, %v7787_v46  ;;  %v1201_v22 = vsel %vm7810_vm15, %v1198_v26, 0.0 }
0x1128   :  { %v5618_v30 = vmul.f32 -1.442695, %v1569_v51 }
0x112a   :  { %447 = vrot.lane.b32.xlu1 %v445_v28, %s7268_s5  ;;  %6984 = vpow2.f32 %v5618_v30 }
0x112e   :  { %707 = vrot.lane.b32.xlu1 %v705_v2, %s7268_s5 }
0x1134   :  { %v6985_v12 = vpop.eup %6984 }
0x1135   :  { %v1573_v35 = vadd.f32 1.0, %v6985_v12 }
0x1137   :  { %6986 = vrcp.f32 %v1573_v35 }
0x1141   :  { %v6987_v39 = vpop.eup %6986 }
0x1142   :  { %v1586_v14 = vsub.f32 1.0, %v6987_v39 }
0x1198   :  { %v1577_v33 = vpop.permute.xlu1 %1576 }
0x1199   :  { %v1579_v34 = vmul.f32 %v6987_v39, %v1577_v33 }
0x119b   :  { %1581 = vrot.lane.b32.xlu0 %v1579_v34, %s7257_s3 }
0x119c   :  { %v448_v43 = vpop.permute.xlu1 %447 }
0x119d   :  { %v450_v38 = vadd.f32 %v448_v43, %v439_v44 }
0x119f   :  { %577 = vrot.lane.b32.xlu0 %v575_v45, %s7268_s5  ;;  %v570_v56 = vadd.f32 %v569_v53, %v450_v38 }
0x11a0   :  { %v708_v10 = vpop.permute.xlu1 %707 }
0x11a3   :  { %837 = vrot.lane.b32.xlu0 %v835_v58, %s7268_s5  ;;  %v7269_v58 = vmov -1e+30  }
0x11a7   :  { %1593 = vrot.lane.b32.xlu0 %v1592_v59, %s7255_s4  ;;  %v7890_v59 = vsel %vm1362_vm4, 0.0, %v7269_v58 }
0x11ab   :  { %1081 = vrot.lane.b32.xlu0 %v1079_v61, %s7268_s5 }
0x11af   :  { %1325 = vrot.lane.b32.xlu0 %v1323_v62, %s7268_s5 }
0x120d   :  { %v1582_v1 = vpop.permute.xlu0 %1581 }
0x120e   :  { %v1584_v50 = vadd.f32 %v1582_v1, %v7787_v46 }
0x1210   :  { %6988 = vtanh.f32 %v1584_v50 }
0x1211   :  { %v578_v3 = vpop.permute.xlu0 %577 }
0x1212   :  { %v580_v4 = vadd.f32 %v578_v3, %v570_v56 }
0x1214   :  { %v700_v8 = vadd.f32 %v699_v6, %v580_v4 }
0x1215   :  { %v838_v18 = vpop.permute.xlu0 %837 }
0x1216   :  { %v710_v11 = vadd.f32 %v708_v10, %v700_v8 }
0x1218   :  { %v830_v17 = vadd.f32 %v829_v13, %v710_v11  ;;  %v1369_v11 = vld [vmem:[%s8612_s7] sm:$0xff]  ;;  %v1370_v13 = vld [vmem:[%s8612_s7 + $0x8] sm:$0xff] }
0x1219   :  { %v1594_v20 = vpop.permute.xlu0 %1593 }
0x121a   :  { %v6989_v19 = vpop.eup %6988  ;;  %v840_v21 = vadd.f32 %v838_v18, %v830_v17  ;;  %v1596_v28 = vmul.f32 %v6987_v39, %v1594_v20  ;;  %v1199_v39 = vsel %vm7803_vm14, %v1198_v26, 0.0  ;;  %v7909_v17 = vpack.c.bf16 %v1370_v13, %v1369_v11  ;;  %v1372_v18 = vld [vmem:[%s8612_s7 + $0x18] sm:$0xff]  ;;  %v1375_v26 = vld [vmem:[%s8612_s7 + $0x30] sm:$0xff] }
0x121b   :  { %1588 = vrot.lane.b32.xlu1 %v6989_v19, %s7268_s5  ;;  %v7915_v19 = vpack.c.bf16 %v1372_v18, %v1371_v15 }
0x121c   :  { %v956_v31 = vadd.f32 %v955_v9, %v840_v21  ;;  %v1373_v21 = vld [vmem:[%s8612_s7 + $0x20] sm:$0xff]  ;;  %v1374_v9 = vld [vmem:[%s8612_s7 + $0x28] sm:$0xff] }
0x121d   :  { %v1082_v35 = vpop.permute.xlu0 %1081 }
0x121f   :  { %959 = vrot.lane.b32.xlu1 %v957_v29, %s7268_s5  ;;  %v1376_v29 = vld [vmem:[%s8612_s7 + $0x38] sm:$0xff] }
0x1221   :  { %v1326_v44 = vpop.permute.xlu0 %1325 }
0x1223   :  { %1203 = vrot.lane.b32.xlu1 %v1201_v22, %s7268_s5  ;;  %v7935_v22 = vpack.c.bf16 %v1376_v29, %v1375_v26 }
0x128d   :  { %v1589_v27 = vpop.permute.xlu1 %1588 }
0x128e   :  { %v1591_v41 = vmul.f32 %v1589_v27, %v1586_v14 }
0x1290   :  { %v7859_v2 = vadd.f32 %v1596_v28, %v1591_v41 }
0x1291   :  { %v960_v51 = vpop.permute.xlu1 %959 }
0x1292   :  { %v962_v30 = vadd.f32 %v960_v51, %v956_v31  ;;  %v1599_v12 = vrot.slane %v7859_v2, 1  ;;  %v7925_v31 = vpack.c.bf16 %v1374_v9, %v1373_v21 }
0x1294   :  { %v1078_v24 = vadd.f32 %v1077_v32, %v962_v30  ;;  %1600 = vrot.lane.b32.xlu1 %v1599_v12, %s7268_s5  ;;  %v1378_v32 = vld [vmem:[%s8613_s8] sm:$0xff] }
0x1295   :  { %v1204_v49 = vpop.permute.xlu1 %1203 }
0x1296   :  { %v1084_v33 = vadd.f32 %v1082_v35, %v1078_v24  ;;  %v1379_v24 = vld [vmem:[%s8613_s8 + $0x8] sm:$0xff] }
0x1297   :  { %v7960_v35 = vpack.c.bf16 %v1379_v24, %v1378_v32 }
0x1298   :  { %v1200_v34 = vadd.f32 %v1199_v39, %v1084_v33  ;;  %v1380_v33 = vld [vmem:[%s8613_s8 + $0x10] sm:$0xff]  ;;  %v1381_v39 = vld [vmem:[%s8613_s8 + $0x18] sm:$0xff] }
0x129a   :  { %v1206_v36 = vadd.f32 %v1204_v49, %v1200_v34  ;;  %v7970_v34 = vpack.c.bf16 %v1381_v39, %v1380_v33  ;;  %v7977_v49 = vld [vmem:[%s8612_s7 + $0x40] sm:$0x1] }
0x129c   :  { %v1322_v43 = vadd.f32 %v1321_v42, %v1206_v36 }
0x129e   :  { %v7871_v5 = vadd.f32 %v1326_v44, %v1322_v43 }
0x12a0   :  { %5967 = vmatpush3.msra.mxu1 %v7871_v5  ;;  %v1329_v38 = vsel %vm120_vm0, %v7871_v5, 0.0 }
0x12a1   :  { %1330 = vxpose.xlu0.b32.start.end [1/1] (short) (narrow) %v1329_v38, 32  ;;  %6641 = vmatprep.subr.bf16.mxu1 %v7265_v55 }
0x1306   :  { %v1601_v56 = vpop.permute.xlu1 %1600 }
0x1321   :  { %v1346_v37 = vpop.trf.xlu0 }
0x1325   :  { %v1347_v45 = vpop.trf.xlu0 }
0x1326   :  { %v7877_v52 = vpack.c.bf16 %v1347_v45, %v1346_v37  ;;  %v7982_v45 = vpack.c.bf16 %v7742_v7, %v7787_v46 }
0x1328   :  { %6637 = vmatpush3.bf16.msra.mxu0 %v7877_v52 }
0x1329   :  { %v1348_v23 = vpop.trf.xlu0  ;;  %6638 = vmatprep.subr.bf16.mxu0 %v7265_v55 }
0x132d   :  { %v1349_v53 = vpop.trf.xlu0 }
0x132e   :  { %v7881_v54 = vpack.c.bf16 %v1349_v53, %v1348_v23  ;;  %v7994_v23 = vld [vmem:[%s8613_s8 + $0x20] sm:$0x1] }
0x1330   :  { %6640 = vmatpush3.bf16.msra.mxu0 %v7881_v54 }
0x1331   :  { %6653 = vmatprep.subr.bf16.mxu0 %v7265_v55 }
0x1333   :  { %5964 = vmatmul.mubr.msk.f32.vlgmr.msra.gmra.mrb[10].mxu0 %vm120_vm0, %v1601_v56 }
0x1334   :  { %5998 = vmatprep.mubr.msk.f32.mxu0 %vm7266_vm2, %v7256_v40  ;;  %6655 = vmatpush3.bf16.msra.mxu0 %v7960_v35 }
0x1335   :  { %6656 = vmatprep.subr.bf16.mxu0 %v7265_v55 }
0x1338   :  { %6658 = vmatpush3.bf16.msra.mxu0 %v7970_v34 }
0x1339   :  { %6659 = vmatprep.subr.bf16.mxu0 %v7265_v55 }
0x1406   :  { %v1670_v48 = vpop.f32.mrb[10].mxu0 }
0x1407   :  { %v1671_v60 = vadd.f32 %v1670_v48, %v7890_v59  ;;  %v5965_v61 = vpop.f32.mrb[11].mxu0 }
0x1409   :  { %v1675_v62 = vsel %vm1674_vm6, %v1671_v60, -inf }
0x140a   :  { %1676 = vmax.xlane.f32.xlu1 %v1675_v62 }
0x141b   :  { %1760 = vrot.lane.b32.xlu1 %v7859_v2, %s7268_s5 }
0x1497   :  { %v1677_v1 = vpop.xlane.xlu1 %1676 }
0x1498   :  { %v1678_v50 = vsub.f32 %v1671_v60, %v1677_v1 }
0x149a   :  { %v1679_v3 = vmul.f32 1.442695, %v1678_v50 }
0x149b   :  { %v1761_v28 = vpop.permute.xlu1 %1760 }
0x149c   :  { %6990 = vpow2.f32 %v1679_v3 }
0x14a6   :  { %v6991_v4 = vpop.eup %6990 }
0x14a7   :  { %v1681_v0 = vsel %vm1674_vm6, %v6991_v4, 0.0 }
0x14a8   :  { %1682 = vadd.xlane.f32.xlu0 %v1681_v0 }
0x1535   :  { %v1683_v6 = vpop.xlane.xlu0 %1682 }
0x1536   :  { %6992 = vrcp.f32 %v1683_v6 }
0x1540   :  { %v6993_v8 = vpop.eup %6992 }
0x1541   :  { %v1685_v10 = vmul.f32 %v6993_v8, %v6991_v4 }
0x1543   :  { %5969 = vmatmul.mubr.msk.f32.vlgmr.msra.gmra.mrb[14].mxu1 %vm1686_vm9, %v1685_v10 }
0x1544   :  { %5987 = vmatprep.mubr.msk.f32.mxu1 %vm7266_vm2, %v7256_v40  ;;  %6643 = vmatpush3.bf16.msra.mxu1 %v7909_v17 }
0x1545   :  { %6644 = vmatprep.subr.bf16.mxu1 %v7265_v55 }
0x1548   :  { %6646 = vmatpush3.bf16.msra.mxu1 %v7915_v19 }
0x1549   :  { %6647 = vmatprep.subr.bf16.mxu1 %v7265_v55 }
0x154c   :  { %6649 = vmatpush3.bf16.msra.mxu1 %v7925_v31 }
0x154d   :  { %6650 = vmatprep.subr.bf16.mxu1 %v7265_v55 }
0x1550   :  { %6652 = vmatpush3.bf16.msra.mxu1 %v7935_v22 }
0x1551   :  { %6665 = vmatprep.subr.bf16.mxu1 %v7265_v55 }
0x1616   :  { %v1756_v20 = vpop.f32.mrb[14].mxu1 }
0x1617   :  { %v1764_v14 = vrot.slane %v1756_v20, 7  ;;  %v5970_v27 = vpop.f32.mrb[15].mxu1 }
0x1619   :  { %1765 = vrot.lane.b32.xlu1 %v1764_v14, %s7255_s4 }
0x168b   :  { %v1766_v41 = vpop.permute.xlu1 %1765 }
0x168c   :  { %v1768_v51 = vsel %vm120_vm0, %v1761_v28, %v1766_v41 }
0x168d   :  { %v1770_v30 = vrot.slane %v1768_v51, 1 }
0x168f   :  { %5988 = vmatmul.mubr.msk.f32.vlgmr.msra.gmra.mrb[16].mxu1 %vm221_vm8, %v1770_v30 }
0x1690   :  { %6667 = vmatpush3.bf16.msra.mxu1 %v7722_v47  ;;  %6020 = vmatprep.mubr.msk.f32.mxu1 %vm7266_vm2, %v7256_v40 }
0x1691   :  { %6668 = vmatprep.subr.bf16.mxu1 %v7265_v55 }
0x1694   :  { %6670 = vmatpush3.bf16.msra.mxu1 %v7728_v57 }
0x1695   :  { %6034 = vmatprep.subr.mxu1 %v7256_v40 }
0x1697   :  { %6021 = vmatmul.mubr.msk.f32.vlgmr.msra.gmra.mrb[18].mxu1 %vm120_vm0, %v1601_v56 }
0x1698   :  { %6035 = vmatpush3.msra.mxu1 %v7871_v5  ;;  %6036 = vmatprep.mubr.msk.f32.mxu1 %vm7266_vm2, %v7256_v40 }
0x1699   :  { %6689 = vmatprep.subr.bf16.mxu1 %v7265_v55 }
0x1762   :  { %v1839_v36 = vpop.f32.mrb[16].mxu1 }
0x1763   :  { %v1840_v42 = vadd.f32 %v1839_v36, %v7977_v49  ;;  %v5989_v43 = vpop.f32.mrb[17].mxu1 }
0x1765   :  { %6994 = vtanh.f32 %v1840_v42 }
0x176a   :  { %v2090_v44 = vpop.f32.mrb[18].mxu1 }
0x176b   :  { %v6022_v38 = vpop.f32.mrb[19].mxu1  ;;  %v2091_v58 = vadd.f32 %v2090_v44, %v7753_v25 }
0x176f   :  { %v6995_v37 = vpop.eup %6994 }
0x1770   :  { %5999 = vmatmul.mubr.msk.f32.vlgmr.msra.gmra.mrb[12].mxu0 %vm120_vm0, %v6995_v37 }
0x1771   :  { %6661 = vmatpush3.bf16.msra.mxu0 %v7982_v45  ;;  %6009 = vmatprep.mubr.msk.f32.mxu0 %vm7266_vm2, %v7256_v40 }
0x1772   :  { %6662 = vmatprep.subr.bf16.mxu0 %v7265_v55 }
0x1775   :  { %6664 = vmatpush3.bf16.msra.mxu0 %v7744_v16 }
0x1776   :  { %6671 = vmatprep.subr.bf16.mxu0 %v7265_v55 }
0x1843   :  { %v1913_v7 = vpop.f32.mrb[12].mxu0 }
0x1844   :  { %v7997_v46 = vadd.f32 %v1913_v7, %v7994_v23  ;;  %v6000_v53 = vpop.f32.mrb[13].mxu0 }
0x1846   :  { %v1918_v56 = vsel %vm1917_vm12, %v7997_v46, -inf }
0x1847   :  { %1919 = vmax.xlane.f32.xlu1 %v1918_v56 }
0x1858   :  { %2102 = vrot.lane.b32.xlu1 %v2091_v58, %s7257_s3 }
0x18d4   :  { %v8003_v48 = vpop.xlane.xlu1 %1919 }
0x18d5   :  { %vm1928_vm13 = vcmp.eq.f32.partialorder %v7997_v46, %v8003_v48 }
0x18d6   :  { %v1929_v60 = vsel %vm1928_vm13, %v7547_v63, 32  ;;  %vm2974_vm13 = vcmp.eq.s32.totalorder %v7547_v63, 2 }
0x18d7   :  { %v1930_v61 = vsel %vm1917_vm12, %v1929_v60, 2147483647 }
0x18d8   :  { %v1932_v62 = vshra.s32 %v1930_v61, 16  ;;  %v1931_v50 = vand.u32 65535, %v1930_v61  ;;  %v2103_v27 = vpop.permute.xlu1 %2102 }
0x18da   :  { %v1934_v1 = vcvt.s32.f32 %v1932_v62  ;;  %v1933_v4 = vcvt.s32.f32 %v1931_v50 }
0x18dc   :  { %1935 = vmin.xlane.f32.xlu0 %v1934_v1 }
0x1969   :  { %v1936_v3 = vpop.xlane.xlu0 %1935 }
0x196a   :  { %vm1937_vm14 = vcmp.eq.f32.partialorder %v1934_v1, %v1936_v3  ;;  %v1942_v6 = vcvt.f32.s32 %v1936_v3 }
0x196b   :  { %v1938_v0 = vsel %vm1937_vm14, %v1933_v4, inf }
0x196c   :  { %1939 = vmin.xlane.f32.xlu0 %v1938_v0  ;;  %v1943_v10 = vshll.u32 %v1942_v6, 16 }
0x19f9   :  { %v1940_v8 = vpop.xlane.xlu0 %1939 }
0x19fa   :  { %v1941_v11 = vcvt.f32.s32 %v1940_v8 }
0x19fc   :  { %v8009_v13 = vadd.s32 %v1943_v10, %v1941_v11 }
0x19fe   :  { %vm1948_vm15 = vcmp.eq.s32.totalorder %v7547_v63, %v8009_v13 }
0x19ff   :  { %v5623_v15 = vsel %vm1948_vm15, 1.0, %v7256_v40 }
0x1a00   :  { %6010 = vmatmul.mubr.msk.f32.vlgmr.msra.gmra.mrb[14].mxu0 %vm120_vm0, %v5623_v15 }
0x1a01   :  { %6673 = vmatpush3.bf16.msra.mxu0 %v7877_v52  ;;  %6031 = vmatprep.mubr.msk.f32.mxu0 %vm7266_vm2, %v7256_v40 }
0x1a02   :  { %6674 = vmatprep.subr.bf16.mxu0 %v7265_v55 }
0x1a05   :  { %6676 = vmatpush3.bf16.msra.mxu0 %v7881_v54 }
0x1a06   :  { %6677 = vmatprep.subr.bf16.mxu0 %v7265_v55 }
0x1ad3   :  { %v2020_v18 = vpop.f32.mrb[14].mxu0 }
0x1ad4   :  { %v2094_v21 = vadd.f32 %v2091_v58, %v2020_v18  ;;  %v6011_v9 = vpop.f32.mrb[15].mxu0 }
0x1ad6   :  { %v5626_v26 = vmul.f32 -1.442695, %v2094_v21 }
0x1ad8   :  { %6996 = vpow2.f32 %v5626_v26 }
0x1ae2   :  { %v6997_v29 = vpop.eup %6996 }
0x1ae3   :  { %v2098_v20 = vadd.f32 1.0, %v6997_v29 }
0x1ae5   :  { %6998 = vrcp.f32 %v2098_v20 }
0x1aef   :  { %v6999_v14 = vpop.eup %6998 }
0x1af0   :  { %v2105_v28 = vmul.f32 %v6999_v14, %v2103_v27  ;;  %v2112_v32 = vsub.f32 1.0, %v6999_v14  ;;  %v2119_v33 = vmul.f32 %v6999_v14, %v1599_v12 }
0x1af2   :  { %2107 = vrot.lane.b32.xlu0 %v2105_v28, %s7257_s3 }
0x1b64   :  { %v2108_v41 = vpop.permute.xlu0 %2107 }
0x1b65   :  { %v2110_v51 = vadd.f32 %v2108_v41, %v2020_v18 }
0x1b67   :  { %7000 = vtanh.f32 %v2110_v51 }
0x1b71   :  { %v7001_v30 = vpop.eup %7000 }
0x1b72   :  { %2114 = vrot.lane.b32.xlu1 %v7001_v30, %s7268_s5 }
0x1be4   :  { %v2115_v24 = vpop.permute.xlu1 %2114 }
0x1be5   :  { %v2117_v39 = vmul.f32 %v2115_v24, %v2112_v32 }
0x1be7   :  { %v8025_v36 = vadd.f32 %v2119_v33, %v2117_v39 }
0x1be9   :  { %2122 = vrot.lane.b32.xlu1 %v8025_v36, %s7268_s5 }
0x1c5b   :  { %v2123_v42 = vpop.permute.xlu1 %2122 }
0x1c5c   :  { %6032 = vmatmul.mubr.msk.f32.vlgmr.msra.gmra.mrb[16].mxu0 %vm120_vm0, %v2123_v42 }
0x1c5d   :  { %6679 = vmatpush3.bf16.msra.mxu0 %v7909_v17  ;;  %6055 = vmatprep.mubr.msk.f32.mxu0 %vm7266_vm2, %v7256_v40 }
0x1c5e   :  { %6680 = vmatprep.subr.bf16.mxu0 %v7265_v55 }
0x1c61   :  { %6682 = vmatpush3.bf16.msra.mxu0 %v7915_v19 }
0x1c62   :  { %6683 = vmatprep.subr.bf16.mxu0 %v7265_v55 }
0x1c65   :  { %6685 = vmatpush3.bf16.msra.mxu0 %v7925_v31 }
0x1c66   :  { %6686 = vmatprep.subr.bf16.mxu0 %v7265_v55 }
0x1c69   :  { %6688 = vmatpush3.bf16.msra.mxu0 %v7935_v22 }
0x1c6a   :  { %6701 = vmatprep.subr.bf16.mxu0 %v7265_v55 }
0x1d2f   :  { %v2192_v2 = vpop.f32.mrb[16].mxu0 }
0x1d30   :  { %v2193_v12 = vadd.f32 %v2192_v2, %v7890_v59  ;;  %v6033_v43 = vpop.f32.mrb[17].mxu0 }
0x1d32   :  { %v2196_v44 = vsel %vm1674_vm6, %v2193_v12, -inf }
0x1d33   :  { %2197 = vmax.xlane.f32.xlu0 %v2196_v44 }
0x1dc0   :  { %v2198_v38 = vpop.xlane.xlu0 %2197 }
0x1dc1   :  { %v2199_v37 = vsub.f32 %v2193_v12, %v2198_v38  ;;  %v1946_v12 = vsel %vm1945_vm5, %v8009_v13, 0 }
0x1dc3   :  { %v2200_v7 = vmul.f32 1.442695, %v2199_v37 }
0x1dc5   :  { %7002 = vpow2.f32 %v2200_v7 }
0x1dcf   :  { %v7003_v53 = vpop.eup %7002 }
0x1dd0   :  { %v2202_v56 = vsel %vm1674_vm6, %v7003_v53, 0.0 }
0x1dd1   :  { %2203 = vadd.xlane.f32.xlu1 %v2202_v56 }
0x1e5e   :  { %v2204_v58 = vpop.xlane.xlu1 %2203 }
0x1e5f   :  { %7004 = vrcp.f32 %v2204_v58 }
0x1e69   :  { %v7005_v60 = vpop.eup %7004 }
0x1e6a   :  { %v2206_v61 = vmul.f32 %v7005_v60, %v7003_v53 }
0x1e6c   :  { %6037 = vmatmul.mubr.msk.f32.vlgmr.msra.gmra.mrb[20].mxu1 %vm1686_vm9, %v2206_v61 }
0x1e6d   :  { %6691 = vmatpush3.bf16.msra.mxu1 %v7960_v35  ;;  %6066 = vmatprep.mubr.msk.f32.mxu1 %vm7266_vm2, %v7256_v40 }
0x1e6e   :  { %6692 = vmatprep.subr.bf16.mxu1 %v7265_v55 }
0x1e71   :  { %6694 = vmatpush3.bf16.msra.mxu1 %v7970_v34 }
0x1e72   :  { %6695 = vmatprep.subr.bf16.mxu1 %v7265_v55 }
0x1f3f   :  { %v2276_v62 = vpop.f32.mrb[20].mxu1 }
0x1f40   :  { %2282 = vrot.lane.b32.xlu0 %v2276_v62, %s7255_s4  ;;  %v6038_v1 = vpop.f32.mrb[21].mxu1 }
0x1fb2   :  { %v2283_v50 = vpop.permute.xlu0 %2282 }
0x1fb3   :  { %v2285_v3 = vsel %vm120_vm0, %v2123_v42, %v2283_v50 }
0x1fb4   :  { %6056 = vmatmul.mubr.msk.f32.vlgmr.msra.gmra.mrb[18].mxu0 %vm221_vm8, %v2285_v3 }
0x1fb5   :  { %6703 = vmatpush3.bf16.msra.mxu0 %v7722_v47  ;;  %6088 = vmatprep.mubr.msk.f32.mxu0 %vm7266_vm2, %v7256_v40 }
0x1fb6   :  { %6704 = vmatprep.subr.bf16.mxu0 %v7265_v55 }
0x1fb9   :  { %6706 = vmatpush3.bf16.msra.mxu0 %v7728_v57 }
0x1fba   :  { %6725 = vmatprep.subr.bf16.mxu0 %v7265_v55 }
0x1fbc   :  { %6089 = vmatmul.mubr.msk.f32.vlgmr.msra.gmra.mrb[20].mxu0 %vm120_vm0, %v2123_v42 }
0x1fbd   :  { %6727 = vmatpush3.bf16.msra.mxu0 %v7960_v35  ;;  %6134 = vmatprep.mubr.msk.f32.mxu0 %vm7266_vm2, %v7256_v40 }
0x1fbe   :  { %6728 = vmatprep.subr.bf16.mxu0 %v7265_v55 }
0x1fc1   :  { %6730 = vmatpush3.bf16.msra.mxu0 %v7970_v34 }
0x1fc2   :  { %6731 = vmatprep.subr.bf16.mxu0 %v7265_v55 }
0x2087   :  { %v2355_v4 = vpop.f32.mrb[18].mxu0 }
0x2088   :  { %v2356_v0 = vadd.f32 %v2355_v4, %v7977_v49  ;;  %v6057_v6 = vpop.f32.mrb[19].mxu0 }
0x208a   :  { %7006 = vtanh.f32 %v2356_v0 }
0x208f   :  { %v2605_v8 = vpop.f32.mrb[20].mxu0 }
0x2090   :  { %v6090_v10 = vpop.f32.mrb[21].mxu0  ;;  %v2606_v32 = vadd.f32 %v2605_v8, %v7753_v25 }
0x2094   :  { %v7007_v11 = vpop.eup %7006 }
0x2095   :  { %6067 = vmatmul.mubr.msk.f32.vlgmr.msra.gmra.mrb[22].mxu1 %vm120_vm0, %v7007_v11 }
0x2096   :  { %6697 = vmatpush3.bf16.msra.mxu1 %v7982_v45  ;;  %6077 = vmatprep.mubr.msk.f32.mxu1 %vm7266_vm2, %v7256_v40 }
0x2097   :  { %6698 = vmatprep.subr.bf16.mxu1 %v7265_v55 }
0x209a   :  { %6700 = vmatpush3.bf16.msra.mxu1 %v7744_v16 }
0x209b   :  { %6707 = vmatprep.subr.bf16.mxu1 %v7265_v55 }
0x2168   :  { %v2429_v15 = vpop.f32.mrb[22].mxu1 }
0x2169   :  { %v8075_v18 = vadd.f32 %v2429_v15, %v7994_v23  ;;  %v6068_v21 = vpop.f32.mrb[23].mxu1 }
0x216b   :  { %v2433_v9 = vsel %vm1917_vm12, %v8075_v18, -inf }
0x216c   :  { %2434 = vmax.xlane.f32.xlu1 %v2433_v9 }
0x21f9   :  { %v8079_v26 = vpop.xlane.xlu1 %2434 }
0x21fa   :  { %vm2443_vm1 = vcmp.eq.f32.partialorder %v8075_v18, %v8079_v26 }
0x21fb   :  { %v2444_v29 = vsel %vm2443_vm1, %v7547_v63, 32 }
0x21fc   :  { %v2445_v20 = vsel %vm1917_vm12, %v2444_v29, 2147483647 }
0x21fd   :  { %v2447_v14 = vshra.s32 %v2445_v20, 16  ;;  %v2446_v28 = vand.u32 65535, %v2445_v20 }
0x21ff   :  { %v2449_v27 = vcvt.s32.f32 %v2447_v14  ;;  %v2448_v51 = vcvt.s32.f32 %v2446_v28 }
0x2201   :  { %2450 = vmin.xlane.f32.xlu1 %v2449_v27 }
0x228e   :  { %v2451_v41 = vpop.xlane.xlu1 %2450 }
0x228f   :  { %vm2452_vm3 = vcmp.eq.f32.partialorder %v2449_v27, %v2451_v41  ;;  %v2457_v24 = vcvt.f32.s32 %v2451_v41 }
0x2290   :  { %v2453_v30 = vsel %vm2452_vm3, %v2448_v51, inf  ;;  %vm3488_vm3 = vcmp.eq.s32.totalorder %v7547_v63, 3 }
0x2291   :  { %2454 = vmin.xlane.f32.xlu1 %v2453_v30  ;;  %v2458_v39 = vshll.u32 %v2457_v24, 16 }
0x22a2   :  { %2617 = vrot.lane.b32.xlu1 %v2606_v32, %s7257_s3 }
0x231e   :  { %v2455_v33 = vpop.xlane.xlu1 %2454 }
0x231f   :  { %v2456_v42 = vcvt.f32.s32 %v2455_v33 }
0x2321   :  { %v2459_v2 = vadd.s32 %v2458_v39, %v2456_v42 }
0x2322   :  { %v2618_v60 = vpop.permute.xlu1 %2617 }
0x2323   :  { %v8094_v43 = vsel %vm2460_vm7, %v2459_v2, %v1946_v12  ;;  %vm2463_vm10 = vcmp.eq.s32.totalorder %v7547_v63, %v2459_v2 }
0x2324   :  { %v5631_v44 = vsel %vm2463_vm10, 1.0, %v7256_v40 }
0x2325   :  { %6078 = vmatmul.mubr.msk.f32.vlgmr.msra.gmra.mrb[24].mxu1 %vm120_vm0, %v5631_v44 }
0x2326   :  { %6709 = vmatpush3.bf16.msra.mxu1 %v7877_v52  ;;  %6099 = vmatprep.mubr.msk.f32.mxu1 %vm7266_vm2, %v7256_v40 }
0x2327   :  { %6710 = vmatprep.subr.bf16.mxu1 %v7265_v55 }
0x232a   :  { %6712 = vmatpush3.bf16.msra.mxu1 %v7881_v54 }
0x232b   :  { %6102 = vmatprep.subr.mxu1 %v7256_v40 }
0x23f8   :  { %v2535_v13 = vpop.f32.mrb[24].mxu1 }
0x23f9   :  { %v2609_v38 = vadd.f32 %v2606_v32, %v2535_v13  ;;  %v6079_v37 = vpop.f32.mrb[25].mxu1 }
0x23fb   :  { %v5634_v7 = vmul.f32 -1.442695, %v2609_v38 }
0x23fd   :  { %7008 = vpow2.f32 %v5634_v7 }
0x2407   :  { %v7009_v53 = vpop.eup %7008 }
0x2408   :  { %v2613_v56 = vadd.f32 1.0, %v7009_v53 }
0x240a   :  { %7010 = vrcp.f32 %v2613_v56 }
0x2414   :  { %v7011_v58 = vpop.eup %7010 }
0x2415   :  { %v2620_v61 = vmul.f32 %v7011_v58, %v2618_v60  ;;  %v2627_v3 = vsub.f32 1.0, %v7011_v58  ;;  %v2633_v0 = vmul.f32 %v7011_v58, %v8025_v36 }
0x2417   :  { %2622 = vrot.lane.b32.xlu0 %v2620_v61, %s7257_s3 }
0x2489   :  { %v2623_v62 = vpop.permute.xlu0 %2622 }
0x248a   :  { %v2625_v1 = vadd.f32 %v2623_v62, %v2535_v13 }
0x248c   :  { %7012 = vtanh.f32 %v2625_v1 }
0x2496   :  { %v7013_v50 = vpop.eup %7012 }
0x2497   :  { %2629 = vrot.lane.b32.xlu0 %v7013_v50, %s7268_s5 }
0x2509   :  { %v2630_v4 = vpop.permute.xlu0 %2629 }
0x250a   :  { %v2632_v6 = vmul.f32 %v2630_v4, %v2627_v3 }
0x250c   :  { %v8108_v8 = vadd.f32 %v2633_v0, %v2632_v6 }
0x250e   :  { %2636 = vrot.lane.b32.xlu0 %v8108_v8, %s7268_s5 }
0x2580   :  { %v2637_v10 = vpop.permute.xlu0 %2636 }
0x2581   :  { %6100 = vmatmul.mubr.msk.f32.vlgmr.msra.gmra.mrb[26].mxu1 %vm120_vm0, %v2637_v10 }
0x2582   :  { %6103 = vmatpush3.msra.mxu1 %v7871_v5  ;;  %6104 = vmatprep.mubr.msk.f32.mxu1 %vm7266_vm2, %v7256_v40 }
0x2583   :  { %6713 = vmatprep.subr.bf16.mxu1 %v7265_v55 }
0x2654   :  { %v2706_v11 = vpop.f32.mrb[26].mxu1 }
0x2655   :  { %v2707_v15 = vadd.f32 %v2706_v11, %v7890_v59  ;;  %v6101_v36 = vpop.f32.mrb[27].mxu1 }
0x2657   :  { %v2710_v21 = vsel %vm1674_vm6, %v2707_v15, -inf }
0x2658   :  { %2711 = vmax.xlane.f32.xlu0 %v2710_v21 }
0x26e5   :  { %v2712_v9 = vpop.xlane.xlu0 %2711 }
0x26e6   :  { %v2713_v29 = vsub.f32 %v2707_v15, %v2712_v9 }
0x26e8   :  { %v2714_v20 = vmul.f32 1.442695, %v2713_v29 }
0x26ea   :  { %7014 = vpow2.f32 %v2714_v20 }
0x26f4   :  { %v7015_v14 = vpop.eup %7014 }
0x26f5   :  { %v2716_v27 = vsel %vm1674_vm6, %v7015_v14, 0.0 }
0x26f6   :  { %2717 = vadd.xlane.f32.xlu1 %v2716_v27 }
0x2783   :  { %v2718_v28 = vpop.xlane.xlu1 %2717 }
0x2784   :  { %7016 = vrcp.f32 %v2718_v28 }
0x278e   :  { %v7017_v41 = vpop.eup %7016 }
0x278f   :  { %v2720_v51 = vmul.f32 %v7017_v41, %v7015_v14 }
0x2791   :  { %6105 = vmatmul.mubr.msk.f32.vlgmr.msra.gmra.mrb[28].mxu1 %vm1686_vm9, %v2720_v51 }
0x2792   :  { %6715 = vmatpush3.bf16.msra.mxu1 %v7909_v17  ;;  %6123 = vmatprep.mubr.msk.f32.mxu1 %vm7266_vm2, %v7256_v40 }
0x2793   :  { %6716 = vmatprep.subr.bf16.mxu1 %v7265_v55 }
0x2796   :  { %6718 = vmatpush3.bf16.msra.mxu1 %v7915_v19 }
0x2797   :  { %6719 = vmatprep.subr.bf16.mxu1 %v7265_v55 }
0x279a   :  { %6721 = vmatpush3.bf16.msra.mxu1 %v7925_v31 }
0x279b   :  { %6722 = vmatprep.subr.bf16.mxu1 %v7265_v55 }
0x279e   :  { %6724 = vmatpush3.bf16.msra.mxu1 %v7935_v22 }
0x279f   :  { %6737 = vmatprep.subr.bf16.mxu1 %v7265_v55 }
0x2864   :  { %v2790_v30 = vpop.f32.mrb[28].mxu1 }
0x2865   :  { %2796 = vrot.lane.b32.xlu0 %v2790_v30, %s7255_s4  ;;  %v6106_v32 = vpop.f32.mrb[29].mxu1 }
0x28d7   :  { %v2797_v24 = vpop.permute.xlu0 %2796 }
0x28d8   :  { %v2799_v33 = vsel %vm120_vm0, %v2637_v10, %v2797_v24 }
0x28d9   :  { %6124 = vmatmul.mubr.msk.f32.vlgmr.msra.gmra.mrb[30].mxu1 %vm221_vm8, %v2799_v33 }
0x28da   :  { %6739 = vmatpush3.bf16.msra.mxu1 %v7722_v47  ;;  %6156 = vmatprep.mubr.msk.f32.mxu1 %vm7266_vm2, %v7256_v40 }
0x28db   :  { %6740 = vmatprep.subr.bf16.mxu1 %v7265_v55 }
0x28de   :  { %6742 = vmatpush3.bf16.msra.mxu1 %v7728_v57 }
0x28df   :  { %6170 = vmatprep.subr.mxu1 %v7256_v40 }
0x28e1   :  { %6157 = vmatmul.mubr.msk.f32.vlgmr.msra.gmra.mrb[32].mxu1 %vm120_vm0, %v2637_v10 }
0x28e2   :  { %6171 = vmatpush3.msra.mxu1 %v7871_v5  ;;  %6172 = vmatprep.mubr.msk.f32.mxu1 %vm7266_vm2, %v7256_v40 }
0x28e3   :  { %6761 = vmatprep.subr.bf16.mxu1 %v7265_v55 }
0x29ac   :  { %v2869_v39 = vpop.f32.mrb[30].mxu1 }
0x29ad   :  { %v2870_v42 = vadd.f32 %v2869_v39, %v7977_v49  ;;  %v6125_v2 = vpop.f32.mrb[31].mxu1 }
0x29af   :  { %7018 = vtanh.f32 %v2870_v42 }
0x29b4   :  { %v3119_v12 = vpop.f32.mrb[32].mxu1 }
0x29b5   :  { %v6158_v44 = vpop.f32.mrb[33].mxu1  ;;  %v3120_v0 = vadd.f32 %v3119_v12, %v7753_v25 }
0x29b9   :  { %v7019_v13 = vpop.eup %7018 }
0x29ba   :  { %6135 = vmatmul.mubr.msk.f32.vlgmr.msra.gmra.mrb[22].mxu0 %vm120_vm0, %v7019_v13 }
0x29bb   :  { %6733 = vmatpush3.bf16.msra.mxu0 %v7982_v45  ;;  %6145 = vmatprep.mubr.msk.f32.mxu0 %vm7266_vm2, %v7256_v40 }
0x29bc   :  { %6734 = vmatprep.subr.bf16.mxu0 %v7265_v55 }
0x29bf   :  { %6736 = vmatpush3.bf16.msra.mxu0 %v7744_v16 }
0x29c0   :  { %6743 = vmatprep.subr.bf16.mxu0 %v7265_v55 }
0x2a8d   :  { %v2943_v38 = vpop.f32.mrb[22].mxu0 }
0x2a8e   :  { %v8154_v37 = vadd.f32 %v2943_v38, %v7994_v23  ;;  %v6136_v7 = vpop.f32.mrb[23].mxu0 }
0x2a90   :  { %v2947_v53 = vsel %vm1917_vm12, %v8154_v37, -inf }
0x2a91   :  { %2948 = vmax.xlane.f32.xlu1 %v2947_v53 }
0x2b1e   :  { %v8158_v56 = vpop.xlane.xlu1 %2948 }
0x2b1f   :  { %vm2957_vm11 = vcmp.eq.f32.partialorder %v8154_v37, %v8158_v56 }
0x2b20   :  { %v2958_v58 = vsel %vm2957_vm11, %v7547_v63, 32 }
0x2b21   :  { %v2959_v60 = vsel %vm1917_vm12, %v2958_v58, 2147483647 }
0x2b22   :  { %v2961_v61 = vshra.s32 %v2959_v60, 16  ;;  %v2960_v1 = vand.u32 65535, %v2959_v60 }
0x2b24   :  { %v2963_v62 = vcvt.s32.f32 %v2961_v61  ;;  %v2962_v3 = vcvt.s32.f32 %v2960_v1 }
0x2b26   :  { %2964 = vmin.xlane.f32.xlu1 %v2963_v62 }
0x2bb3   :  { %v2965_v50 = vpop.xlane.xlu1 %2964 }
0x2bb4   :  { %vm2966_vm4 = vcmp.eq.f32.partialorder %v2963_v62, %v2965_v50  ;;  %v2971_v6 = vcvt.f32.s32 %v2965_v50 }
0x2bb5   :  { %v2967_v4 = vsel %vm2966_vm4, %v2962_v3, inf }
0x2bb6   :  { %2968 = vmin.xlane.f32.xlu1 %v2967_v4  ;;  %v2972_v11 = vshll.u32 %v2971_v6, 16 }
0x2bc7   :  { %3131 = vrot.lane.b32.xlu1 %v3120_v0, %s7257_s3 }
0x2c43   :  { %v2969_v10 = vpop.xlane.xlu1 %2968 }
0x2c44   :  { %v2970_v15 = vcvt.f32.s32 %v2969_v10 }
0x2c46   :  { %v2973_v36 = vadd.s32 %v2972_v11, %v2970_v15 }
0x2c47   :  { %v3132_v41 = vpop.permute.xlu1 %3131 }
0x2c48   :  { %v8170_v21 = vsel %vm2974_vm13, %v2973_v36, %v8094_v43  ;;  %vm2977_vm14 = vcmp.eq.s32.totalorder %v7547_v63, %v2973_v36 }
0x2c49   :  { %v5639_v9 = vsel %vm2977_vm14, 1.0, %v7256_v40  ;;  %vm4002_vm14 = vcmp.eq.s32.totalorder %v7547_v63, 4 }
0x2c4a   :  { %6146 = vmatmul.mubr.msk.f32.vlgmr.msra.gmra.mrb[24].mxu0 %vm120_vm0, %v5639_v9 }
0x2c4b   :  { %6745 = vmatpush3.bf16.msra.mxu0 %v7877_v52  ;;  %6167 = vmatprep.mubr.msk.f32.mxu0 %vm7266_vm2, %v7256_v40 }
0x2c4c   :  { %6746 = vmatprep.subr.bf16.mxu0 %v7265_v55 }
0x2c4f   :  { %6748 = vmatpush3.bf16.msra.mxu0 %v7881_v54 }
0x2c50   :  { %6749 = vmatprep.subr.bf16.mxu0 %v7265_v55 }
0x2d1d   :  { %v3049_v25 = vpop.f32.mrb[24].mxu0 }
0x2d1e   :  { %v3123_v43 = vadd.f32 %v3120_v0, %v3049_v25  ;;  %v6147_v29 = vpop.f32.mrb[25].mxu0 }
0x2d20   :  { %v5642_v20 = vmul.f32 -1.442695, %v3123_v43 }
0x2d22   :  { %7020 = vpow2.f32 %v5642_v20 }
0x2d2c   :  { %v7021_v14 = vpop.eup %7020 }
0x2d2d   :  { %v3127_v27 = vadd.f32 1.0, %v7021_v14 }
0x2d2f   :  { %7022 = vrcp.f32 %v3127_v27 }
0x2d39   :  { %v7023_v28 = vpop.eup %7022 }
0x2d3a   :  { %v3134_v51 = vmul.f32 %v7023_v28, %v3132_v41  ;;  %v3141_v33 = vsub.f32 1.0, %v7023_v28  ;;  %v3147_v42 = vmul.f32 %v7023_v28, %v8108_v8 }
0x2d3c   :  { %3136 = vrot.lane.b32.xlu0 %v3134_v51, %s7257_s3 }
0x2dae   :  { %v3137_v30 = vpop.permute.xlu0 %3136 }
0x2daf   :  { %v3139_v32 = vadd.f32 %v3137_v30, %v3049_v25 }
0x2db1   :  { %7024 = vtanh.f32 %v3139_v32 }
0x2dbb   :  { %v7025_v24 = vpop.eup %7024 }
0x2dbc   :  { %3143 = vrot.lane.b32.xlu0 %v7025_v24, %s7268_s5 }
0x2e2e   :  { %v3144_v39 = vpop.permute.xlu0 %3143 }
0x2e2f   :  { %v3146_v2 = vmul.f32 %v3144_v39, %v3141_v33 }
0x2e31   :  { %v8184_v12 = vadd.f32 %v3147_v42, %v3146_v2  ;;  %v8242_v2 = vld [vmem:[#allocation10 + $0x20] sm:$0x1] }
0x2e33   :  { %3150 = vrot.lane.b32.xlu0 %v8184_v12, %s7268_s5 }
0x2ea5   :  { %v3151_v44 = vpop.permute.xlu0 %3150 }
0x2ea6   :  { %6168 = vmatmul.mubr.msk.f32.vlgmr.msra.gmra.mrb[26].mxu0 %vm120_vm0, %v3151_v44 }
0x2ea7   :  { %6751 = vmatpush3.bf16.msra.mxu0 %v7909_v17  ;;  %6191 = vmatprep.mubr.msk.f32.mxu0 %vm7266_vm2, %v7256_v40 }
0x2ea8   :  { %6752 = vmatprep.subr.bf16.mxu0 %v7265_v55 }
0x2eab   :  { %6754 = vmatpush3.bf16.msra.mxu0 %v7915_v19 }
0x2eac   :  { %6755 = vmatprep.subr.bf16.mxu0 %v7265_v55 }
0x2eaf   :  { %6757 = vmatpush3.bf16.msra.mxu0 %v7925_v31 }
0x2eb0   :  { %6758 = vmatprep.subr.bf16.mxu0 %v7265_v55 }
0x2eb3   :  { %6760 = vmatpush3.bf16.msra.mxu0 %v7935_v22 }
0x2eb4   :  { %6773 = vmatprep.subr.bf16.mxu0 %v7265_v55 }
0x2f79   :  { %v3220_v8 = vpop.f32.mrb[26].mxu0 }
0x2f7a   :  { %v3221_v13 = vadd.f32 %v3220_v8, %v7890_v59  ;;  %v6169_v38 = vpop.f32.mrb[27].mxu0 }
0x2f7c   :  { %v3224_v7 = vsel %vm1674_vm6, %v3221_v13, -inf }
0x2f7d   :  { %3225 = vmax.xlane.f32.xlu0 %v3224_v7 }
0x300a   :  { %v3226_v53 = vpop.xlane.xlu0 %3225 }
0x300b   :  { %v3227_v58 = vsub.f32 %v3221_v13, %v3226_v53 }
0x300d   :  { %v3228_v60 = vmul.f32 1.442695, %v3227_v58 }
0x300f   :  { %7026 = vpow2.f32 %v3228_v60 }
0x3019   :  { %v7027_v61 = vpop.eup %7026 }
0x301a   :  { %v3230_v62 = vsel %vm1674_vm6, %v7027_v61, 0.0 }
0x301b   :  { %3231 = vadd.xlane.f32.xlu1 %v3230_v62 }
0x30a8   :  { %v3232_v1 = vpop.xlane.xlu1 %3231 }
0x30a9   :  { %7028 = vrcp.f32 %v3232_v1 }
0x30b3   :  { %v7029_v50 = vpop.eup %7028 }
0x30b4   :  { %v3234_v3 = vmul.f32 %v7029_v50, %v7027_v61 }
0x30b6   :  { %6173 = vmatmul.mubr.msk.f32.vlgmr.msra.gmra.mrb[34].mxu1 %vm1686_vm9, %v3234_v3 }
0x30b7   :  { %6763 = vmatpush3.bf16.msra.mxu1 %v7960_v35  ;;  %6202 = vmatprep.mubr.msk.f32.mxu1 %vm7266_vm2, %v7256_v40 }
0x30b8   :  { %6764 = vmatprep.subr.bf16.mxu1 %v7265_v55 }
0x30bb   :  { %6766 = vmatpush3.bf16.msra.mxu1 %v7970_v34 }
0x30bc   :  { %6767 = vmatprep.subr.bf16.mxu1 %v7265_v55 }
0x3189   :  { %v3304_v4 = vpop.f32.mrb[34].mxu1 }
0x318a   :  { %3310 = vrot.lane.b32.xlu0 %v3304_v4, %s7255_s4  ;;  %v6174_v0 = vpop.f32.mrb[35].mxu1 }
0x31fc   :  { %v3311_v6 = vpop.permute.xlu0 %3310 }
0x31fd   :  { %v3313_v10 = vsel %vm120_vm0, %v3151_v44, %v3311_v6 }
0x31fe   :  { %6192 = vmatmul.mubr.msk.f32.vlgmr.msra.gmra.mrb[28].mxu0 %vm221_vm8, %v3313_v10 }
0x31ff   :  { %6775 = vmatpush3.bf16.msra.mxu0 %v7722_v47  ;;  %6224 = vmatprep.mubr.msk.f32.mxu0 %vm7266_vm2, %v7256_v40 }
0x3200   :  { %6776 = vmatprep.subr.bf16.mxu0 %v7265_v55 }
0x3203   :  { %6778 = vmatpush3.bf16.msra.mxu0 %v7728_v57 }
0x3204   :  { %6238 = vmatprep.subr.mxu0 %v7256_v40 }
0x3206   :  { %6225 = vmatmul.mubr.msk.f32.vlgmr.msra.gmra.mrb[30].mxu0 %vm120_vm0, %v3151_v44 }
0x3207   :  { %6239 = vmatpush3.msra.mxu0 %v7871_v5  ;;  %6240 = vmatprep.mubr.msk.f32.mxu0 %vm7266_vm2, %v7256_v40 }
0x3208   :  { %6797 = vmatprep.subr.bf16.mxu0 %v7265_v55 }
0x32d1   :  { %v3383_v11 = vpop.f32.mrb[28].mxu0 }
0x32d2   :  { %v3384_v15 = vadd.f32 %v3383_v11, %v7977_v49  ;;  %v6193_v36 = vpop.f32.mrb[29].mxu0 }
0x32d4   :  { %7030 = vtanh.f32 %v3384_v15 }
0x32d9   :  { %v3633_v9 = vpop.f32.mrb[30].mxu0 }
0x32da   :  { %v6226_v25 = vpop.f32.mrb[31].mxu0  ;;  %v3634_v44 = vadd.f32 %v8242_v2, %v3633_v9 }
0x32de   :  { %v7031_v43 = vpop.eup %7030 }
0x32df   :  { %6203 = vmatmul.mubr.msk.f32.vlgmr.msra.gmra.mrb[36].mxu1 %vm120_vm0, %v7031_v43 }
0x32e0   :  { %6769 = vmatpush3.bf16.msra.mxu1 %v7982_v45  ;;  %6213 = vmatprep.mubr.msk.f32.mxu1 %vm7266_vm2, %v7256_v40 }
0x32e1   :  { %6770 = vmatprep.subr.bf16.mxu1 %v7265_v55 }
0x32e4   :  { %6772 = vmatpush3.bf16.msra.mxu1 %v7744_v16 }
0x32e5   :  { %6779 = vmatprep.subr.bf16.mxu1 %v7265_v55 }
0x33b2   :  { %v3457_v29 = vpop.f32.mrb[36].mxu1 }
0x33b3   :  { %v8232_v20 = vadd.f32 %v3457_v29, %v7994_v23  ;;  %v6204_v14 = vpop.f32.mrb[37].mxu1 }
0x33b5   :  { %v3461_v27 = vsel %vm1917_vm12, %v8232_v20, -inf }
0x33b6   :  { %3462 = vmax.xlane.f32.xlu1 %v3461_v27 }
0x3443   :  { %v8236_v28 = vpop.xlane.xlu1 %3462 }
0x3444   :  { %vm3471_vm15 = vcmp.eq.f32.partialorder %v8232_v20, %v8236_v28 }
0x3445   :  { %v3472_v41 = vsel %vm3471_vm15, %v7547_v63, 32 }
0x3446   :  { %v3473_v51 = vsel %vm1917_vm12, %v3472_v41, 2147483647 }
0x3447   :  { %v3475_v30 = vshra.s32 %v3473_v51, 16  ;;  %v3474_v24 = vand.u32 65535, %v3473_v51 }
0x3449   :  { %v3477_v32 = vcvt.s32.f32 %v3475_v30  ;;  %v3476_v39 = vcvt.s32.f32 %v3474_v24 }
0x344b   :  { %3478 = vmin.xlane.f32.xlu1 %v3477_v32 }
0x34d8   :  { %v3479_v33 = vpop.xlane.xlu1 %3478 }
0x34d9   :  { %vm3480_vm1 = vcmp.eq.f32.partialorder %v3477_v32, %v3479_v33  ;;  %v3485_v8 = vcvt.f32.s32 %v3479_v33 }
0x34da   :  { %v3481_v42 = vsel %vm3480_vm1, %v3476_v39, inf }
0x34db   :  { %3482 = vmin.xlane.f32.xlu1 %v3481_v42  ;;  %v3486_v38 = vshll.u32 %v3485_v8, 16 }
0x34ec   :  { %3645 = vrot.lane.b32.xlu1 %v3634_v44, %s7257_s3 }
0x3568   :  { %v3483_v13 = vpop.xlane.xlu1 %3482 }
0x3569   :  { %v3484_v7 = vcvt.f32.s32 %v3483_v13 }
0x356b   :  { %v3487_v53 = vadd.s32 %v3486_v38, %v3484_v7 }
0x356c   :  { %v3646_v0 = vpop.permute.xlu1 %3645 }
0x356d   :  { %v8250_v58 = vsel %vm3488_vm3, %v3487_v53, %v8170_v21  ;;  %vm3491_vm10 = vcmp.eq.s32.totalorder %v7547_v63, %v3487_v53 }
0x356e   :  { %v5647_v60 = vsel %vm3491_vm10, 1.0, %v7256_v40 }
0x356f   :  { %6214 = vmatmul.mubr.msk.f32.vlgmr.msra.gmra.mrb[38].mxu1 %vm120_vm0, %v5647_v60 }
0x3570   :  { %6781 = vmatpush3.bf16.msra.mxu1 %v7877_v52  ;;  %6235 = vmatprep.mubr.msk.f32.mxu1 %vm7266_vm2, %v7256_v40 }
0x3571   :  { %6782 = vmatprep.subr.bf16.mxu1 %v7265_v55 }
0x3574   :  { %6784 = vmatpush3.bf16.msra.mxu1 %v7881_v54 }
0x3575   :  { %6785 = vmatprep.subr.bf16.mxu1 %v7265_v55 }
0x3642   :  { %v3563_v61 = vpop.f32.mrb[38].mxu1 }
0x3643   :  { %v3637_v21 = vadd.f32 %v3634_v44, %v3563_v61  ;;  %v6215_v62 = vpop.f32.mrb[39].mxu1 }
0x3645   :  { %v5650_v1 = vmul.f32 -1.442695, %v3637_v21 }
0x3647   :  { %7032 = vpow2.f32 %v5650_v1 }
0x3651   :  { %v7033_v50 = vpop.eup %7032 }
0x3652   :  { %v3641_v3 = vadd.f32 1.0, %v7033_v50 }
0x3654   :  { %7034 = vrcp.f32 %v3641_v3 }
0x365e   :  { %v7035_v4 = vpop.eup %7034 }
0x365f   :  { %v3648_v6 = vmul.f32 %v7035_v4, %v3646_v0  ;;  %v3655_v36 = vsub.f32 1.0, %v7035_v4  ;;  %v3661_v25 = vmul.f32 %v7035_v4, %v8184_v12 }
0x3661   :  { %3650 = vrot.lane.b32.xlu0 %v3648_v6, %s7257_s3 }
0x36d3   :  { %v3651_v10 = vpop.permute.xlu0 %3650 }
0x36d4   :  { %v3653_v11 = vadd.f32 %v3651_v10, %v3563_v61 }
0x36d6   :  { %7036 = vtanh.f32 %v3653_v11 }
0x36e0   :  { %v7037_v15 = vpop.eup %7036 }
0x36e1   :  { %3657 = vrot.lane.b32.xlu0 %v7037_v15, %s7268_s5 }
0x3753   :  { %v3658_v9 = vpop.permute.xlu0 %3657 }
0x3754   :  { %v3660_v43 = vmul.f32 %v3658_v9, %v3655_v36 }
0x3756   :  { %v8264_v29 = vadd.f32 %v3661_v25, %v3660_v43 }
0x3758   :  { %3664 = vrot.lane.b32.xlu0 %v8264_v29, %s7268_s5 }
0x37ca   :  { %v3665_v14 = vpop.permute.xlu0 %3664 }
0x37cb   :  { %6236 = vmatmul.mubr.msk.f32.vlgmr.msra.gmra.mrb[40].mxu1 %vm120_vm0, %v3665_v14 }
0x37cc   :  { %6787 = vmatpush3.bf16.msra.mxu1 %v7909_v17  ;;  %6259 = vmatprep.mubr.msk.f32.mxu1 %vm7266_vm2, %v7256_v40 }
0x37cd   :  { %6788 = vmatprep.subr.bf16.mxu1 %v7265_v55 }
0x37d0   :  { %6790 = vmatpush3.bf16.msra.mxu1 %v7915_v19 }
0x37d1   :  { %6791 = vmatprep.subr.bf16.mxu1 %v7265_v55 }
0x37d4   :  { %6793 = vmatpush3.bf16.msra.mxu1 %v7925_v31 }
0x37d5   :  { %6794 = vmatprep.subr.bf16.mxu1 %v7265_v55 }
0x37d8   :  { %6796 = vmatpush3.bf16.msra.mxu1 %v7935_v22 }
0x37d9   :  { %6809 = vmatprep.subr.bf16.mxu1 %v7265_v55 }
0x389e   :  { %v3734_v12 = vpop.f32.mrb[40].mxu1 }
0x389f   :  { %v3735_v27 = vadd.f32 %v3734_v12, %v7890_v59  ;;  %v6237_v41 = vpop.f32.mrb[41].mxu1 }
0x38a1   :  { %v3738_v51 = vsel %vm1674_vm6, %v3735_v27, -inf }
0x38a2   :  { %3739 = vmax.xlane.f32.xlu0 %v3738_v51 }
0x392f   :  { %v3740_v30 = vpop.xlane.xlu0 %3739 }
0x3930   :  { %v3741_v32 = vsub.f32 %v3735_v27, %v3740_v30 }
0x3932   :  { %v3742_v24 = vmul.f32 1.442695, %v3741_v32 }
0x3934   :  { %7038 = vpow2.f32 %v3742_v24 }
0x393e   :  { %v7039_v33 = vpop.eup %7038 }
0x393f   :  { %v3744_v39 = vsel %vm1674_vm6, %v7039_v33, 0.0 }
0x3940   :  { %3745 = vadd.xlane.f32.xlu1 %v3744_v39 }
0x39cd   :  { %v3746_v42 = vpop.xlane.xlu1 %3745 }
0x39ce   :  { %7040 = vrcp.f32 %v3746_v42 }
0x39d8   :  { %v7041_v44 = vpop.eup %7040 }
0x39d9   :  { %v3748_v8 = vmul.f32 %v7041_v44, %v7039_v33 }
0x39db   :  { %6241 = vmatmul.mubr.msk.f32.vlgmr.msra.gmra.mrb[32].mxu0 %vm1686_vm9, %v3748_v8 }
0x39dc   :  { %6799 = vmatpush3.bf16.msra.mxu0 %v7960_v35  ;;  %6270 = vmatprep.mubr.msk.f32.mxu0 %vm7266_vm2, %v7256_v40 }
0x39dd   :  { %6800 = vmatprep.subr.bf16.mxu0 %v7265_v55 }
0x39e0   :  { %6802 = vmatpush3.bf16.msra.mxu0 %v7970_v34 }
0x39e1   :  { %6803 = vmatprep.subr.bf16.mxu0 %v7265_v55 }
0x3aae   :  { %v3818_v13 = vpop.f32.mrb[32].mxu0 }
0x3aaf   :  { %3824 = vrot.lane.b32.xlu0 %v3818_v13, %s7255_s4  ;;  %v6242_v38 = vpop.f32.mrb[33].mxu0 }
0x3b21   :  { %v3825_v7 = vpop.permute.xlu0 %3824 }
0x3b22   :  { %v3827_v53 = vsel %vm120_vm0, %v3665_v14, %v3825_v7 }
0x3b23   :  { %6260 = vmatmul.mubr.msk.f32.vlgmr.msra.gmra.mrb[42].mxu1 %vm221_vm8, %v3827_v53 }
0x3b24   :  { %6811 = vmatpush3.bf16.msra.mxu1 %v7722_v47  ;;  %6292 = vmatprep.mubr.msk.f32.mxu1 %vm7266_vm2, %v7256_v40 }
0x3b25   :  { %6812 = vmatprep.subr.bf16.mxu1 %v7265_v55 }
0x3b28   :  { %6814 = vmatpush3.bf16.msra.mxu1 %v7728_v57 }
0x3b29   :  { %6306 = vmatprep.subr.mxu1 %v7256_v40 }
0x3b2b   :  { %6293 = vmatmul.mubr.msk.f32.vlgmr.msra.gmra.mrb[44].mxu1 %vm120_vm0, %v3665_v14 }
0x3b2c   :  { %6307 = vmatpush3.msra.mxu1 %v7871_v5  ;;  %6308 = vmatprep.mubr.msk.f32.mxu1 %vm7266_vm2, %v7256_v40 }
0x3b2d   :  { %6833 = vmatprep.subr.bf16.mxu1 %v7265_v55 }
0x3bf6   :  { %v3897_v60 = vpop.f32.mrb[42].mxu1 }
0x3bf7   :  { %v3898_v61 = vadd.f32 %v3897_v60, %v7977_v49  ;;  %v6261_v21 = vpop.f32.mrb[43].mxu1 }
0x3bf9   :  { %7042 = vtanh.f32 %v3898_v61 }
0x3bfe   :  { %v4147_v62 = vpop.f32.mrb[44].mxu1 }
0x3bff   :  { %v6294_v1 = vpop.f32.mrb[45].mxu1  ;;  %v4148_v14 = vadd.f32 %v8242_v2, %v4147_v62 }
0x3c03   :  { %v7043_v50 = vpop.eup %7042 }
0x3c04   :  { %6271 = vmatmul.mubr.msk.f32.vlgmr.msra.gmra.mrb[34].mxu0 %vm120_vm0, %v7043_v50 }
0x3c05   :  { %6805 = vmatpush3.bf16.msra.mxu0 %v7982_v45  ;;  %6281 = vmatprep.mubr.msk.f32.mxu0 %vm7266_vm2, %v7256_v40 }
0x3c06   :  { %6806 = vmatprep.subr.bf16.mxu0 %v7265_v55 }
0x3c09   :  { %6808 = vmatpush3.bf16.msra.mxu0 %v7744_v16 }
0x3c0a   :  { %6815 = vmatprep.subr.bf16.mxu0 %v7265_v55 }
0x3cd7   :  { %v3971_v3 = vpop.f32.mrb[34].mxu0 }
0x3cd8   :  { %v8312_v49 = vadd.f32 %v3971_v3, %v7994_v23  ;;  %v6272_v4 = vpop.f32.mrb[35].mxu0 }
0x3cda   :  { %v3975_v0 = vsel %vm1917_vm12, %v8312_v49, -inf }
0x3cdb   :  { %3976 = vmax.xlane.f32.xlu1 %v3975_v0 }
0x3d68   :  { %v8316_v6 = vpop.xlane.xlu1 %3976 }
0x3d69   :  { %vm3985_vm11 = vcmp.eq.f32.partialorder %v8312_v49, %v8316_v6 }
0x3d6a   :  { %v3986_v10 = vsel %vm3985_vm11, %v7547_v63, 32  ;;  %vm4516_vm11 = vcmp.eq.s32.totalorder %v7547_v63, 5 }
0x3d6b   :  { %v3987_v11 = vsel %vm1917_vm12, %v3986_v10, 2147483647 }
0x3d6c   :  { %v3989_v15 = vshra.s32 %v3987_v11, 16  ;;  %v3988_v9 = vand.u32 65535, %v3987_v11 }
0x3d6e   :  { %v3991_v36 = vcvt.s32.f32 %v3989_v15  ;;  %v3990_v25 = vcvt.s32.f32 %v3988_v9 }
0x3d70   :  { %3992 = vmin.xlane.f32.xlu1 %v3991_v36 }
0x3dfd   :  { %v3993_v23 = vpop.xlane.xlu1 %3992 }
0x3dfe   :  { %vm3994_vm4 = vcmp.eq.f32.partialorder %v3991_v36, %v3993_v23  ;;  %v3999_v12 = vcvt.f32.s32 %v3993_v23 }
0x3dff   :  { %v3995_v43 = vsel %vm3994_vm4, %v3990_v25, inf }
0x3e00   :  { %3996 = vmin.xlane.f32.xlu1 %v3995_v43  ;;  %v4000_v41 = vshll.u32 %v3999_v12, 16 }
0x3e11   :  { %4159 = vrot.lane.b32.xlu1 %v4148_v14, %s7257_s3 }
0x3e8d   :  { %v3997_v27 = vpop.xlane.xlu1 %3996 }
0x3e8e   :  { %v3998_v51 = vcvt.f32.s32 %v3997_v27 }
0x3e90   :  { %v4001_v30 = vadd.s32 %v4000_v41, %v3998_v51 }
0x3e91   :  { %v4160_v38 = vpop.permute.xlu1 %4159 }
0x3e92   :  { %v8328_v32 = vsel %vm4002_vm14, %v4001_v30, %v8250_v58  ;;  %vm4005_vm15 = vcmp.eq.s32.totalorder %v7547_v63, %v4001_v30 }
0x3e93   :  { %v5655_v24 = vsel %vm4005_vm15, 1.0, %v7256_v40 }
0x3e94   :  { %6282 = vmatmul.mubr.msk.f32.vlgmr.msra.gmra.mrb[36].mxu0 %vm120_vm0, %v5655_v24 }
0x3e95   :  { %6817 = vmatpush3.bf16.msra.mxu0 %v7877_v52  ;;  %6303 = vmatprep.mubr.msk.f32.mxu0 %vm7266_vm2, %v7256_v40 }
0x3e96   :  { %6818 = vmatprep.subr.bf16.mxu0 %v7265_v55 }
0x3e99   :  { %6820 = vmatpush3.bf16.msra.mxu0 %v7881_v54 }
0x3e9a   :  { %6821 = vmatprep.subr.bf16.mxu0 %v7265_v55 }
0x3f67   :  { %v4077_v33 = vpop.f32.mrb[36].mxu0 }
0x3f68   :  { %v4151_v58 = vadd.f32 %v4148_v14, %v4077_v33  ;;  %v6283_v39 = vpop.f32.mrb[37].mxu0 }
0x3f6a   :  { %v5658_v42 = vmul.f32 -1.442695, %v4151_v58 }
0x3f6c   :  { %7044 = vpow2.f32 %v5658_v42 }
0x3f76   :  { %v7045_v44 = vpop.eup %7044 }
0x3f77   :  { %v4155_v8 = vadd.f32 1.0, %v7045_v44 }
0x3f79   :  { %7046 = vrcp.f32 %v4155_v8 }
0x3f83   :  { %v7047_v13 = vpop.eup %7046 }
0x3f84   :  { %v4162_v7 = vmul.f32 %v7047_v13, %v4160_v38  ;;  %v4169_v21 = vsub.f32 1.0, %v7047_v13  ;;  %v4175_v1 = vmul.f32 %v7047_v13, %v8264_v29  ;;  %v8397_v38 = vld [vmem:[%s8613_s8 + $0x20] sm:$0x1]  ;;  %s7270_s8 = smov [#allocation12]  }
0x3f86   :  { %4164 = vrot.lane.b32.xlu0 %v4162_v7, %s7257_s3 }
0x3ff8   :  { %v4165_v53 = vpop.permute.xlu0 %4164 }
0x3ff9   :  { %v4167_v60 = vadd.f32 %v4165_v53, %v4077_v33  ;;  %v8384_v33 = vld [vmem:[%s8612_s7 + $0x40] sm:$0x1] }
0x3ffb   :  { %7048 = vtanh.f32 %v4167_v60 }
0x4005   :  { %v7049_v61 = vpop.eup %7048 }
0x4006   :  { %4171 = vrot.lane.b32.xlu0 %v7049_v61, %s7268_s5 }
0x4078   :  { %v4172_v62 = vpop.permute.xlu0 %4171 }
0x4079   :  { %v4174_v50 = vmul.f32 %v4172_v62, %v4169_v21 }
0x407b   :  { %v8342_v3 = vadd.f32 %v4175_v1, %v4174_v50 }
0x407d   :  { %4178 = vrot.lane.b32.xlu0 %v8342_v3, %s7268_s5 }
0x40ef   :  { %v4179_v4 = vpop.permute.xlu0 %4178 }
0x40f0   :  { %6304 = vmatmul.mubr.msk.f32.vlgmr.msra.gmra.mrb[38].mxu0 %vm120_vm0, %v4179_v4 }
0x40f1   :  { %6823 = vmatpush3.bf16.msra.mxu0 %v7909_v17  ;;  %6327 = vmatprep.mubr.msk.f32.mxu0 %vm7266_vm2, %v7256_v40 }
0x40f2   :  { %6824 = vmatprep.subr.bf16.mxu0 %v7265_v55 }
0x40f5   :  { %6826 = vmatpush3.bf16.msra.mxu0 %v7915_v19 }
0x40f6   :  { %6827 = vmatprep.subr.bf16.mxu0 %v7265_v55 }
0x40f9   :  { %6829 = vmatpush3.bf16.msra.mxu0 %v7925_v31 }
0x40fa   :  { %6830 = vmatprep.subr.bf16.mxu0 %v7265_v55 }
0x40fd   :  { %6832 = vmatpush3.bf16.msra.mxu0 %v7935_v22 }
0x40fe   :  { %6845 = vmatprep.subr.bf16.mxu0 %v7265_v55 }
0x41c3   :  { %v4248_v29 = vpop.f32.mrb[38].mxu0 }
0x41c4   :  { %v4249_v0 = vadd.f32 %v4248_v29, %v7890_v59  ;;  %v6305_v10 = vpop.f32.mrb[39].mxu0 }
0x41c6   :  { %v4252_v11 = vsel %vm1674_vm6, %v4249_v0, -inf }
0x41c7   :  { %4253 = vmax.xlane.f32.xlu0 %v4252_v11 }
0x4254   :  { %v4254_v15 = vpop.xlane.xlu0 %4253 }
0x4255   :  { %v4255_v36 = vsub.f32 %v4249_v0, %v4254_v15 }
0x4257   :  { %v4256_v9 = vmul.f32 1.442695, %v4255_v36 }
0x4259   :  { %7050 = vpow2.f32 %v4256_v9 }
0x4263   :  { %v7051_v23 = vpop.eup %7050 }
0x4264   :  { %v4258_v25 = vsel %vm1674_vm6, %v7051_v23, 0.0 }
0x4265   :  { %4259 = vadd.xlane.f32.xlu1 %v4258_v25 }
0x42f2   :  { %v4260_v43 = vpop.xlane.xlu1 %4259 }
0x42f3   :  { %7052 = vrcp.f32 %v4260_v43 }
0x42fd   :  { %v7053_v14 = vpop.eup %7052 }
0x42fe   :  { %v4262_v12 = vmul.f32 %v7053_v14, %v7051_v23 }
0x4300   :  { %6309 = vmatmul.mubr.msk.f32.vlgmr.msra.gmra.mrb[46].mxu1 %vm1686_vm9, %v4262_v12 }
0x4301   :  { %6835 = vmatpush3.bf16.msra.mxu1 %v7960_v35  ;;  %6338 = vmatprep.mubr.msk.f32.mxu1 %vm7266_vm2, %v7256_v40 }
0x4302   :  { %6836 = vmatprep.subr.bf16.mxu1 %v7265_v55 }
0x4305   :  { %6838 = vmatpush3.bf16.msra.mxu1 %v7970_v34 }
0x4306   :  { %6839 = vmatprep.subr.bf16.mxu1 %v7265_v55 }
0x43d3   :  { %v4332_v27 = vpop.f32.mrb[46].mxu1 }
0x43d4   :  { %4338 = vrot.lane.b32.xlu0 %v4332_v27, %s7255_s4  ;;  %v6310_v41 = vpop.f32.mrb[47].mxu1 }
0x4446   :  { %v4339_v51 = vpop.permute.xlu0 %4338 }
0x4447   :  { %v4341_v30 = vsel %vm120_vm0, %v4179_v4, %v4339_v51 }
0x4448   :  { %6328 = vmatmul.mubr.msk.f32.vlgmr.msra.gmra.mrb[40].mxu0 %vm221_vm8, %v4341_v30 }
0x4449   :  { %6847 = vmatpush3.bf16.msra.mxu0 %v7722_v47  ;;  %6360 = vmatprep.mubr.msk.f32.mxu0 %vm7266_vm2, %v7256_v40 }
0x444a   :  { %6848 = vmatprep.subr.bf16.mxu0 %v7265_v55 }
0x444d   :  { %6850 = vmatpush3.bf16.msra.mxu0 %v7728_v57 }
0x444e   :  { %6374 = vmatprep.subr.mxu0 %v7256_v40 }
0x4450   :  { %6361 = vmatmul.mubr.msk.f32.vlgmr.msra.gmra.mrb[42].mxu0 %vm120_vm0, %v4179_v4 }
0x4451   :  { %6375 = vmatpush3.msra.mxu0 %v7871_v5  ;;  %6376 = vmatprep.mubr.msk.f32.mxu0 %vm7266_vm2, %v7256_v40 }
0x4452   :  { %6869 = vmatprep.subr.bf16.mxu0 %v7265_v55 }
0x451b   :  { %v4411_v24 = vpop.f32.mrb[40].mxu0 }
0x451c   :  { %v4412_v58 = vadd.f32 %v8384_v33, %v4411_v24  ;;  %v6329_v39 = vpop.f32.mrb[41].mxu0 }
0x451e   :  { %7054 = vtanh.f32 %v4412_v58 }
0x4523   :  { %v4661_v42 = vpop.f32.mrb[42].mxu0 }
0x4524   :  { %v6362_v44 = vpop.f32.mrb[43].mxu0  ;;  %v4662_v11 = vadd.f32 %v8242_v2, %v4661_v42 }
0x4528   :  { %v7055_v8 = vpop.eup %7054 }
0x4529   :  { %6339 = vmatmul.mubr.msk.f32.vlgmr.msra.gmra.mrb[48].mxu1 %vm120_vm0, %v7055_v8 }
0x452a   :  { %6841 = vmatpush3.bf16.msra.mxu1 %v7982_v45  ;;  %6349 = vmatprep.mubr.msk.f32.mxu1 %vm7266_vm2, %v7256_v40 }
0x452b   :  { %6842 = vmatprep.subr.bf16.mxu1 %v7265_v55 }
0x452e   :  { %6844 = vmatpush3.bf16.msra.mxu1 %v7744_v16 }
0x452f   :  { %6851 = vmatprep.subr.bf16.mxu1 %v7265_v55 }
0x45fc   :  { %v4485_v13 = vpop.f32.mrb[48].mxu1 }
0x45fd   :  { %v8400_v7 = vadd.f32 %v8397_v38, %v4485_v13  ;;  %v6340_v53 = vpop.f32.mrb[49].mxu1 }
0x45ff   :  { %v4489_v60 = vsel %vm1917_vm12, %v8400_v7, -inf }
0x4600   :  { %4490 = vmax.xlane.f32.xlu1 %v4489_v60 }
0x468d   :  { %v8404_v61 = vpop.xlane.xlu1 %4490 }
0x468e   :  { %vm4499_vm1 = vcmp.eq.f32.partialorder %v8400_v7, %v8404_v61 }
0x468f   :  { %v4500_v21 = vsel %vm4499_vm1, %v7547_v63, 32 }
0x4690   :  { %v4501_v62 = vsel %vm1917_vm12, %v4500_v21, 2147483647 }
0x4691   :  { %v4503_v1 = vshra.s32 %v4501_v62, 16  ;;  %v4502_v4 = vand.u32 65535, %v4501_v62 }
0x4693   :  { %v4505_v50 = vcvt.s32.f32 %v4503_v1  ;;  %v4504_v0 = vcvt.s32.f32 %v4502_v4 }
0x4695   :  { %4506 = vmin.xlane.f32.xlu1 %v4505_v50 }
0x4722   :  { %v4507_v29 = vpop.xlane.xlu1 %4506 }
0x4723   :  { %vm4508_vm10 = vcmp.eq.f32.partialorder %v4505_v50, %v4507_v29  ;;  %v4513_v15 = vcvt.f32.s32 %v4507_v29 }
0x4724   :  { %v4509_v10 = vsel %vm4508_vm10, %v4504_v0, inf  ;;  %vm5030_vm10 = vcmp.eq.s32.totalorder %v7547_v63, 6 }
0x4725   :  { %4510 = vmin.xlane.f32.xlu1 %v4509_v10  ;;  %v4514_v9 = vshll.u32 %v4513_v15, 16 }
0x4736   :  { %4673 = vrot.lane.b32.xlu1 %v4662_v11, %s7257_s3 }
0x47b2   :  { %v4511_v36 = vpop.xlane.xlu1 %4510 }
0x47b3   :  { %v4512_v23 = vcvt.f32.s32 %v4511_v36 }
0x47b5   :  { %v4515_v25 = vadd.s32 %v4514_v9, %v4512_v23 }
0x47b6   :  { %v4674_v58 = vpop.permute.xlu1 %4673 }
0x47b7   :  { %vm4519_vm4 = vcmp.eq.s32.totalorder %v7547_v63, %v4515_v25  ;;  %v8417_v43 = vsel %vm4516_vm11, %v4515_v25, %v8328_v32 }
0x47b8   :  { %v5663_v14 = vsel %vm4519_vm4, 1.0, %v7256_v40 }
0x47b9   :  { %6350 = vmatmul.mubr.msk.f32.vlgmr.msra.gmra.mrb[50].mxu1 %vm120_vm0, %v5663_v14 }
0x47ba   :  { %6853 = vmatpush3.bf16.msra.mxu1 %v7877_v52  ;;  %6371 = vmatprep.mubr.msk.f32.mxu1 %vm7266_vm2, %v7256_v40 }
0x47bb   :  { %6854 = vmatprep.subr.bf16.mxu1 %v7265_v55 }
0x47be   :  { %6856 = vmatpush3.bf16.msra.mxu1 %v7881_v54 }
0x47bf   :  { %6857 = vmatprep.subr.bf16.mxu1 %v7265_v55 }
0x488c   :  { %v4591_v12 = vpop.f32.mrb[50].mxu1 }
0x488d   :  { %v4665_v27 = vadd.f32 %v4662_v11, %v4591_v12  ;;  %v6351_v41 = vpop.f32.mrb[51].mxu1 }
0x488f   :  { %v5666_v32 = vmul.f32 -1.442695, %v4665_v27 }
0x4891   :  { %7056 = vpow2.f32 %v5666_v32 }
0x489b   :  { %v7057_v51 = vpop.eup %7056 }
0x489c   :  { %v4669_v30 = vadd.f32 1.0, %v7057_v51 }
0x489e   :  { %7058 = vrcp.f32 %v4669_v30 }
0x48a8   :  { %v7059_v24 = vpop.eup %7058 }
0x48a9   :  { %v4676_v39 = vmul.f32 %v7059_v24, %v4674_v58  ;;  %v4683_v13 = vsub.f32 1.0, %v7059_v24  ;;  %v4689_v60 = vmul.f32 %v7059_v24, %v8342_v3 }
0x48ab   :  { %4678 = vrot.lane.b32.xlu0 %v4676_v39, %s7257_s3 }
0x491d   :  { %v4679_v42 = vpop.permute.xlu0 %4678 }
0x491e   :  { %v4681_v44 = vadd.f32 %v4679_v42, %v4591_v12 }
0x4920   :  { %7060 = vtanh.f32 %v4681_v44 }
0x492a   :  { %v7061_v8 = vpop.eup %7060 }
0x492b   :  { %4685 = vrot.lane.b32.xlu0 %v7061_v8, %s7268_s5 }
0x499d   :  { %v4686_v53 = vpop.permute.xlu0 %4685 }
0x499e   :  { %v4688_v21 = vmul.f32 %v4686_v53, %v4683_v13 }
0x49a0   :  { %v8430_v62 = vadd.f32 %v4689_v60, %v4688_v21 }
0x49a2   :  { %4692 = vrot.lane.b32.xlu0 %v8430_v62, %s7268_s5 }
0x4a14   :  { %v4693_v1 = vpop.permute.xlu0 %4692 }
0x4a15   :  { %6372 = vmatmul.mubr.msk.f32.vlgmr.msra.gmra.mrb[52].mxu1 %vm120_vm0, %v4693_v1 }
0x4a16   :  { %6859 = vmatpush3.bf16.msra.mxu1 %v7909_v17  ;;  %6395 = vmatprep.mubr.msk.f32.mxu1 %vm7266_vm2, %v7256_v40 }
0x4a17   :  { %6860 = vmatprep.subr.bf16.mxu1 %v7265_v55 }
0x4a1a   :  { %6862 = vmatpush3.bf16.msra.mxu1 %v7915_v19 }
0x4a1b   :  { %6863 = vmatprep.subr.bf16.mxu1 %v7265_v55 }
0x4a1e   :  { %6865 = vmatpush3.bf16.msra.mxu1 %v7925_v31 }
0x4a1f   :  { %6866 = vmatprep.subr.bf16.mxu1 %v7265_v55 }
0x4a22   :  { %6868 = vmatpush3.bf16.msra.mxu1 %v7935_v22 }
0x4a23   :  { %6881 = vmatprep.subr.bf16.mxu1 %v7265_v55 }
0x4ae8   :  { %v4762_v3 = vpop.f32.mrb[52].mxu1 }
0x4ae9   :  { %v4763_v50 = vadd.f32 %v4762_v3, %v7890_v59  ;;  %v6373_v4 = vpop.f32.mrb[53].mxu1 }
0x4aeb   :  { %v4766_v29 = vsel %vm1674_vm6, %v4763_v50, -inf }
0x4aec   :  { %4767 = vmax.xlane.f32.xlu0 %v4766_v29 }
0x4b79   :  { %v4768_v0 = vpop.xlane.xlu0 %4767 }
0x4b7a   :  { %v4769_v10 = vsub.f32 %v4763_v50, %v4768_v0 }
0x4b7c   :  { %v4770_v11 = vmul.f32 1.442695, %v4769_v10 }
0x4b7e   :  { %7062 = vpow2.f32 %v4770_v11 }
0x4b88   :  { %v7063_v15 = vpop.eup %7062 }
0x4b89   :  { %v4772_v36 = vsel %vm1674_vm6, %v7063_v15, 0.0 }
0x4b8a   :  { %4773 = vadd.xlane.f32.xlu1 %v4772_v36 }
0x4c17   :  { %v4774_v9 = vpop.xlane.xlu1 %4773 }
0x4c18   :  { %7064 = vrcp.f32 %v4774_v9 }
0x4c22   :  { %v7065_v23 = vpop.eup %7064 }
0x4c23   :  { %v4776_v25 = vmul.f32 %v7065_v23, %v7063_v15 }
0x4c25   :  { %6377 = vmatmul.mubr.msk.f32.vlgmr.msra.gmra.mrb[44].mxu0 %vm1686_vm9, %v4776_v25 }
0x4c26   :  { %6871 = vmatpush3.bf16.msra.mxu0 %v7960_v35  ;;  %6406 = vmatprep.mubr.msk.f32.mxu0 %vm7266_vm2, %v7256_v40 }
0x4c27   :  { %6872 = vmatprep.subr.bf16.mxu0 %v7265_v55 }
0x4c2a   :  { %6874 = vmatpush3.bf16.msra.mxu0 %v7970_v34 }
0x4c2b   :  { %6875 = vmatprep.subr.bf16.mxu0 %v7265_v55 }
0x4cf8   :  { %v4846_v14 = vpop.f32.mrb[44].mxu0 }
0x4cf9   :  { %4852 = vrot.lane.b32.xlu0 %v4846_v14, %s7255_s4  ;;  %v6378_v12 = vpop.f32.mrb[45].mxu0 }
0x4d6b   :  { %v4853_v27 = vpop.permute.xlu0 %4852 }
0x4d6c   :  { %v4855_v41 = vsel %vm120_vm0, %v4693_v1, %v4853_v27 }
0x4d6d   :  { %6396 = vmatmul.mubr.msk.f32.vlgmr.msra.gmra.mrb[54].mxu1 %vm221_vm8, %v4855_v41 }
0x4d6e   :  { %6883 = vmatpush3.bf16.msra.mxu1 %v7722_v47  ;;  %6428 = vmatprep.mubr.msk.f32.mxu1 %vm7266_vm2, %v7256_v40 }
0x4d6f   :  { %6884 = vmatprep.subr.bf16.mxu1 %v7265_v55 }
0x4d72   :  { %6886 = vmatpush3.bf16.msra.mxu1 %v7728_v57 }
0x4d73   :  { %6442 = vmatprep.subr.mxu1 %v7256_v40 }
0x4d75   :  { %6429 = vmatmul.mubr.msk.f32.vlgmr.msra.gmra.mrb[56].mxu1 %vm120_vm0, %v4693_v1 }
0x4d76   :  { %6443 = vmatpush3.msra.mxu1 %v7871_v5  ;;  %6444 = vmatprep.mubr.msk.f32.mxu1 %vm7266_vm2, %v7256_v40 }
0x4d77   :  { %6905 = vmatprep.subr.bf16.mxu1 %v7265_v55 }
0x4e40   :  { %v4925_v32 = vpop.f32.mrb[54].mxu1 }
0x4e41   :  { %v4926_v47 = vadd.f32 %v8384_v33, %v4925_v32  ;;  %v6397_v51 = vpop.f32.mrb[55].mxu1 }
0x4e43   :  { %7066 = vtanh.f32 %v4926_v47 }
0x4e48   :  { %v5175_v30 = vpop.f32.mrb[56].mxu1 }
0x4e49   :  { %v6430_v24 = vpop.f32.mrb[57].mxu1  ;;  %v5176_v3 = vadd.f32 %v8242_v2, %v5175_v30 }
0x4e4d   :  { %v7067_v58 = vpop.eup %7066 }
0x4e4e   :  { %6407 = vmatmul.mubr.msk.f32.vlgmr.msra.gmra.mrb[46].mxu0 %vm120_vm0, %v7067_v58 }
0x4e4f   :  { %6877 = vmatpush3.bf16.msra.mxu0 %v7982_v45  ;;  %6417 = vmatprep.mubr.msk.f32.mxu0 %vm7266_vm2, %v7256_v40 }
0x4e50   :  { %6878 = vmatprep.subr.bf16.mxu0 %v7265_v55 }
0x4e53   :  { %6880 = vmatpush3.bf16.msra.mxu0 %v7744_v16 }
0x4e54   :  { %6887 = vmatprep.subr.bf16.mxu0 %v7265_v55 }
0x4f21   :  { %v4999_v57 = vpop.f32.mrb[46].mxu0 }
0x4f22   :  { %v8478_v5 = vadd.f32 %v8397_v38, %v4999_v57  ;;  %v6408_v39 = vpop.f32.mrb[47].mxu0 }
0x4f24   :  { %v5003_v42 = vsel %vm1917_vm12, %v8478_v5, -inf }
0x4f25   :  { %5004 = vmax.xlane.f32.xlu1 %v5003_v42 }
0x4fb2   :  { %v8482_v44 = vpop.xlane.xlu1 %5004 }
0x4fb3   :  { %vm5013_vm15 = vcmp.eq.f32.partialorder %v8478_v5, %v8482_v44 }
0x4fb4   :  { %v5014_v45 = vsel %vm5013_vm15, %v7547_v63, 32 }
0x4fb5   :  { %v5015_v16 = vsel %vm1917_vm12, %v5014_v45, 2147483647 }
0x4fb6   :  { %v5017_v8 = vshra.s32 %v5015_v16, 16  ;;  %v5016_v53 = vand.u32 65535, %v5015_v16 }
0x4fb8   :  { %v5019_v13 = vcvt.s32.f32 %v5017_v8  ;;  %v5018_v21 = vcvt.s32.f32 %v5016_v53 }
0x4fba   :  { %5020 = vmin.xlane.f32.xlu1 %v5019_v13 }
0x5047   :  { %v5021_v60 = vpop.xlane.xlu1 %5020 }
0x5048   :  { %vm5022_vm1 = vcmp.eq.f32.partialorder %v5019_v13, %v5021_v60  ;;  %v5027_v50 = vcvt.f32.s32 %v5021_v60  ;;  %v2950_v60 = vsub.f32 %v8154_v37, %v8158_v56 }
0x5049   :  { %v5023_v1 = vsel %vm5022_vm1, %v5018_v21, inf }
0x504a   :  { %5024 = vmin.xlane.f32.xlu1 %v5023_v1  ;;  %v5028_v29 = vshll.u32 %v5027_v50, 16  ;;  %v2951_v21 = vmul.f32 1.442695, %v2950_v60 }
0x505b   :  { %5187 = vrot.lane.b32.xlu1 %v5176_v3, %s7257_s3 }
0x50d7   :  { %v5025_v4 = vpop.xlane.xlu1 %5024 }
0x50d8   :  { %v5026_v0 = vcvt.f32.s32 %v5025_v4 }
0x50da   :  { %v5029_v10 = vadd.s32 %v5028_v29, %v5026_v0 }
0x50db   :  { %v5188_v12 = vpop.permute.xlu1 %5187 }
0x50dc   :  { %vm5033_vm4 = vcmp.eq.s32.totalorder %v7547_v63, %v5029_v10  ;;  %v8495_v11 = vsel %vm5030_vm10, %v5029_v10, %v8417_v43  ;;  %v1921_v10 = vsub.f32 %v7997_v46, %v8003_v48 }
0x50dd   :  { %v5671_v15 = vsel %vm5033_vm4, 1.0, %v7256_v40 }
0x50de   :  { %6418 = vmatmul.mubr.msk.f32.vlgmr.msra.gmra.mrb[48].mxu0 %vm120_vm0, %v5671_v15  ;;  %v1922_v15 = vmul.f32 1.442695, %v1921_v10 }
0x50df   :  { %6889 = vmatpush3.bf16.msra.mxu0 %v7877_v52  ;;  %6439 = vmatprep.mubr.msk.f32.mxu0 %vm7266_vm2, %v7256_v40 }
0x50e0   :  { %6890 = vmatprep.subr.bf16.mxu0 %v7265_v55 }
0x50e3   :  { %6892 = vmatpush3.bf16.msra.mxu0 %v7881_v54 }
0x50e4   :  { %6893 = vmatprep.subr.bf16.mxu0 %v7265_v55 }
0x51b1   :  { %v5105_v2 = vpop.f32.mrb[48].mxu0 }
0x51b2   :  { %v5179_v36 = vadd.f32 %v5176_v3, %v5105_v2  ;;  %v6419_v9 = vpop.f32.mrb[49].mxu0 }
0x51b4   :  { %v5674_v43 = vmul.f32 -1.442695, %v5179_v36  ;;  %v3464_v36 = vsub.f32 %v8232_v20, %v8236_v28  ;;  %v5006_v28 = vsub.f32 %v8478_v5, %v8482_v44 }
0x51b6   :  { %7068 = vpow2.f32 %v5674_v43  ;;  %v3978_v43 = vsub.f32 %v8312_v49, %v8316_v6 }
0x51c0   :  { %v7069_v23 = vpop.eup %7068 }
0x51c1   :  { %v5183_v25 = vadd.f32 1.0, %v7069_v23 }
0x51c3   :  { %7070 = vrcp.f32 %v5183_v25  ;;  %v3979_v25 = vmul.f32 1.442695, %v3978_v43 }
0x51cd   :  { %v7071_v14 = vpop.eup %7070 }
0x51ce   :  { %v5190_v52 = vmul.f32 %v7071_v14, %v5188_v12  ;;  %v5197_v54 = vsub.f32 1.0, %v7071_v14  ;;  %v5203_v51 = vmul.f32 %v7071_v14, %v8430_v62  ;;  %v5007_v12 = vmul.f32 1.442695, %v5006_v28 }
0x51d0   :  { %5192 = vrot.lane.b32.xlu0 %v5190_v52, %s7257_s3 }
0x5242   :  { %v5193_v27 = vpop.permute.xlu0 %5192 }
0x5243   :  { %v5195_v41 = vadd.f32 %v5193_v27, %v5105_v2  ;;  %v2436_v2 = vsub.f32 %v8075_v18, %v8079_v26  ;;  %v4492_v18 = vsub.f32 %v8400_v7, %v8404_v61 }
0x5245   :  { %7072 = vtanh.f32 %v5195_v41  ;;  %v4493_v20 = vmul.f32 1.442695, %v4492_v18 }
0x524f   :  { %v7073_v32 = vpop.eup %7072 }
0x5250   :  { %5199 = vrot.lane.b32.xlu0 %v7073_v32, %s7268_s5 }
0x52c2   :  { %v5200_v47 = vpop.permute.xlu0 %5199 }
0x52c3   :  { %v5202_v30 = vmul.f32 %v5200_v47, %v5197_v54 }
0x52c5   :  { %v5204_v24 = vadd.f32 %v5203_v51, %v5202_v30 }
0x52c7   :  { %5206 = vrot.lane.b32.xlu0 %v5204_v24, %s7268_s5 }
0x5339   :  { %v5207_v58 = vpop.permute.xlu0 %5206 }
0x533a   :  { %6440 = vmatmul.mubr.msk.f32.vlgmr.msra.gmra.mrb[50].mxu0 %vm120_vm0, %v5207_v58 }
0x533b   :  { %6895 = vmatpush3.bf16.msra.mxu0 %v7909_v17  ;;  %6463 = vmatprep.mubr.msk.f32.mxu0 %vm7266_vm2, %v7256_v40 }
0x533c   :  { %6896 = vmatprep.subr.bf16.mxu0 %v7265_v55 }
0x533f   :  { %6898 = vmatpush3.bf16.msra.mxu0 %v7915_v19 }
0x5340   :  { %6899 = vmatprep.subr.bf16.mxu0 %v7265_v55 }
0x5343   :  { %6901 = vmatpush3.bf16.msra.mxu0 %v7925_v31 }
0x5344   :  { %6902 = vmatprep.subr.bf16.mxu0 %v7265_v55 }
0x5347   :  { %6904 = vmatpush3.bf16.msra.mxu0 %v7935_v22 }
0x540d   :  { %v5276_v62 = vpop.f32.mrb[50].mxu0 }
0x540e   :  { %v5277_v57 = vadd.f32 %v5276_v62, %v7890_v59  ;;  %v6441_v39 = vpop.f32.mrb[51].mxu0 }
0x5410   :  { %v5280_v17 = vsel %vm1674_vm6, %v5277_v57, -inf }
0x5411   :  { %5281 = vmax.xlane.f32.xlu0 %v5280_v17 }
0x549e   :  { %v5282_v42 = vpop.xlane.xlu0 %5281 }
0x549f   :  { %v5283_v45 = vsub.f32 %v5277_v57, %v5282_v42 }
0x54a1   :  { %v5284_v16 = vmul.f32 1.442695, %v5283_v45 }
0x54a3   :  { %7074 = vpow2.f32 %v5284_v16 }
0x54ad   :  { %v7075_v19 = vpop.eup %7074 }
0x54ae   :  { %v5286_v8 = vsel %vm1674_vm6, %v7075_v19, 0.0 }
0x54af   :  { %5287 = vadd.xlane.f32.xlu1 %v5286_v8 }
0x553c   :  { %v5288_v31 = vpop.xlane.xlu1 %5287 }
0x553d   :  { %7076 = vrcp.f32 %v5288_v31 }
0x553e   :  { %7078 = vpow2.f32 %v2951_v21 }
0x5547   :  { %v7077_v13 = vpop.eup %7076 }
0x5548   :  { %v5290_v53 = vmul.f32 %v7077_v13, %v7075_v19  ;;  %v7079_v1 = vpop.eup %7078 }
0x5549   :  { %v2953_v3 = vsel %vm1917_vm12, %v7079_v1, 0.0 }
0x554a   :  { %6445 = vmatmul.mubr.msk.f32.vlgmr.msra.gmra.mrb[58].mxu1 %vm1686_vm9, %v5290_v53 }
0x554b   :  { %6907 = vmatpush3.bf16.msra.mxu1 %v7960_v35  ;;  %6474 = vmatprep.mubr.msk.f32.mxu1 %vm7266_vm2, %v7256_v40  ;;  %vm5544_vm2 = vcmp.eq.s32.totalorder %v7547_v63, 7 }
0x554c   :  { %6908 = vmatprep.subr.bf16.mxu1 %v7265_v55 }
0x554f   :  { %6910 = vmatpush3.bf16.msra.mxu1 %v7970_v34 }
0x561d   :  { %v5360_v59 = vpop.f32.mrb[58].mxu1 }
0x561e   :  { %5366 = vrot.lane.b32.xlu0 %v5360_v59, %s7255_s4  ;;  %v6446_v22 = vpop.f32.mrb[59].mxu1  ;;  %s5565_s4 = sshll.u32 %s7270_s8, 4  ;;  %s5566_s4 = int_to_ptr.vmem [resolvable:$true] %s5565_s4 }
0x561f   :  { %s7193_s3 = scalar_lea.vmem %s5566_s4, 16  ;;  %s7197_s5 = scalar_lea.vmem %s5566_s4, 32 }
0x5620   :  { %p7194_p1 = scmp.ne.s32.totalorder %s5566_s4, %s7193_s3  ;;  %p7198_p2 = scmp.lt.s32.totalorder %s5566_s4, %s5566_s4 }
0x5621   :  { %p7199_p3 = scmp.lt.s32.totalorder %s7197_s5, %s7193_s3 }
0x5623   :  { %p7200_p4 = por %p7199_p3, %p7198_p2 }
0x5625   :  { %p7201_p5 = pnand %p7200_p4, %p7194_p1 }
0x563d   :  { %2954 = vadd.xlane.f32.xlu0 %v2953_v3 }
0x5690   :  { %v5367_v35 = vpop.permute.xlu0 %5366 }
0x5691   :  { %v5369_v40 = vsel %vm120_vm0, %v5207_v58, %v5367_v35 }
0x5692   :  { %6464 = vmatmul.mubr.msk.f32.vlgmr.msra.gmra.mrb[52].mxu0 %vm221_vm8, %v5369_v40 }
0x56ca   :  { %v2955_v19 = vpop.xlane.xlu0 %2954 }
0x5765   :  { %v5439_v55 = vpop.f32.mrb[52].mxu0 }
0x5766   :  { %v5440_v34 = vadd.f32 %v8384_v33, %v5439_v55  ;;  %v6465_v50 = vpop.f32.mrb[53].mxu0  ;;  %v2437_v33 = vmul.f32 1.442695, %v2436_v2 }
0x5768   :  { %7080 = vtanh.f32 %v5440_v34 }
0x5769   :  { %7082 = vpow2.f32 %v1922_v15 }
0x576a   :  { %7084 = vpow2.f32 %v2437_v33 }
0x5772   :  { %v7081_v4 = vpop.eup %7080 }
0x5773   :  { %6475 = vmatmul.mubr.msk.f32.vlgmr.msra.gmra.mrb[60].mxu1 %vm120_vm0, %v7081_v4  ;;  %v7083_v14 = vpop.eup %7082 }
0x5774   :  { %v1924_v49 = vsel %vm1917_vm12, %v7083_v14, 0.0  ;;  %v7085_v6 = vpop.eup %7084 }
0x5775   :  { %v2439_v27 = vsel %vm1917_vm12, %v7085_v6, 0.0 }
0x5846   :  { %v5513_v37 = vpop.f32.mrb[60].mxu1 }
0x5847   :  { %v5514_v56 = vadd.f32 %v8397_v38, %v5513_v37  ;;  %v6476_v29 = vpop.f32.mrb[61].mxu1  ;;  %v3465_v38 = vmul.f32 1.442695, %v3464_v36 }
0x5849   :  { %v5517_v0 = vsel %vm1917_vm12, %v5514_v56, -inf  ;;  %7086 = vpow2.f32 %v3465_v38 }
0x584a   :  { %5518 = vmax.xlane.f32.xlu1 %v5517_v0  ;;  %7088 = vpow2.f32 %v3979_v25 }
0x584b   :  { %7090 = vpow2.f32 %v4493_v20 }
0x584c   :  { %7092 = vpow2.f32 %v5007_v12 }
0x5853   :  { %v7087_v41 = vpop.eup %7086 }
0x5854   :  { %v3467_v61 = vsel %vm1917_vm12, %v7087_v41, 0.0  ;;  %v7089_v32 = vpop.eup %7088 }
0x5855   :  { %v3981_v5 = vsel %vm1917_vm12, %v7089_v32, 0.0  ;;  %v7091_v44 = vpop.eup %7090 }
0x5856   :  { %v4495_v54 = vsel %vm1917_vm12, %v7091_v44, 0.0  ;;  %v7093_v47 = vpop.eup %7092 }
0x5857   :  { %v5009_v51 = vsel %vm1917_vm12, %v7093_v47, 0.0 }
0x58d7   :  { %v5519_v9 = vpop.xlane.xlu1 %5518 }
0x58d8   :  { %vm5527_vm0 = vcmp.eq.f32.partialorder %v5514_v56, %v5519_v9  ;;  %v5520_v52 = vsub.f32 %v5514_v56, %v5519_v9 }
0x58d9   :  { %v5528_v23 = vsel %vm5527_vm0, %v7547_v63, 32 }
0x58da   :  { %v5529_v46 = vsel %vm1917_vm12, %v5528_v23, 2147483647  ;;  %v5521_v7 = vmul.f32 1.442695, %v5520_v52 }
0x58db   :  { %v5531_v48 = vshra.s32 %v5529_v46, 16  ;;  %v5530_v58 = vand.u32 65535, %v5529_v46 }
0x58dc   :  { %7094 = vpow2.f32 %v5521_v7 }
0x58dd   :  { %v5533_v26 = vcvt.s32.f32 %v5531_v48  ;;  %v5532_v57 = vcvt.s32.f32 %v5530_v58 }
0x58df   :  { %5534 = vmin.xlane.f32.xlu1 %v5533_v26 }
0x58e3   :  { %1925 = vadd.xlane.f32.xlu1 %v1924_v49 }
0x58e6   :  { %v7095_v30 = vpop.eup %7094 }
0x58e7   :  { %2440 = vadd.xlane.f32.xlu1 %v2439_v27  ;;  %v5523_v24 = vsel %vm1917_vm12, %v7095_v30, 0.0 }
0x58eb   :  { %3468 = vadd.xlane.f32.xlu1 %v3467_v61 }
0x58ef   :  { %3982 = vadd.xlane.f32.xlu1 %v3981_v5 }
0x58f3   :  { %4496 = vadd.xlane.f32.xlu1 %v4495_v54 }
0x58f7   :  { %5010 = vadd.xlane.f32.xlu1 %v5009_v51 }
0x58fb   :  { %5524 = vadd.xlane.f32.xlu1 %v5523_v24 }
0x596c   :  { %v5535_v62 = vpop.xlane.xlu1 %5534 }
0x596d   :  { %vm5536_vm8 = vcmp.eq.f32.partialorder %v5533_v26, %v5535_v62 }
0x596e   :  { %v5537_v39 = vsel %vm5536_vm8, %v5532_v57, inf }
0x596f   :  { %5538 = vmin.xlane.f32.xlu1 %v5537_v39 }
0x5970   :  { %v1926_v17 = vpop.xlane.xlu1 %1925 }
0x5971   :  { %7096 = vrcp.f32 %v1926_v17 }
0x5974   :  { %v2441_v42 = vpop.xlane.xlu1 %2440 }
0x5975   :  { %7098 = vrcp.f32 %v2441_v42 }
0x5976   :  { %7100 = vrcp.f32 %v2955_v19 }
0x5978   :  { %v3469_v45 = vpop.xlane.xlu1 %3468 }
0x5979   :  { %7102 = vrcp.f32 %v3469_v45 }
0x597b   :  { %v7097_v13 = vpop.eup %7096 }
0x597c   :  { %v3983_v16 = vpop.xlane.xlu1 %3982  ;;  %v1947_v22 = vsel %vm1945_vm5, %v7097_v13, 0.0 }
0x597d   :  { %7104 = vrcp.f32 %v3983_v16 }
0x597f   :  { %v7099_v59 = vpop.eup %7098 }
0x5980   :  { %v4497_v8 = vpop.xlane.xlu1 %4496  ;;  %v7101_v60 = vpop.eup %7100  ;;  %v2462_v21 = vsel %vm2460_vm7, %v7099_v59, %v1947_v22 }
0x5981   :  { %7106 = vrcp.f32 %v4497_v8  ;;  %v2976_v40 = vsel %vm2974_vm13, %v7101_v60, %v2462_v21 }
0x5983   :  { %v7103_v1 = vpop.eup %7102 }
0x5984   :  { %v5011_v31 = vpop.xlane.xlu1 %5010  ;;  %v3490_v34 = vsel %vm3488_vm3, %v7103_v1, %v2976_v40 }
0x5985   :  { %7108 = vrcp.f32 %v5011_v31 }
0x5987   :  { %v7105_v3 = vpop.eup %7104 }
0x5988   :  { %v5525_v53 = vpop.xlane.xlu1 %5524  ;;  %v4004_v50 = vsel %vm4002_vm14, %v7105_v3, %v3490_v34 }
0x5989   :  { %7110 = vrcp.f32 %v5525_v53 }
0x598b   :  { %v7107_v35 = vpop.eup %7106 }
0x598c   :  { %v4518_v4 = vsel %vm4516_vm11, %v7107_v35, %v4004_v50 }
0x598f   :  { %v7109_v55 = vpop.eup %7108 }
0x5990   :  { %v5032_v56 = vsel %vm5030_vm10, %v7109_v55, %v4518_v4 }
0x5993   :  { %v7111_v37 = vpop.eup %7110 }
0x5994   :  { %v5546_v29 = vsel %vm5544_vm2, %v7111_v37, %v5032_v56 }
0x5995   :  { %5548 = vst.msk [vmem:[#allocation12] sm:$0x1] %vm1674_vm6, %v5546_v29 }
0x5996   :  { %7204 = shalt.err (!%p7201_p5)
}
0x5997   :  { %s7205_s15 = scalar_lea.hbm %s8615_s10, 16 }
0x5998   :  { %p7206_p6 = scmp.ne.s32.totalorder %s8615_s10, %s7205_s15  ;;  %p7209_p7 = scmp.lt.u32.totalorder %s7205_s15, %s8615_s10 }
0x599a   :  { %p7211_p8 = pnand %p7209_p7, %p7206_p6 }
0x599c   :  { %7214 = shalt.err (!%p7211_p8)
}
0x599d   :  { %5568 = dma.vmem_to_hbm [thread:$0]  %s5566_s4, 16, %s8615_s10, [#allocation13]   ;;  %v5541_v0 = vcvt.f32.s32 %v5535_v62 }
0x599e   :  { %s7271_s16 = smov [#allocation11]  }
0x599f   :  { %v5542_v15 = vshll.u32 %v5541_v0, 16  ;;  %s5555_s24 = sshll.u32 %s7271_s16, 4  ;;  %s5556_s24 = int_to_ptr.vmem [resolvable:$true] %s5555_s24 }
0x59a0   :  { %s7215_s25 = scalar_lea.vmem %s5556_s24, 16  ;;  %s7219_s18 = scalar_lea.vmem %s5556_s24, 32 }
0x59a1   :  { %p7216_p9 = scmp.ne.s32.totalorder %s5556_s24, %s7215_s25  ;;  %p7220_p10 = scmp.lt.s32.totalorder %s5556_s24, %s5556_s24 }
0x59a2   :  { %p7221_p11 = scmp.lt.s32.totalorder %s7219_s18, %s7215_s25 }
0x59a4   :  { %p7222_p12 = por %p7221_p11, %p7220_p10 }
0x59a6   :  { %p7223_p13 = pnand %p7222_p12, %p7216_p9 }
0x59fc   :  { %v5539_v10 = vpop.xlane.xlu1 %5538 }
0x59fd   :  { %v5540_v2 = vcvt.f32.s32 %v5539_v10 }
0x59ff   :  { %v5543_v33 = vadd.s32 %v5542_v15, %v5540_v2 }
0x5a01   :  { %v5545_v36 = vsel %vm5544_vm2, %v5543_v33, %v8495_v11 }
0x5a02   :  { %5547 = vst.msk [vmem:[#allocation11] sm:$0x1] %vm1674_vm6, %v5545_v36 }
0x5a03   :  { %7226 = shalt.err (!%p7223_p13)
}
0x5a04   :  { %s7227_s26 = scalar_lea.hbm %s8614_s9, 16 }
0x5a05   :  { %p7228_p0 = scmp.ne.s32.totalorder %s8614_s9, %s7227_s26  ;;  %p7231_p1 = scmp.lt.u32.totalorder %s7227_s26, %s8614_s9 }
0x5a07   :  { %p7233_p2 = pnand %p7231_p1, %p7228_p0 }
0x5a09   :  { %7236 = shalt.err (!%p7233_p2)
}
0x5a0a   :  { %5558 = dma.vmem_to_hbm [thread:$0]  %s5556_s24, 16, %s8614_s9, [#allocation5]  }
0x5a0b   :  { %7243 = dma.done.wait [#allocation5], 16  }
0x5a0c   :  { %7244 = vsyncadd [#allocation5], 4294967280 }
0x5a0d   :  { %7245 = dma.done.wait [#allocation13], 16  }
0x5a0e   :  { %7246 = vsyncadd [#allocation13], 4294967280 }
0x5a0f   :  { %5575 = vsyncpa [#allocation4], 1 }
0x5a10   :  { %5576 = vsyncpa [#allocation9], 1 }
0x5a11   :  { %5577 = vsyncpa [#allocation5], 1 }
0x5a12   :  { %5578 = vsyncpa [#allocation13], 1 }
0x5a13   :  { %5579 = vsyncpa [#allocation6], 1 }

</bundles_post_ra>
